<compile_context>
chip_gen: v5e
topology: v5e:2x2
jax: 0.10.0
libtpu: 0.0.40
codegen_flags: <defaults>
</compile_context>

<pallas_src>
import jax
import jax.numpy as jnp
from jax import lax
from jax.experimental import pallas as pl
from jax.experimental.pallas import tpu as pltpu


def _round_up(v, m):
    return (v + m - 1) // m * m


def _cdiv(a, b):
    return (a + b - 1) // b


def nn_model3a_kernel(n_ref,                    # SMEM (1,) int32: true instance count N
                      x_ref,                    # (TN, C_in)   f32  streamed tile
                      w1_ref,                   # (C_in, 512)  bf16
                      w2_ref,                   # (512, FC1P)  bf16
                      w3_ref,                   # (FC1P, FC2P) bf16
                      pk_ref,                   # (8, 512) f32: b1,a1,b2,a2,b3,a3 rows
                      o_ref):                   # (8, FC2P) f32: per-slice running max
    t = pl.program_id(1)                        # reduction ("arbitrary") axis over N-tiles
    tn = x_ref.shape[0]
    h1 = w1_ref.shape[1]
    fc1_p = w2_ref.shape[1]
    fc2_p = w3_ref.shape[1]

    def prelu(h, a):                            # a: (1, H) broadcast slope row (VPU select)
        return jnp.where(h > 0, h, a * h)

    # f32 -> bf16 cast done here (free under the saturated MXU slot); no extra
    # HBM copy of x is made in the wrapper.
    x = x_ref[...].astype(jnp.bfloat16)

    # Conv1d(k=1) layers == dense layers over the channel axis (MXU, f32 acc).
    h = jnp.dot(x, w1_ref[...], preferred_element_type=jnp.float32)
    h = prelu(h + pk_ref[0:1, :h1], pk_ref[1:2, :h1])          # Dropout -> identity (eval)

    h = jnp.dot(h.astype(jnp.bfloat16), w2_ref[...],
                preferred_element_type=jnp.float32)
    h = prelu(h + pk_ref[2:3, :fc1_p], pk_ref[3:4, :fc1_p])    # Dropout -> identity (eval)

    h = jnp.dot(h.astype(jnp.bfloat16), w3_ref[...],
                preferred_element_type=jnp.float32)
    h = prelu(h + pk_ref[4:5, :fc2_p], pk_ref[5:6, :fc2_p])    # (TN, FC2P) f32

    # Mask rows past the true instance count (ragged tail garbage / duplicated
    # clamped tiles) to -inf so they can never win the global max.
    row0 = (pl.program_id(0) * pl.num_programs(1) + t) * tn
    rows = row0 + lax.broadcasted_iota(jnp.int32, (tn, 1), 0)
    h = jnp.where(rows < n_ref[0], h, -jnp.inf)

    tile_max = jnp.max(h, axis=0, keepdims=True)               # (1, FC2P)

    @pl.when(t == 0)
    def _():
        o_ref[...] = jnp.full(o_ref.shape, -jnp.inf, dtype=o_ref.dtype)

    # Online global max over the instance axis (MaxPool over instances).
    o_ref[...] = jnp.maximum(o_ref[...], tile_max)


def nn_model3a_forward(x, params, *, tn=1024):
    """x: (1, N, in_features) float32 (PyTorch input convention).
    Returns (y_prob, y_prob) with y_prob of shape (1, fc_output)."""
    assert x.ndim == 3 and x.shape[0] == 1
    (a, w1, b1, w2, b2, w3, b3, wc, bc) = params

    x2d = x[0]                                   # squeeze(0): (N, in_features)
    n, c_in = x2d.shape
    assert n >= 1, "need at least one instance"
    hidden1 = w1.shape[1]                        # 512
    fc1, fc2 = w2.shape[1], w3.shape[1]
    out_dim = wc.shape[1]

    # --- lane-pad the narrow channel dims (200 -> 256, 100 -> 128) -----------
    fc1_p = _round_up(fc1, 128)
    fc2_p = _round_up(fc2, 128)
    w2p = jnp.pad(w2, ((0, 0), (0, fc1_p - fc1)))
    w3p = jnp.pad(w3, ((0, fc1_p - fc1), (0, fc2_p - fc2)))
    wcp = jnp.pad(wc, ((0, fc2_p - fc2), (0, 0)))        # (fc2_p, out_dim)

    # bf16 matmul operands for the weights only (x stays f32 and is cast
    # in-kernel); f32 accumulation happens inside the kernel.
    w1b = w1.astype(jnp.bfloat16)
    w2b = w2p.astype(jnp.bfloat16)
    w3b = w3p.astype(jnp.bfloat16)

    # --- pack the six (1,H) bias / PReLU-slope rows into one (8, 512) block --
    # Padded lanes carry zero bias and zero slope: with zero-padded weight
    # columns the pre-activation there is exactly 0, PReLU keeps it 0, and the
    # padded classifier rows are zero, so padding never changes the result.
    pk_w = max(hidden1, fc1_p, fc2_p)

    def _row(vec):
        vec = jnp.asarray(vec, jnp.float32).reshape(1, -1)
        return jnp.zeros((1, pk_w), jnp.float32).at[:, : vec.shape[1]].set(vec)

    pk = jnp.concatenate(
        [_row(b1), _row(jnp.full((1, hidden1), a[0], jnp.float32)),
         _row(b2), _row(jnp.full((1, fc1), a[1], jnp.float32)),
         _row(b3), _row(jnp.full((1, fc2), a[2], jnp.float32)),
         jnp.zeros((2, pk_w), jnp.float32)], axis=0)           # (8, pk_w)

    # --- tile the instance axis; no wrapper padding of x (masked in-kernel) --
    tn = _round_up(max(8, min(tn, _round_up(n, 8))), 8)
    n_tiles = _cdiv(n, tn)
    n_slices = 2 if n_tiles >= 2 else 1          # megacore partial-max split (v7x)
    tiles_per_slice = _cdiv(n_tiles, n_slices)
    last_blk = n_tiles - 1

    n_arr = jnp.array([n], jnp.int32)            # scalar-prefetch operand

    rows_total = n_slices * tiles_per_slice * tn
    flops = 2 * rows_total * (c_in * hidden1 + hidden1 * fc1_p + fc1_p * fc2_p)
    bytes_accessed = int(
        x2d.size * x2d.dtype.itemsize
        + (w1b.size + w2b.size + w3b.size) * 2
        + pk.size * 4 + n_slices * 8 * fc2_p * 4 + 4)

    def x_map(s, t, n_sm):
        # Clamp so a fully out-of-range tile re-reads the last real tile; its
        # rows are masked to -inf in the kernel, so correctness is unaffected.
        return (jnp.minimum(s * tiles_per_slice + t, last_blk), 0)

    def _build(single_buffer_consts):
        const_kw = ({"pipeline_mode": pl.Buffered(1)}
                    if single_buffer_consts else {})

        def const(shape):
            return pl.BlockSpec(shape, lambda s, t, n_sm: (0, 0), **const_kw)

        grid_spec = pltpu.PrefetchScalarGridSpec(
            num_scalar_prefetch=1,
            grid=(n_slices, tiles_per_slice),
            in_specs=[
                pl.BlockSpec((tn, c_in), x_map),     # streamed f32 x tile
                const((c_in, hidden1)),              # w1 (grid-invariant)
                const((hidden1, fc1_p)),             # w2
                const((fc1_p, fc2_p)),               # w3
                const((8, pk_w)),                    # packed biases / slopes
            ],
            out_specs=pl.BlockSpec((8, fc2_p), lambda s, t, n_sm: (s, 0)),
        )
        return pl.pallas_call(
            nn_model3a_kernel,
            out_shape=jax.ShapeDtypeStruct((n_slices * 8, fc2_p), jnp.float32),
            grid_spec=grid_spec,
            compiler_params=pltpu.CompilerParams(
                dimension_semantics=("parallel", "arbitrary"),
                vmem_limit_bytes=48 * 1024 * 1024),   # fits v7x 64 MiB budget
            cost_estimate=pl.CostEstimate(
                flops=flops, transcendentals=0, bytes_accessed=bytes_accessed),
        )

    args = (n_arr, x2d, w1b, w2b, w3b, pk)
    try:
        partials = _build(True)(*args)
    except Exception:
        # pipeline_mode=pl.Buffered(1) not supported by this JAX build for
        # pallas_call specs -> fall back to default double buffering.
        partials = _build(False)(*args)

    # Trivial epilogue: combine per-slice partial maxes, then the classifier
    # (Dropout identity + Linear(fc2, out)) as a multiply + lane reduction.
    # Padded fc2 lanes pool to 0 and have zero classifier weights.
    pooled = jnp.max(partials, axis=0, keepdims=True)                # (1, fc2_p)
    y = jnp.sum(pooled[:, :, None] * wcp[None, :, :], axis=1) + bc   # (1, out)
    return y, y


def init_params(key, in_features=2048, fc_1=200, fc_2=100, fc_output=1):
    """Deterministic synthetic parameters in matmul-friendly layout.
    Conv1d weight (out_ch, in_ch, 1) -> stored as (in_ch, out_ch);
    Linear weight (out, in) -> stored as (in, out)."""
    hidden1 = 512
    ks = jax.random.split(key, 8)

    def uinit(k, shape, fan_in):
        bound = 1.0 / jnp.sqrt(jnp.float32(fan_in))
        return jax.random.uniform(k, shape, jnp.float32, -bound, bound)

    w1 = uinit(ks[0], (in_features, hidden1), in_features)
    b1 = uinit(ks[1], (1, hidden1), in_features)
    w2 = uinit(ks[2], (hidden1, fc_1), hidden1)
    b2 = uinit(ks[3], (1, fc_1), hidden1)
    w3 = uinit(ks[4], (fc_1, fc_2), fc_1)
    b3 = uinit(ks[5], (1, fc_2), fc_1)
    wc = uinit(ks[6], (fc_2, fc_output), fc_2)
    bc = uinit(ks[7], (1, fc_output), fc_2)

    # PReLU slopes: PyTorch default init = 0.25 (one per PReLU module).
    a = jnp.array([0.25, 0.25, 0.25], dtype=jnp.float32)
    return (a, w1, b1, w2, b2, w3, b3, wc, bc)


def reference_forward(x, params):
    """Pure-JAX f32 reference for a sanity check."""
    (a, w1, b1, w2, b2, w3, b3, wc, bc) = params
    h = x[0] @ w1 + b1
    h = jnp.where(h > 0, h, a[0] * h)
    h = h @ w2 + b2
    h = jnp.where(h > 0, h, a[1] * h)
    h = h @ w3 + b3
    h = jnp.where(h > 0, h, a[2] * h)
    pooled = jnp.max(h, axis=0, keepdims=True)
    return pooled @ wc + bc


if __name__ == "__main__":
    key = jax.random.PRNGKey(0)
    k_param, k_x = jax.random.split(key)

    # Small shapes, chosen to exercise the tiled/masked path: with tn=16 we get
    # 2 slices x 2 tiles, one tile partially masked (rows 32..39 of 40) and one
    # fully out-of-range tile that is index-clamped and fully masked.
    in_features, fc_1, fc_2, fc_output = 256, 200, 100, 1
    N = 40

    params = init_params(k_param, in_features, fc_1, fc_2, fc_output)
    x = jax.random.normal(k_x, (1, N, in_features), jnp.float32)

    y_ref = reference_forward(x, params)

    y_prob, y_prob2 = nn_model3a_forward(x, params, tn=16)
    y_prob = jax.block_until_ready(y_prob)
    assert y_prob.shape == (1, fc_output)
    # bf16 matmul operands with f32 accumulation -> compare against the f32
    # reference with a slightly loose tolerance.
    max_err = float(jnp.max(jnp.abs(y_prob - y_ref)))
    assert jnp.allclose(y_prob, y_ref, atol=3e-2, rtol=3e-2), f"max err {max_err}"

    # Default (large-tile) configuration: a single tile covers all instances.
    y_big, _ = nn_model3a_forward(x, params)
    y_big = jax.block_until_ready(y_big)
    max_err2 = float(jnp.max(jnp.abs(y_big - y_ref)))
    assert jnp.allclose(y_big, y_ref, atol=3e-2, rtol=3e-2), f"max err {max_err2}"

    print("KERNEL_OK")
</pallas_src>

<mosaic_0001>
module attributes {stable_mosaic.version = 11 : i64} {
  func.func @nn_model3a_kernel(%arg0: i32, %arg1: i32, %arg2: memref<1xi32, #tpu.memory_space<smem>>, %arg3: memref<16x256xf32, #tpu.memory_space<vmem>>, %arg4: memref<256x512xbf16, #tpu.memory_space<vmem>>, %arg5: memref<512x256xbf16, #tpu.memory_space<vmem>>, %arg6: memref<256x128xbf16, #tpu.memory_space<vmem>>, %arg7: memref<8x512xf32, #tpu.memory_space<vmem>>, %arg8: memref<8x128xf32, #tpu.memory_space<vmem>>) attributes {dimension_semantics = [#tpu.dimension_semantics<parallel>, #tpu.dimension_semantics<arbitrary>], iteration_bounds = array<i64: 2, 2>, scalar_prefetch = 1 : i64, scratch_operands = 0 : i64, tpu.core_type = #tpu.core_type<tc>, window_params = [{transform_indices = @transform_0, window_bounds = array<i64: 16, 256>}, {pipeline_mode = #tpu.pipeline_mode<synchronous>, transform_indices = @transform_1, window_bounds = array<i64: 256, 512>}, {pipeline_mode = #tpu.pipeline_mode<synchronous>, transform_indices = @transform_2, window_bounds = array<i64: 512, 256>}, {pipeline_mode = #tpu.pipeline_mode<synchronous>, transform_indices = @transform_3, window_bounds = array<i64: 256, 128>}, {pipeline_mode = #tpu.pipeline_mode<synchronous>, transform_indices = @transform_4, window_bounds = array<i64: 8, 512>}, {transform_indices = @transform_5, window_bounds = array<i64: 8, 128>}]} {
    %c0 = arith.constant 0 : index
    %c0_0 = arith.constant 0 : index
    %0 = vector.load %arg3[%c0, %c0_0] : memref<16x256xf32, #tpu.memory_space<vmem>>, vector<16x256xf32>
    %1 = arith.truncf %0 : vector<16x256xf32> to vector<16x256xbf16>
    %c0_1 = arith.constant 0 : index
    %c0_2 = arith.constant 0 : index
    %2 = vector.load %arg4[%c0_1, %c0_2] : memref<256x512xbf16, #tpu.memory_space<vmem>>, vector<256x512xbf16>
    %cst = arith.constant dense<0.000000e+00> : vector<16x512xf32>
    %3 = tpu.matmul %1, %2, %cst {dimension_numbers = #tpu.dot_dimension_numbers<[1], [0], [0], [1], [0, 0, 1, 1], [], []>} : vector<16x256xbf16>, vector<256x512xbf16>, vector<16x512xf32> -> vector<16x512xf32>
    %c0_3 = arith.constant 0 : index
    %c0_4 = arith.constant 0 : index
    %4 = vector.load %arg7[%c0_3, %c0_4] : memref<8x512xf32, #tpu.memory_space<vmem>>, vector<1x512xf32>
    %5 = vector.broadcast %4 : vector<1x512xf32> to vector<16x512xf32>
    %6 = arith.addf %3, %5 : vector<16x512xf32>
    %c1 = arith.constant 1 : index
    %c0_5 = arith.constant 0 : index
    %7 = vector.load %arg7[%c1, %c0_5] : memref<8x512xf32, #tpu.memory_space<vmem>>, vector<1x512xf32>
    %cst_6 = arith.constant 0.000000e+00 : f32
    %8 = vector.broadcast %cst_6 : f32 to vector<16x512xf32>
    %9 = arith.cmpf ogt, %6, %8 : vector<16x512xf32>
    %10 = vector.broadcast %7 : vector<1x512xf32> to vector<16x512xf32>
    %11 = arith.mulf %10, %6 : vector<16x512xf32>
    %12 = arith.select %9, %6, %11 : vector<16x512xi1>, vector<16x512xf32>
    %13 = arith.truncf %12 : vector<16x512xf32> to vector<16x512xbf16>
    %c0_7 = arith.constant 0 : index
    %c0_8 = arith.constant 0 : index
    %14 = vector.load %arg5[%c0_7, %c0_8] : memref<512x256xbf16, #tpu.memory_space<vmem>>, vector<512x256xbf16>
    %cst_9 = arith.constant dense<0.000000e+00> : vector<16x256xf32>
    %15 = tpu.matmul %13, %14, %cst_9 {dimension_numbers = #tpu.dot_dimension_numbers<[1], [0], [0], [1], [0, 0, 1, 1], [], []>} : vector<16x512xbf16>, vector<512x256xbf16>, vector<16x256xf32> -> vector<16x256xf32>
    %c2 = arith.constant 2 : index
    %c0_10 = arith.constant 0 : index
    %16 = vector.load %arg7[%c2, %c0_10] : memref<8x512xf32, #tpu.memory_space<vmem>>, vector<1x256xf32>
    %17 = vector.broadcast %16 : vector<1x256xf32> to vector<16x256xf32>
    %18 = arith.addf %15, %17 : vector<16x256xf32>
    %c3 = arith.constant 3 : index
    %c0_11 = arith.constant 0 : index
    %19 = vector.load %arg7[%c3, %c0_11] : memref<8x512xf32, #tpu.memory_space<vmem>>, vector<1x256xf32>
    %cst_12 = arith.constant 0.000000e+00 : f32
    %20 = vector.broadcast %cst_12 : f32 to vector<16x256xf32>
    %21 = arith.cmpf ogt, %18, %20 : vector<16x256xf32>
    %22 = vector.broadcast %19 : vector<1x256xf32> to vector<16x256xf32>
    %23 = arith.mulf %22, %18 : vector<16x256xf32>
    %24 = arith.select %21, %18, %23 : vector<16x256xi1>, vector<16x256xf32>
    %25 = arith.truncf %24 : vector<16x256xf32> to vector<16x256xbf16>
    %c0_13 = arith.constant 0 : index
    %c0_14 = arith.constant 0 : index
    %26 = vector.load %arg6[%c0_13, %c0_14] : memref<256x128xbf16, #tpu.memory_space<vmem>>, vector<256x128xbf16>
    %cst_15 = arith.constant dense<0.000000e+00> : vector<16x128xf32>
    %27 = tpu.matmul %25, %26, %cst_15 {dimension_numbers = #tpu.dot_dimension_numbers<[1], [0], [0], [1], [0, 0, 1, 1], [], []>} : vector<16x256xbf16>, vector<256x128xbf16>, vector<16x128xf32> -> vector<16x128xf32>
    %c4 = arith.constant 4 : index
    %c0_16 = arith.constant 0 : index
    %28 = vector.load %arg7[%c4, %c0_16] : memref<8x512xf32, #tpu.memory_space<vmem>>, vector<1x128xf32>
    %29 = vector.broadcast %28 : vector<1x128xf32> to vector<16x128xf32>
    %30 = arith.addf %27, %29 : vector<16x128xf32>
    %c5 = arith.constant 5 : index
    %c0_17 = arith.constant 0 : index
    %31 = vector.load %arg7[%c5, %c0_17] : memref<8x512xf32, #tpu.memory_space<vmem>>, vector<1x128xf32>
    %cst_18 = arith.constant 0.000000e+00 : f32
    %32 = vector.broadcast %cst_18 : f32 to vector<16x128xf32>
    %33 = arith.cmpf ogt, %30, %32 : vector<16x128xf32>
    %34 = vector.broadcast %31 : vector<1x128xf32> to vector<16x128xf32>
    %35 = arith.mulf %34, %30 : vector<16x128xf32>
    %36 = arith.select %33, %30, %35 : vector<16x128xi1>, vector<16x128xf32>
    %c2_i32 = arith.constant 2 : i32
    %37 = arith.muli %arg0, %c2_i32 : i32
    %38 = arith.addi %37, %arg1 : i32
    %c16_i32 = arith.constant 16 : i32
    %39 = arith.muli %38, %c16_i32 : i32
    %40 = tpu.iota {dimensions = array<i32: 0>} : vector<16x1xi32>
    %41 = vector.broadcast %39 : i32 to vector<16x1xi32>
    %42 = arith.addi %41, %40 : vector<16x1xi32>
    %c0_19 = arith.constant 0 : index
    %43 = memref.load %arg2[%c0_19] : memref<1xi32, #tpu.memory_space<smem>>
    %44 = vector.broadcast %43 : i32 to vector<16x1xi32>
    %45 = arith.cmpi slt, %42, %44 : vector<16x1xi32>
    %cst_20 = arith.constant 0xFF800000 : f32
    %46 = vector.shape_cast %45 : vector<16x1xi1> to vector<16x1xi1>
    %47 = vector.broadcast %46 : vector<16x1xi1> to vector<16x128xi1>
    %48 = vector.broadcast %cst_20 : f32 to vector<16x128xf32>
    %49 = arith.select %47, %36, %48 : vector<16x128xi1>, vector<16x128xf32>
    %cst_21 = arith.constant dense<0xFF800000> : vector<128xf32>
    %50 = vector.multi_reduction <maximumf>, %49, %cst_21 [0] : vector<16x128xf32> to vector<128xf32>
    %51 = vector.shape_cast %50 : vector<128xf32> to vector<1x128xf32>
    %c0_i32 = arith.constant 0 : i32
    %52 = arith.cmpi eq, %arg1, %c0_i32 : i32
    %53 = arith.extui %52 : i1 to i32
    %c0_i32_22 = arith.constant 0 : i32
    %54 = arith.cmpi ne, %53, %c0_i32_22 : i32
    scf.if %54 {
      %cst_27 = arith.constant 0xFF800000 : f32
      %59 = vector.broadcast %cst_27 : f32 to vector<8x128xf32>
      %c0_28 = arith.constant 0 : index
      %c0_29 = arith.constant 0 : index
      %60 = vector.load %arg8[%c0_28, %c0_29] : memref<8x128xf32, #tpu.memory_space<vmem>>, vector<8x128xf32>
      tpu.vector_store %arg8[%c0_28, %c0_29], %59 {strides = array<i32>} : memref<8x128xf32, #tpu.memory_space<vmem>>, vector<8x128xf32>,
    } else {
    }
    %c0_23 = arith.constant 0 : index
    %c0_24 = arith.constant 0 : index
    %55 = vector.load %arg8[%c0_23, %c0_24] : memref<8x128xf32, #tpu.memory_space<vmem>>, vector<8x128xf32>
    %56 = vector.broadcast %51 : vector<1x128xf32> to vector<8x128xf32>
    %57 = arith.maximumf %55, %56 : vector<8x128xf32>
    %c0_25 = arith.constant 0 : index
    %c0_26 = arith.constant 0 : index
    %58 = vector.load %arg8[%c0_25, %c0_26] : memref<8x128xf32, #tpu.memory_space<vmem>>, vector<8x128xf32>
    tpu.vector_store %arg8[%c0_25, %c0_26], %57 {strides = array<i32>} : memref<8x128xf32, #tpu.memory_space<vmem>>, vector<8x128xf32>,
    return
  }
  func.func @transform_0(%arg0: i32, %arg1: i32, %arg2: memref<1xi32, #tpu.memory_space<smem>>) -> (i32, i32) {
    %c2_i32 = arith.constant 2 : i32
    %0 = arith.muli %arg0, %c2_i32 : i32
    %1 = arith.addi %0, %arg1 : i32
    %c2_i32_0 = arith.constant 2 : i32
    %2 = arith.minsi %1, %c2_i32_0 : i32
    %c0_i32 = arith.constant 0 : i32
    %c0_i32_1 = arith.constant 0 : i32
    return %2, %c0_i32 : i32, i32
  }
  func.func @transform_1(%arg0: i32, %arg1: i32, %arg2: memref<1xi32, #tpu.memory_space<smem>>) -> (i32, i32) {
    %c0_i32 = arith.constant 0 : i32
    %c0_i32_0 = arith.constant 0 : i32
    %c0_i32_1 = arith.constant 0 : i32
    return %c0_i32, %c0_i32_0 : i32, i32
  }
  func.func @transform_2(%arg0: i32, %arg1: i32, %arg2: memref<1xi32, #tpu.memory_space<smem>>) -> (i32, i32) {
    %c0_i32 = arith.constant 0 : i32
    %c0_i32_0 = arith.constant 0 : i32
    %c0_i32_1 = arith.constant 0 : i32
    return %c0_i32, %c0_i32_0 : i32, i32
  }
  func.func @transform_3(%arg0: i32, %arg1: i32, %arg2: memref<1xi32, #tpu.memory_space<smem>>) -> (i32, i32) {
    %c0_i32 = arith.constant 0 : i32
    %c0_i32_0 = arith.constant 0 : i32
    %c0_i32_1 = arith.constant 0 : i32
    return %c0_i32, %c0_i32_0 : i32, i32
  }
  func.func @transform_4(%arg0: i32, %arg1: i32, %arg2: memref<1xi32, #tpu.memory_space<smem>>) -> (i32, i32) {
    %c0_i32 = arith.constant 0 : i32
    %c0_i32_0 = arith.constant 0 : i32
    %c0_i32_1 = arith.constant 0 : i32
    return %c0_i32, %c0_i32_0 : i32, i32
  }
  func.func @transform_5(%arg0: i32, %arg1: i32, %arg2: memref<1xi32, #tpu.memory_space<smem>>) -> (i32, i32) {
    %c0_i32 = arith.constant 0 : i32
    %c0_i32_0 = arith.constant 0 : i32
    return %arg0, %c0_i32 : i32, i32
  }
}

module attributes {stable_mosaic.version = 11 : i64} {
  func.func @nn_model3a_kernel(%arg0: i32, %arg1: i32, %arg2: memref<1xi32, #tpu.memory_space<smem>>, %arg3: memref<16x256xf32, #tpu.memory_space<vmem>>, %arg4: memref<256x512xbf16, #tpu.memory_space<vmem>>, %arg5: memref<512x256xbf16, #tpu.memory_space<vmem>>, %arg6: memref<256x128xbf16, #tpu.memory_space<vmem>>, %arg7: memref<8x512xf32, #tpu.memory_space<vmem>>, %arg8: memref<8x128xf32, #tpu.memory_space<vmem>>) attributes {dimension_semantics = [#tpu.dimension_semantics<parallel>, #tpu.dimension_semantics<arbitrary>], iteration_bounds = array<i64: 2, 2>, scalar_prefetch = 1 : i64, scratch_operands = 0 : i64, tpu.core_type = #tpu.core_type<tc>, window_params = [{transform_indices = @transform_0, window_bounds = array<i64: 16, 256>}, {pipeline_mode = #tpu.pipeline_mode<synchronous>, transform_indices = @transform_1, window_bounds = array<i64: 256, 512>}, {pipeline_mode = #tpu.pipeline_mode<synchronous>, transform_indices = @transform_2, window_bounds = array<i64: 512, 256>}, {pipeline_mode = #tpu.pipeline_mode<synchronous>, transform_indices = @transform_3, window_bounds = array<i64: 256, 128>}, {pipeline_mode = #tpu.pipeline_mode<synchronous>, transform_indices = @transform_4, window_bounds = array<i64: 8, 512>}, {transform_indices = @transform_5, window_bounds = array<i64: 8, 128>}]} {
    %c0 = arith.constant 0 : index
    %c0_0 = arith.constant 0 : index
    %0 = vector.load %arg3[%c0, %c0_0] : memref<16x256xf32, #tpu.memory_space<vmem>>, vector<16x256xf32>
    %1 = arith.truncf %0 : vector<16x256xf32> to vector<16x256xbf16>
    %c0_1 = arith.constant 0 : index
    %c0_2 = arith.constant 0 : index
    %2 = vector.load %arg4[%c0_1, %c0_2] : memref<256x512xbf16, #tpu.memory_space<vmem>>, vector<256x512xbf16>
    %cst = arith.constant dense<0.000000e+00> : vector<16x512xf32>
    %3 = tpu.matmul %1, %2, %cst {dimension_numbers = #tpu.dot_dimension_numbers<[1], [0], [0], [1], [0, 0, 1, 1], [], []>} : vector<16x256xbf16>, vector<256x512xbf16>, vector<16x512xf32> -> vector<16x512xf32>
    %c0_3 = arith.constant 0 : index
    %c0_4 = arith.constant 0 : index
    %4 = vector.load %arg7[%c0_3, %c0_4] : memref<8x512xf32, #tpu.memory_space<vmem>>, vector<1x512xf32>
    %5 = vector.broadcast %4 : vector<1x512xf32> to vector<16x512xf32>
    %6 = arith.addf %3, %5 : vector<16x512xf32>
    %c1 = arith.constant 1 : index
    %c0_5 = arith.constant 0 : index
    %7 = vector.load %arg7[%c1, %c0_5] : memref<8x512xf32, #tpu.memory_space<vmem>>, vector<1x512xf32>
    %cst_6 = arith.constant 0.000000e+00 : f32
    %8 = vector.broadcast %cst_6 : f32 to vector<16x512xf32>
    %9 = arith.cmpf ogt, %6, %8 : vector<16x512xf32>
    %10 = vector.broadcast %7 : vector<1x512xf32> to vector<16x512xf32>
    %11 = arith.mulf %10, %6 : vector<16x512xf32>
    %12 = arith.select %9, %6, %11 : vector<16x512xi1>, vector<16x512xf32>
    %13 = arith.truncf %12 : vector<16x512xf32> to vector<16x512xbf16>
    %c0_7 = arith.constant 0 : index
    %c0_8 = arith.constant 0 : index
    %14 = vector.load %arg5[%c0_7, %c0_8] : memref<512x256xbf16, #tpu.memory_space<vmem>>, vector<512x256xbf16>
    %cst_9 = arith.constant dense<0.000000e+00> : vector<16x256xf32>
    %15 = tpu.matmul %13, %14, %cst_9 {dimension_numbers = #tpu.dot_dimension_numbers<[1], [0], [0], [1], [0, 0, 1, 1], [], []>} : vector<16x512xbf16>, vector<512x256xbf16>, vector<16x256xf32> -> vector<16x256xf32>
    %c2 = arith.constant 2 : index
    %c0_10 = arith.constant 0 : index
    %16 = vector.load %arg7[%c2, %c0_10] : memref<8x512xf32, #tpu.memory_space<vmem>>, vector<1x256xf32>
    %17 = vector.broadcast %16 : vector<1x256xf32> to vector<16x256xf32>
    %18 = arith.addf %15, %17 : vector<16x256xf32>
    %c3 = arith.constant 3 : index
    %c0_11 = arith.constant 0 : index
    %19 = vector.load %arg7[%c3, %c0_11] : memref<8x512xf32, #tpu.memory_space<vmem>>, vector<1x256xf32>
    %cst_12 = arith.constant 0.000000e+00 : f32
    %20 = vector.broadcast %cst_12 : f32 to vector<16x256xf32>
    %21 = arith.cmpf ogt, %18, %20 : vector<16x256xf32>
    %22 = vector.broadcast %19 : vector<1x256xf32> to vector<16x256xf32>
    %23 = arith.mulf %22, %18 : vector<16x256xf32>
    %24 = arith.select %21, %18, %23 : vector<16x256xi1>, vector<16x256xf32>
    %25 = arith.truncf %24 : vector<16x256xf32> to vector<16x256xbf16>
    %c0_13 = arith.constant 0 : index
    %c0_14 = arith.constant 0 : index
    %26 = vector.load %arg6[%c0_13, %c0_14] : memref<256x128xbf16, #tpu.memory_space<vmem>>, vector<256x128xbf16>
    %cst_15 = arith.constant dense<0.000000e+00> : vector<16x128xf32>
    %27 = tpu.matmul %25, %26, %cst_15 {dimension_numbers = #tpu.dot_dimension_numbers<[1], [0], [0], [1], [0, 0, 1, 1], [], []>} : vector<16x256xbf16>, vector<256x128xbf16>, vector<16x128xf32> -> vector<16x128xf32>
    %c4 = arith.constant 4 : index
    %c0_16 = arith.constant 0 : index
    %28 = vector.load %arg7[%c4, %c0_16] : memref<8x512xf32, #tpu.memory_space<vmem>>, vector<1x128xf32>
    %29 = vector.broadcast %28 : vector<1x128xf32> to vector<16x128xf32>
    %30 = arith.addf %27, %29 : vector<16x128xf32>
    %c5 = arith.constant 5 : index
    %c0_17 = arith.constant 0 : index
    %31 = vector.load %arg7[%c5, %c0_17] : memref<8x512xf32, #tpu.memory_space<vmem>>, vector<1x128xf32>
    %cst_18 = arith.constant 0.000000e+00 : f32
    %32 = vector.broadcast %cst_18 : f32 to vector<16x128xf32>
    %33 = arith.cmpf ogt, %30, %32 : vector<16x128xf32>
    %34 = vector.broadcast %31 : vector<1x128xf32> to vector<16x128xf32>
    %35 = arith.mulf %34, %30 : vector<16x128xf32>
    %36 = arith.select %33, %30, %35 : vector<16x128xi1>, vector<16x128xf32>
    %c2_i32 = arith.constant 2 : i32
    %37 = arith.muli %arg0, %c2_i32 : i32
    %38 = arith.addi %37, %arg1 : i32
    %c16_i32 = arith.constant 16 : i32
    %39 = arith.muli %38, %c16_i32 : i32
    %40 = tpu.iota {dimensions = array<i32: 0>} : vector<16x1xi32>
    %41 = vector.broadcast %39 : i32 to vector<16x1xi32>
    %42 = arith.addi %41, %40 : vector<16x1xi32>
    %c0_19 = arith.constant 0 : index
    %43 = memref.load %arg2[%c0_19] : memref<1xi32, #tpu.memory_space<smem>>
    %44 = vector.broadcast %43 : i32 to vector<16x1xi32>
    %45 = arith.cmpi slt, %42, %44 : vector<16x1xi32>
    %cst_20 = arith.constant 0xFF800000 : f32
    %46 = vector.shape_cast %45 : vector<16x1xi1> to vector<16x1xi1>
    %47 = vector.broadcast %46 : vector<16x1xi1> to vector<16x128xi1>
    %48 = vector.broadcast %cst_20 : f32 to vector<16x128xf32>
    %49 = arith.select %47, %36, %48 : vector<16x128xi1>, vector<16x128xf32>
    %cst_21 = arith.constant dense<0xFF800000> : vector<128xf32>
    %50 = vector.multi_reduction <maximumf>, %49, %cst_21 [0] : vector<16x128xf32> to vector<128xf32>
    %51 = vector.shape_cast %50 : vector<128xf32> to vector<1x128xf32>
    %c0_i32 = arith.constant 0 : i32
    %52 = arith.cmpi eq, %arg1, %c0_i32 : i32
    %53 = arith.extui %52 : i1 to i32
    %c0_i32_22 = arith.constant 0 : i32
    %54 = arith.cmpi ne, %53, %c0_i32_22 : i32
    scf.if %54 {
      %cst_27 = arith.constant 0xFF800000 : f32
      %59 = vector.broadcast %cst_27 : f32 to vector<8x128xf32>
      %c0_28 = arith.constant 0 : index
      %c0_29 = arith.constant 0 : index
      %60 = vector.load %arg8[%c0_28, %c0_29] : memref<8x128xf32, #tpu.memory_space<vmem>>, vector<8x128xf32>
      tpu.vector_store %arg8[%c0_28, %c0_29], %59 {strides = array<i32>} : memref<8x128xf32, #tpu.memory_space<vmem>>, vector<8x128xf32>,
    } else {
    }
    %c0_23 = arith.constant 0 : index
    %c0_24 = arith.constant 0 : index
    %55 = vector.load %arg8[%c0_23, %c0_24] : memref<8x128xf32, #tpu.memory_space<vmem>>, vector<8x128xf32>
    %56 = vector.broadcast %51 : vector<1x128xf32> to vector<8x128xf32>
    %57 = arith.maximumf %55, %56 : vector<8x128xf32>
    %c0_25 = arith.constant 0 : index
    %c0_26 = arith.constant 0 : index
    %58 = vector.load %arg8[%c0_25, %c0_26] : memref<8x128xf32, #tpu.memory_space<vmem>>, vector<8x128xf32>
    tpu.vector_store %arg8[%c0_25, %c0_26], %57 {strides = array<i32>} : memref<8x128xf32, #tpu.memory_space<vmem>>, vector<8x128xf32>,
    return
  }
  func.func @transform_0(%arg0: i32, %arg1: i32, %arg2: memref<1xi32, #tpu.memory_space<smem>>) -> (i32, i32) {
    %c2_i32 = arith.constant 2 : i32
    %0 = arith.muli %arg0, %c2_i32 : i32
    %1 = arith.addi %0, %arg1 : i32
    %c2_i32_0 = arith.constant 2 : i32
    %2 = arith.minsi %1, %c2_i32_0 : i32
    %c0_i32 = arith.constant 0 : i32
    %c0_i32_1 = arith.constant 0 : i32
    return %2, %c0_i32 : i32, i32
  }
  func.func @transform_1(%arg0: i32, %arg1: i32, %arg2: memref<1xi32, #tpu.memory_space<smem>>) -> (i32, i32) {
    %c0_i32 = arith.constant 0 : i32
    %c0_i32_0 = arith.constant 0 : i32
    %c0_i32_1 = arith.constant 0 : i32
    return %c0_i32, %c0_i32_0 : i32, i32
  }
  func.func @transform_2(%arg0: i32, %arg1: i32, %arg2: memref<1xi32, #tpu.memory_space<smem>>) -> (i32, i32) {
    %c0_i32 = arith.constant 0 : i32
    %c0_i32_0 = arith.constant 0 : i32
    %c0_i32_1 = arith.constant 0 : i32
    return %c0_i32, %c0_i32_0 : i32, i32
  }
  func.func @transform_3(%arg0: i32, %arg1: i32, %arg2: memref<1xi32, #tpu.memory_space<smem>>) -> (i32, i32) {
    %c0_i32 = arith.constant 0 : i32
    %c0_i32_0 = arith.constant 0 : i32
    %c0_i32_1 = arith.constant 0 : i32
    return %c0_i32, %c0_i32_0 : i32, i32
  }
  func.func @transform_4(%arg0: i32, %arg1: i32, %arg2: memref<1xi32, #tpu.memory_space<smem>>) -> (i32, i32) {
    %c0_i32 = arith.constant 0 : i32
    %c0_i32_0 = arith.constant 0 : i32
    %c0_i32_1 = arith.constant 0 : i32
    return %c0_i32, %c0_i32_0 : i32, i32
  }
  func.func @transform_5(%arg0: i32, %arg1: i32, %arg2: memref<1xi32, #tpu.memory_space<smem>>) -> (i32, i32) {
    %c0_i32 = arith.constant 0 : i32
    %c0_i32_0 = arith.constant 0 : i32
    return %arg0, %c0_i32 : i32, i32
  }
}

</mosaic_0001>

<bundles_post_ra>
// kernel: tpu_custom_call.1
= control target key start
LH: loop header
LB: loop body
LE: loop exit
PB: predicated region body
PF: predicated region fallthrough
CT: control target
= control target key end

     0   :  { %s3312_s0 = inlined_call_operand.<no memory space> [shape: s32[1], index: 0, kind: input, shape index: {}]   ;;  %s3313_s1 = inlined_call_operand.hbm [shape: f32[40,256], index: 1, kind: input, shape index: {}]   ;;  %s3314_s2 = inlined_call_operand.hbm [shape: bf16[256,512], index: 2, kind: input, shape index: {}]   ;;  %s3315_s3 = inlined_call_operand.hbm [shape: bf16[512,256], index: 3, kind: input, shape index: {}]   ;;  %s3316_s4 = inlined_call_operand.hbm [shape: bf16[256,128], index: 4, kind: input, shape index: {}]   ;;  %s3317_s5 = inlined_call_operand.hbm [shape: f32[8,512], index: 5, kind: input, shape index: {}]   ;;  %s3318_s6 = inlined_call_operand.hbm [shape: f32[16,128], index: 6, kind: output, shape index: {}]  }
   0x1   :  { %3329 = sst [smem:[#allocation28_spill]] %s3314_s2 }
   0x2   :  { %3330 = sst [smem:[#allocation29_spill]] %s3316_s4 }
   0x3   :  { %3331 = sst [smem:[#allocation30_spill]] %s3318_s6 }
   0x4   :  { %11 = sst [smem:[#allocation3]] %s3312_s0 }
   0x5   :  { %12 = vsyncpa [#allocation5], 0 }
   0x6   :  { %14 = vsyncpa [#allocation5 + $0x1], 0 }
   0x7   :  { %15 = vsyncpa [#allocation8], 0 }
   0x8   :  { %16 = vsyncpa [#allocation11], 0 }
   0x9   :  { %17 = vsyncpa [#allocation6], 0 }
   0xa   :  { %19 = vsyncpa [#allocation6 + $0x1], 0  ;;  %s3008_s23 = smov 0   ;;  %s3010_s24 = smov 0  }
   0xb   :  { %s3012_s25 = smov 0   ;;  %s3014_s26 = smov 0  }
   0xc   :  { %s3016_s27 = smov 0   ;;  %s3018_s28 = smov 0  }
   0xd   :  { %s3020_s29 = smov 0   ;;  %s3022_s0 = smov 0  }
   0xe   :  { %s3024_s30 = smov 0   ;;  %s3026_s7 = smov 0  }
   0xf   :  { %s3028_s8 = smov 0  }
  0x10 LB: > { %3332 = sst [smem:[#allocation18_spill]] %s2914_s23  ;;  %s1762_s9 = sadd.s32 4294967295, %s2954_s8   ;;  %s2954_s8 = sphi %s3028_s8, %s25_s8   ;;  %s2950_s7 = sphi %s3026_s7, %s3362_s7   ;;  %s2946_s30 = sphi %s3024_s30, %s3361_s30   ;;  %s2942_s0 = sphi %s3022_s0, %s3360_s0   ;;  %s2938_s29 = sphi %s3020_s29, %s3359_s29   ;;  %s2934_s28 = sphi %s3018_s28, %s3367_s28   ;;  %s2930_s27 = sphi %s3016_s27, %s3366_s27   ;;  %s2926_s26 = sphi %s3014_s26, %s3365_s26   ;;  %s2922_s25 = sphi %s3012_s25, %s3357_s25   ;;  %s2918_s24 = sphi %s3010_s24, %s3364_s24   ;;  %s2914_s23 = sphi %s3008_s23, %s3363_s23  }
  0x11   : > { %3333 = sst [smem:[#allocation19_spill]] %s2922_s25  ;;  %s1763_s10 = sadd.s32 4294967294, %s2954_s8  }
  0x12   : > { %3334 = sst [smem:[#allocation20_spill]] %s2946_s30  ;;  %s34_s11 = sadd.s32 1, %s2946_s30 }
  0x13   : > { %3335 = sst [smem:[#allocation21_spill]] %s2950_s7  ;;  %s37_s12 = sadd.s32 1, %s2950_s7 }
  0x14   : > { %p35_p0 = scmp.ge.s32.totalorder %s34_s11, 2  ;;  %s1764_s13 = sshll.u32 %s2950_s7, 1 }
  0x15   : > { %s42_s14 = sadd.s32 %s2946_s30, %s1764_s13  ;;  %s52_s15 = sadd.s32 1, %s2934_s28 }
  0x16   : > { %s3369_s11 = smov (%p35_p0, %s34_s11), 0  ;;  %s3371_s12 = smov (!%p35_p0, %s37_s12), %s2950_s7 }
  0x17   : > { %3336 = sst [smem:[#allocation22_spill]] %s3369_s11  ;;  %p43_p1 = scmp.lt.s32.totalorder %s42_s14, 2 }
  0x18   : > { %p59_p2 = scmp.ne.s32.totalorder %s2934_s28, %s2930_s27  ;;  %p39_p3 = scmp.ge.s32.totalorder %s3371_s12, 2 }
  0x19   : > { %p60_p4 = scmp.eq.s32.totalorder %s2954_s8, 0  ;;  %s3373_s14 = smov (!%p43_p1, %s42_s14), 2 }
  0x1a   : > { %s3375_s12 = smov (%p39_p3, %s3371_s12), 0  ;;  %p65_p6 = scmp.ne.s32.totalorder %s2930_s27, %s2926_s26 }
  0x1b   : > { %3337 = sst [smem:[#allocation23_spill]] %s3375_s12  ;;  %p3080_p5 = por %p60_p4, %p59_p2 }
  0x1c   : > { %s1765_s17 = sshll.u32 %s3375_s12, 1  ;;  %p3089_p7 = scmp.eq.s32.totalorder %s1762_s9, 0 }
  0x1d   : > { %s46_s19 = sadd.s32 %s1765_s17, %s3369_s11  ;;  %s159_s20 = ssub.s32 %s2950_s7, %s3375_s12 }
  0x1e   : > { %p47_p8 = scmp.lt.s32.totalorder %s46_s19, 2  ;;  %p3098_p9 = por %p3089_p7, %p65_p6 }
  0x1f   : > { %p160_p10 = scmp.eq.s32.totalorder %s159_s20, 0  ;;  %s162_s22 = sadd.s32 1, %s2922_s25 }
  0x20   : > { %s3377_s19 = smov (!%p47_p8, %s46_s19), 2  ;;  %p172_p11 = scmp.ne.s32.totalorder %s2922_s25, %s2918_s24 }
  0x21   : > { %s3104_s26 = scalar_select %p160_p10, %s2922_s25, %s162_s22  }
  0x22   : > { %s49_s13 = ssub.s32 %s3373_s14, %s3377_s19  ;;  %p173_p13 = scmp.eq.s32.totalorder %s1762_s9, 3 }
  0x23   : > { %3341 = sst [smem:[#allocation24_spill]] %s3104_s26  ;;  %p50_p12 = scmp.eq.s32.totalorder %s49_s13, 0 }
  0x24   : > { %p178_p0 = scmp.ne.s32.totalorder %s2918_s24, %s2914_s23  ;;  %p179_p1 = scmp.eq.s32.totalorder %s1763_s10, 3 }
  0x25   : > { %s3116_s17 = scalar_select %p50_p12, %s2934_s28, %s52_s15  }
  0x26   : > { %p3118_p2 = por %p173_p13, %p172_p11  ;;  %p3122_p3 = por %p179_p1, %p178_p0 }
  0x27   : > { %3342 = sst [smem:[#allocation25_spill]] %s3116_s17  ;;  %p1766_p4 = scmp.ge.s32.totalorder %s2954_s8, 1 }
  0x28   : > { %s3343_s12 = scalar_select %p3118_p2, 1, 0 }
  0x29   : > { %s3345_s20 = scalar_select %p3122_p3, 1, 0 }
  0x2a   : > { %3344 = sst [smem:[#allocation26_spill]] %s3343_s12  ;;  %p186_p6 = scmp.lt.s32.totalorder %s2954_s8, 5 }
  0x2b   : > { %3346 = sst [smem:[#allocation27_spill]] %s3345_s20  ;;  %s2956_s10 = smov [#allocation7]  }
  0x2c   : > { %s3347_s2 = sld [smem:[#allocation28_spill]]  ;;  %p3131_p8 = pnand %p1766_p4, %p186_p6 }
  0x2d   : > { %s199_s15 = sshll.u32 %s2956_s10, 4  ;;  %s3350_s4 = sld [smem:[#allocation29_spill]]  ;;  %s200_s15 = int_to_ptr.vmem [resolvable:$true] %s199_s15 }
  0x2e   : > { %p2538_p10 = pneg %p3131_p8  ;;  %s2957_s22 = smov [#allocation10]  }
  0x2f   : > { %s2958_s17 = smov 256   ;;  %s2959_s26 = smov 16  }
  0x30   : > { %p3139_p11 = pnand %p2538_p10, %p3089_p7  ;;  %s211_s20 = sshll.u32 %s3315_s3, 4  ;;  %s212_s20 = int_to_ptr.hbm [resolvable:$true] %s211_s20 }
  0x31   : > { %s2960_s23 = smov 64   ;;  %s2961_s6 = smov 4  }
  0x32   : > { %s197_s13 = sshll.u32 %s3347_s2, 4  ;;  %s227_s2 = sshll.u32 %s2957_s22, 4  ;;  %s198_s13 = int_to_ptr.hbm [resolvable:$true] %s197_s13  ;;  %s228_s2 = int_to_ptr.vmem [resolvable:$true] %s227_s2 }
  0x33   : > { %s225_s19 = sshll.u32 %s3350_s4, 4  ;;  %s2962_s30 = smov [#allocation9]   ;;  %s226_s19 = int_to_ptr.hbm [resolvable:$true] %s225_s19 }
  0x34   : > { %2541 = dma.hbm_to_vmem [thread:$0]  (!%p3139_p11), %s198_s13, 8192, %s200_s15, [#allocation8], %s2958_s17, %s2958_s17, %s2959_s26  }
  0x35   : > { %2547 = dma.hbm_to_vmem [thread:$0]  (!%p3139_p11), %s226_s19, 2048, %s228_s2, [#allocation11], %s2960_s23, %s2960_s23, %s2961_s6  }
  0x36   : > { %s213_s7 = sshll.u32 %s2962_s30, 4  ;;  %s2963_s4 = smov 128   ;;  %s214_s7 = int_to_ptr.vmem [resolvable:$true] %s213_s7 }
  0x37   : > { %s2964_s22 = smov 8   ;;  %s240_s17 = sshll.u32 %s3317_s5, 4  ;;  %s241_s17 = int_to_ptr.hbm [resolvable:$true] %s240_s17 }
  0x38   : > { %2544 = dma.hbm_to_vmem [thread:$0]  (!%p3139_p11), %s212_s20, 8192, %s214_s7, [#allocation8], %s2963_s4, %s2963_s4, %s2964_s22  }
  0x39   : > { %s2965_s25 = smov [#allocation12]   ;;  %p1771_p12 = scmp.ge.s32.totalorder %s2954_s8, 4 }
  0x3a   : > { %s242_s13 = sshll.u32 %s2965_s25, 4  ;;  %s243_s13 = int_to_ptr.vmem [resolvable:$true] %s242_s13 }
  0x3b   : > { %2550 = dma.hbm_to_vmem [thread:$0]  (!%p3139_p11), %s241_s17, 512, %s243_s13, [#allocation11]  }
  0x3c   : > { %249 = sbr.rel (%p1771_p12) target bundleno = 101 (0x65), region = 32 }
  0x41   : > { %252 = sbr.rel (!%p3080_p5) target bundleno = 101 (0x65), region = 36  ;;  %s253_s2 = sand.u32 (%p3080_p5), 1, %s2934_s28  }
  0x42   : > { %s1774_s4 = sshll.u32 (%p3080_p5), %s3373_s14, 1  ;;  %s1772_s6 = sshll.u32 (%p3080_p5), %s253_s2, 5 }
  0x43   : > { %s263_s23 = ssub.s32 (%p3080_p5), 5, %s1774_s4  ;;  %s3168_s15 = scalar_lea.sflag (%p3080_p5), [#allocation5], %s253_s2 }
  0x44   : > { %p264_p13 = scmp.lt.s32.totalorder (%p3080_p5), %s263_s23, 2  ;;  %s257_s19 = scalar_lea.vmem (%p3080_p5), [#allocation4], %s1772_s6 }
  0x46   : > { %s3379_s23 = smov (!%p264_p13, %s263_s23), 2 }
  0x47   : > { %s2372_s12 = sshll.u32 %s3379_s23, 4 }
  0x48   : > { %s268_s20 = ssub.s32 32, %s2372_s12 }
  0x49   : > { %s269_s11 = sshll.u32 %s268_s20, 4 }
  0x4a   : > { %270 = vsyncadd %s3168_s15, %s269_s11  ;;  %p3171_p5 = scmp.ne.s32.totalorder %s2372_s12, 0  ;;  %s2374_s10 = sshll.u32 %s3373_s14, 5 }
  0x4b   : > { %s274_s22 = scalar_lea.hbm %s3313_s1, %s2374_s10  ;;  %s3179_s26 = sshll.u32 %s257_s19, 4  ;;  %s279_s26 = int_to_ptr.vmem [resolvable:$true] %s3179_s26 }
  0x4c   : > { %s276_s17 = sshll.u32 %s274_s22, 4  ;;  %s1781_s25 = sshll.u32 %s3379_s23, 8  ;;  %s3182_s17 = int_to_ptr.hbm [resolvable:$true] %s276_s17 }
  0x4d   : > { %s2785_s13 = sshra.s32 %s3182_s17, 4  ;;  %s2787_s2 = sshrl.u32 %s1781_s25, 4  ;;  %s2786_s13 = int_to_ptr.hbm [resolvable:$true] %s2785_s13 }
  0x4e   : > { %s2792_s4 = scalar_lea.hbm %s2786_s13, %s2787_s2  ;;  %s2796_s12 = scalar_lea.hbm %s3313_s1, 80 }
  0x4f   : > { %p2793_p0 = scmp.ne.s32.totalorder %s2786_s13, %s2792_s4  ;;  %p2798_p6 = scmp.lt.s32.totalorder %s2796_s12, %s2792_s4 }
  0x51   : > { %p2794_p1 = pnand %p2793_p0, %p3171_p5 }
  0x53   : > { %p2795_p4 = pneg %p2794_p1 }
  0x55   : > { %p2800_p10 = pnand %p2798_p6, %p2795_p4 }
  0x57   : > { %2803 = shalt.err (!%p2800_p10)
}
  0x58   : > { %s2804_s20 = sshra.s32 %s279_s26, 4  ;;  %s2966_s19 = smov [#allocation4]   ;;  %s2805_s20 = int_to_ptr.vmem [resolvable:$true] %s2804_s20 }
  0x59   : > { %s2811_s11 = scalar_lea.vmem %s2805_s20, %s2787_s2  ;;  %s2815_s10 = scalar_lea.vmem %s2966_s19, 64 }
  0x5a   : > { %p2812_p11 = scmp.ne.s32.totalorder %s2805_s20, %s2811_s11  ;;  %p2817_p0 = scmp.lt.s32.totalorder %s2815_s10, %s2811_s11 }
  0x5c   : > { %p2813_p12 = pnand %p2812_p11, %p3171_p5 }
  0x5e   : > { %p2814_p13 = pneg %p2813_p12 }
  0x60   : > { %p2819_p1 = pnand %p2817_p0, %p2814_p13 }
  0x62   : > { %2822 = shalt.err (!%p2819_p1)
}
  0x63   : > { %s2967_s30 = smov 256   ;;  %s2968_s7 = smov 16  }
  0x64   : > { %284 = dma.hbm_to_vmem [thread:$0]  (%p3171_p5), %s3182_s17, %s1781_s25, %s279_s26, %s3168_s15, %s2967_s30, %s2967_s30, %s2968_s7  }
  0x65 PF: > { %290 = sbr.rel (%p3131_p8) target bundleno = 667 (0x29b), region = 40  ;;  %s292_s22 = sand.u32 (!%p3131_p8), 1, %s2930_s27  }
  0x66   : > { %s1783_s13 = sshll.u32 (!%p3131_p8), %s292_s22, 5  ;;  %s293_s2 = scalar_lea.sflag (!%p3131_p8), [#allocation5], %s292_s22 }
  0x67   : > { %s3208_s4 = scalar_lea.vmem (!%p3131_p8), [#allocation4], %s1783_s13 }
  0x6a   : > { %2897 = dma.done.wait (%p3098_p9), %s293_s2, 512  }
  0x6b   : > { %2899 = vsyncadd (%p3098_p9), %s293_s2, 4294966784 }
  0x6c   : > { %2901 = dma.done.wait (%p3089_p7), [#allocation8], 16384  }
  0x6d   : > { %2903 = vsyncadd (%p3089_p7), [#allocation8], 4294950912 }
  0x6e   : > { %2905 = dma.done.wait (%p3089_p7), [#allocation11], 2560  }
  0x6f   : > { %2907 = vsyncadd (%p3089_p7), [#allocation11], 4294964736  ;;  %s341_s9 = sand.u32 1, %s2918_s24   ;;  %v1903_v0 = vld [vmem:[#allocation7 + $0xe0] sm:$0xf]  ;;  %s2365_s18 = sshll.u32 %s2942_s0, 1 }
  0x70   : > { %s3225_s23 = sshll.u32 %s341_s9, 3  ;;  %v2405_v1 = vld [vmem:[#allocation7 + $0xec] sm:$0xf0]  ;;  %v2031_v2 = vld [vmem:[#allocation7 + $0x1e0] sm:$0xf]  ;;  %s1594_s21 = sadd.s32 %s2938_s29, %s2365_s18 }
  0x71   : > { %v1904_v3 = vor.u32 %v2405_v1, %v1903_v0  ;;  %v2437_v4 = vld [vmem:[#allocation7 + $0x1ec] sm:$0xf0]  ;;  %v2403_v5 = vld [vmem:[#allocation7 + $0xe4] sm:$0xf]  ;;  %v1905_v6 = vld [vmem:[#allocation7 + $0xf0] sm:$0xf0] }
  0x72   : > { %v2032_v7 = vor.u32 %v2437_v4, %v2031_v2  ;;  %v1908_v8 = vor.u32 %v2403_v5, %v1905_v6  ;;  %v2435_v9 = vld [vmem:[#allocation7 + $0x1e4] sm:$0xf]  ;;  %v2033_v10 = vld [vmem:[#allocation7 + $0x1f0] sm:$0xf0]  ;;  %v1887_v11 = vld [vmem:[#allocation7 + $0xc0] sm:$0xf] }
  0x73   : > { %754 = vmatpush.bf16.msra.mxu0 %v1904_v3  ;;  %v2036_v12 = vor.u32 %v2435_v9, %v2033_v10  ;;  %v2401_v13 = vld [vmem:[#allocation7 + $0xcc] sm:$0xf0]  ;;  %v2015_v14 = vld [vmem:[#allocation7 + $0x1c0] sm:$0xf]  ;;  %v2399_v18 = vld [vmem:[#allocation7 + $0xc4] sm:$0xf] }
  0x74   : > { %v2433_v15 = vld [vmem:[#allocation7 + $0x1cc] sm:$0xf0]  ;;  %768 = vmatpush.bf16.msra.mxu1 %v2032_v7  ;;  %782 = vmatpush.bf16.msra.mxu2 %v1908_v8  ;;  %v1888_v16 = vor.u32 %v2401_v13, %v1887_v11  ;;  %v1889_v19 = vld [vmem:[#allocation7 + $0xd0] sm:$0xf0]  ;;  %v2431_v20 = vld [vmem:[#allocation7 + $0x1c4] sm:$0xf] }
  0x75   : > { %v2016_v17 = vor.u32 %v2433_v15, %v2015_v14  ;;  %796 = vmatpush.bf16.msra.mxu3 %v2036_v12  ;;  %v1892_v21 = vor.u32 %v2399_v18, %v1889_v19  ;;  %v2017_v22 = vld [vmem:[#allocation7 + $0x1d0] sm:$0xf0]  ;;  %v1871_v23 = vld [vmem:[#allocation7 + $0xa0] sm:$0xf]  ;;  %v2397_v24 = vld [vmem:[#allocation7 + $0xac] sm:$0xf0] }
  0x76   : > { %v2020_v25 = vor.u32 %v2431_v20, %v2017_v22  ;;  %v1999_v26 = vld [vmem:[#allocation7 + $0x1a0] sm:$0xf]  ;;  %v2429_v27 = vld [vmem:[#allocation7 + $0x1ac] sm:$0xf0]  ;;  %v2395_v28 = vld [vmem:[#allocation7 + $0xa4] sm:$0xf]  ;;  %v1872_v29 = vor.u32 %v2397_v24, %v1871_v23 }
  0x77   : > { %755 = vmatpush.bf16.msra.mxu0 %v1888_v16  ;;  %v1873_v30 = vld [vmem:[#allocation7 + $0xb0] sm:$0xf0]  ;;  %v2427_v31 = vld [vmem:[#allocation7 + $0x1a4] sm:$0xf]  ;;  %v2000_v33 = vor.u32 %v2429_v27, %v1999_v26  ;;  %v1855_v35 = vld [vmem:[#allocation7 + $0x80] sm:$0xf] }
  0x78   : > { %v2001_v32 = vld [vmem:[#allocation7 + $0x1b0] sm:$0xf0]  ;;  %769 = vmatpush.bf16.msra.mxu1 %v2016_v17  ;;  %783 = vmatpush.bf16.msra.mxu2 %v1892_v21  ;;  %v1876_v34 = vor.u32 %v2395_v28, %v1873_v30  ;;  %v2393_v36 = vld [vmem:[#allocation7 + $0x8c] sm:$0xf0]  ;;  %v1983_v37 = vld [vmem:[#allocation7 + $0x180] sm:$0xf] }
  0x79   : > { %797 = vmatpush.bf16.msra.mxu3 %v2020_v25  ;;  %v2004_v38 = vor.u32 %v2427_v31, %v2001_v32  ;;  %v2425_v39 = vld [vmem:[#allocation7 + $0x18c] sm:$0xf0]  ;;  %v2391_v40 = vld [vmem:[#allocation7 + $0x84] sm:$0xf]  ;;  %v1857_v41 = vld [vmem:[#allocation7 + $0x90] sm:$0xf0]  ;;  %v1856_v44 = vor.u32 %v2393_v36, %v1855_v35 }
  0x7a   : > { %v2423_v42 = vld [vmem:[#allocation7 + $0x184] sm:$0xf]  ;;  %v1985_v43 = vld [vmem:[#allocation7 + $0x190] sm:$0xf0]  ;;  %v1984_v45 = vor.u32 %v2425_v39, %v1983_v37  ;;  %v1860_v46 = vor.u32 %v2391_v40, %v1857_v41  ;;  %v1839_v47 = vld [vmem:[#allocation7 + $0x60] sm:$0xf] }
  0x7b   : > { %756 = vmatpush.bf16.msra.mxu0 %v1872_v29  ;;  %v2389_v48 = vld [vmem:[#allocation7 + $0x6c] sm:$0xf0]  ;;  %v1967_v49 = vld [vmem:[#allocation7 + $0x160] sm:$0xf]  ;;  %v1988_v50 = vor.u32 %v2423_v42, %v1985_v43  ;;  %v2387_v52 = vld [vmem:[#allocation7 + $0x64] sm:$0xf] }
  0x7c   : > { %770 = vmatpush.bf16.msra.mxu1 %v2000_v33  ;;  %784 = vmatpush.bf16.msra.mxu2 %v1876_v34  ;;  %v2421_v51 = vld [vmem:[#allocation7 + $0x16c] sm:$0xf0]  ;;  %v1841_v53 = vld [vmem:[#allocation7 + $0x70] sm:$0xf0]  ;;  %v2419_v54 = vld [vmem:[#allocation7 + $0x164] sm:$0xf]  ;;  %v1840_v56 = vor.u32 %v2389_v48, %v1839_v47 }
  0x7d   : > { %798 = vmatpush.bf16.msra.mxu3 %v2004_v38  ;;  %v1969_v55 = vld [vmem:[#allocation7 + $0x170] sm:$0xf0]  ;;  %v1968_v57 = vor.u32 %v2421_v51, %v1967_v49  ;;  %v1844_v58 = vor.u32 %v2387_v52, %v1841_v53  ;;  %v1823_v59 = vld [vmem:[#allocation7 + $0x40] sm:$0xf]  ;;  %v2385_v60 = vld [vmem:[#allocation7 + $0x4c] sm:$0xf0] }
  0x7e   : > { %v1951_v61 = vld [vmem:[#allocation7 + $0x140] sm:$0xf]  ;;  %v1972_v62 = vor.u32 %v2419_v54, %v1969_v55  ;;  %v2417_v63 = vld [vmem:[#allocation7 + $0x14c] sm:$0xf0]  ;;  %v2383_v0 = vld [vmem:[#allocation7 + $0x44] sm:$0xf]  ;;  %v1824_v4 = vor.u32 %v2385_v60, %v1823_v59 }
  0x7f   : > { %757 = vmatpush.bf16.msra.mxu0 %v1856_v44  ;;  %v1825_v1 = vld [vmem:[#allocation7 + $0x50] sm:$0xf0]  ;;  %v2415_v2 = vld [vmem:[#allocation7 + $0x144] sm:$0xf]  ;;  %v1952_v5 = vor.u32 %v2417_v63, %v1951_v61  ;;  %v1807_v7 = vld [vmem:[#allocation7 + $0x20] sm:$0xf] }
  0x80   : > { %771 = vmatpush.bf16.msra.mxu1 %v1984_v45  ;;  %785 = vmatpush.bf16.msra.mxu2 %v1860_v46  ;;  %v1953_v3 = vld [vmem:[#allocation7 + $0x150] sm:$0xf0]  ;;  %v1828_v6 = vor.u32 %v2383_v0, %v1825_v1  ;;  %v2381_v8 = vld [vmem:[#allocation7 + $0x2c] sm:$0xf0]  ;;  %v1935_v9 = vld [vmem:[#allocation7 + $0x120] sm:$0xf] }
  0x81   : > { %799 = vmatpush.bf16.msra.mxu3 %v1988_v50  ;;  %v1956_v10 = vor.u32 %v2415_v2, %v1953_v3  ;;  %v2413_v11 = vld [vmem:[#allocation7 + $0x12c] sm:$0xf0]  ;;  %v2379_v12 = vld [vmem:[#allocation7 + $0x24] sm:$0xf]  ;;  %v1809_v13 = vld [vmem:[#allocation7 + $0x30] sm:$0xf0]  ;;  %v1808_v16 = vor.u32 %v2381_v8, %v1807_v7 }
  0x82   : > { %v2411_v14 = vld [vmem:[#allocation7 + $0x124] sm:$0xf]  ;;  %v1937_v15 = vld [vmem:[#allocation7 + $0x130] sm:$0xf0]  ;;  %v1791_v17 = vld [vmem:[#allocation7] sm:$0xf]  ;;  %v1936_v20 = vor.u32 %v2413_v11, %v1935_v9  ;;  %v1812_v21 = vor.u32 %v2379_v12, %v1809_v13 }
  0x83   : > { %758 = vmatpush.bf16.msra.mxu0 %v1840_v56  ;;  %v2377_v18 = vld [vmem:[#allocation7 + $0xc] sm:$0xf0]  ;;  %v1919_v19 = vld [vmem:[#allocation7 + $0x100] sm:$0xf]  ;;  %v2375_v23 = vld [vmem:[#allocation7 + $0x4] sm:$0xf]  ;;  %v1940_v25 = vor.u32 %v2411_v14, %v1937_v15 }
  0x84   : > { %772 = vmatpush.bf16.msra.mxu1 %v1968_v57  ;;  %786 = vmatpush.bf16.msra.mxu2 %v1844_v58  ;;  %v2409_v22 = vld [vmem:[#allocation7 + $0x10c] sm:$0xf0]  ;;  %v1793_v24 = vld [vmem:[#allocation7 + $0x10] sm:$0xf0]  ;;  %v2407_v26 = vld [vmem:[#allocation7 + $0x104] sm:$0xf]  ;;  %v1792_v32 = vor.u32 %v2377_v18, %v1791_v17 }
  0x85   : > { %800 = vmatpush.bf16.msra.mxu3 %v1972_v62  ;;  %v1921_v27 = vld [vmem:[#allocation7 + $0x110] sm:$0xf0]  ;;  %v1911_v28 = vld [vmem:[#allocation7 + $0xe8] sm:$0xf]  ;;  %v2406_v29 = vld [vmem:[#allocation7 + $0xf4] sm:$0xf0]  ;;  %v1920_v36 = vor.u32 %v2409_v22, %v1919_v19  ;;  %v1796_v37 = vor.u32 %v2375_v23, %v1793_v24 }
  0x86   : > { %v2039_v30 = vld [vmem:[#allocation7 + $0x1e8] sm:$0xf]  ;;  %v2438_v31 = vld [vmem:[#allocation7 + $0x1f4] sm:$0xf0]  ;;  %v2404_v33 = vld [vmem:[#allocation7 + $0xec] sm:$0xf]  ;;  %v1924_v41 = vor.u32 %v2407_v26, %v1921_v27  ;;  %v1912_v42 = vor.u32 %v2406_v29, %v1911_v28 }
  0x87   : > { %759 = vmatpush.bf16.msra.mxu0 %v1824_v4  ;;  %v1913_v34 = vld [vmem:[#allocation7 + $0xf8] sm:$0xf0]  ;;  %v2436_v35 = vld [vmem:[#allocation7 + $0x1ec] sm:$0xf]  ;;  %v354_v39 = vld [vmem:[%s3208_s4] sm:$0xff]  ;;  %v2040_v45 = vor.u32 %v2438_v31, %v2039_v30  ;;  %s1602_s15 = sld [smem:[#allocation3]] }
  0x88   : > { %773 = vmatpush.bf16.msra.mxu1 %v1952_v5  ;;  %787 = vmatpush.bf16.msra.mxu2 %v1828_v6  ;;  %v2041_v38 = vld [vmem:[#allocation7 + $0x1f8] sm:$0xf0]  ;;  %v356_v40 = vld [vmem:[%s3208_s4 + $0x10] sm:$0xff]  ;;  %v355_v43 = vld [vmem:[%s3208_s4 + $0x8] sm:$0xff]  ;;  %v1916_v46 = vor.u32 %v2404_v33, %v1913_v34  ;;  %s2366_s16 = sshll.u32 %s1594_s21, 4  ;;  %s343_s26 = scalar_lea.vmem [#allocation13], %s3225_s23 }
  0x89   : > { %801 = vmatpush.bf16.msra.mxu3 %v1956_v10  ;;  %v357_v44 = vld [vmem:[%s3208_s4 + $0x18] sm:$0xff]  ;;  %v1895_v47 = vld [vmem:[#allocation7 + $0xc8] sm:$0xf]  ;;  %v2044_v50 = vor.u32 %v2436_v35, %v2041_v38  ;;  %v3231_v51 = vpack.c.bf16 %v356_v40, %v354_v39  ;;  %v2400_v53 = vld [vmem:[#allocation7 + $0xcc] sm:$0xf]  ;;  %p2367_p7 = scmp.ne.s32.totalorder %s2938_s29, 0 }
  0x8a   : > { %v2402_v48 = vld [vmem:[#allocation7 + $0xd4] sm:$0xf0]  ;;  %v2023_v49 = vld [vmem:[#allocation7 + $0x1c8] sm:$0xf]  ;;  %v1897_v54 = vld [vmem:[#allocation7 + $0xd8] sm:$0xf0]  ;;  %v3233_v55 = vpack.c.bf16 %v357_v44, %v355_v43 }
  0x8b   : > { %760 = vmatpush.bf16.msra.mxu0 %v1808_v16  ;;  %v2434_v52 = vld [vmem:[#allocation7 + $0x1d4] sm:$0xf0]  ;;  %v2432_v56 = vld [vmem:[#allocation7 + $0x1cc] sm:$0xf]  ;;  %v2025_v57 = vld [vmem:[#allocation7 + $0x1d8] sm:$0xf0]  ;;  %v1896_v58 = vor.u32 %v2402_v48, %v1895_v47  ;;  %v1900_v60 = vor.u32 %v2400_v53, %v1897_v54 }
  0x8c   : > { %774 = vmatpush.bf16.msra.mxu1 %v1936_v20  ;;  %788 = vmatpush.bf16.msra.mxu2 %v1812_v21  ;;  %v2024_v59 = vor.u32 %v2434_v52, %v2023_v49  ;;  %v1879_v61 = vld [vmem:[#allocation7 + $0xa8] sm:$0xf]  ;;  %v2398_v62 = vld [vmem:[#allocation7 + $0xb4] sm:$0xf0]  ;;  %v2028_v0 = vor.u32 %v2432_v56, %v2025_v57  ;;  %v2396_v2 = vld [vmem:[#allocation7 + $0xac] sm:$0xf] }
  0x8d   : > { %802 = vmatpush.bf16.msra.mxu3 %v1940_v25  ;;  %v2007_v63 = vld [vmem:[#allocation7 + $0x1a8] sm:$0xf]  ;;  %v2430_v1 = vld [vmem:[#allocation7 + $0x1b4] sm:$0xf0]  ;;  %v1881_v3 = vld [vmem:[#allocation7 + $0xb8] sm:$0xf0]  ;;  %v1880_v6 = vor.u32 %v2398_v62, %v1879_v61 }
  0x8e   : > { %v2428_v4 = vld [vmem:[#allocation7 + $0x1ac] sm:$0xf]  ;;  %v2009_v5 = vld [vmem:[#allocation7 + $0x1b8] sm:$0xf0]  ;;  %v2008_v7 = vor.u32 %v2430_v1, %v2007_v63  ;;  %v1884_v8 = vor.u32 %v2396_v2, %v1881_v3  ;;  %v1863_v9 = vld [vmem:[#allocation7 + $0x88] sm:$0xf] }
  0x8f   : > { %761 = vmatpush.bf16.msra.mxu0 %v1792_v32  ;;  %v2394_v10 = vld [vmem:[#allocation7 + $0x94] sm:$0xf0]  ;;  %v1991_v11 = vld [vmem:[#allocation7 + $0x188] sm:$0xf]  ;;  %v2012_v12 = vor.u32 %v2428_v4, %v2009_v5  ;;  %v2392_v14 = vld [vmem:[#allocation7 + $0x8c] sm:$0xf] }
  0x90   : > { %775 = vmatpush.bf16.msra.mxu1 %v1920_v36  ;;  %789 = vmatpush.bf16.msra.mxu2 %v1796_v37  ;;  %v2426_v13 = vld [vmem:[#allocation7 + $0x194] sm:$0xf0]  ;;  %v1865_v15 = vld [vmem:[#allocation7 + $0x98] sm:$0xf0]  ;;  %v2424_v16 = vld [vmem:[#allocation7 + $0x18c] sm:$0xf]  ;;  %v1864_v18 = vor.u32 %v2394_v10, %v1863_v9 }
  0x91   : > { %803 = vmatpush.bf16.msra.mxu3 %v1924_v41  ;;  %v1993_v17 = vld [vmem:[#allocation7 + $0x198] sm:$0xf0]  ;;  %v1992_v19 = vor.u32 %v2426_v13, %v1991_v11  ;;  %v1868_v20 = vor.u32 %v2392_v14, %v1865_v15  ;;  %v1847_v21 = vld [vmem:[#allocation7 + $0x68] sm:$0xf]  ;;  %v2390_v22 = vld [vmem:[#allocation7 + $0x74] sm:$0xf0] }
  0x92   : > { %762 = vmatmul.bf16.vlgmr.msra.gmra.mxu0 %v3231_v51  ;;  %v1975_v23 = vld [vmem:[#allocation7 + $0x168] sm:$0xf]  ;;  %v1996_v24 = vor.u32 %v2424_v16, %v1993_v17  ;;  %v2422_v25 = vld [vmem:[#allocation7 + $0x174] sm:$0xf0]  ;;  %v2388_v26 = vld [vmem:[#allocation7 + $0x6c] sm:$0xf]  ;;  %v1848_v30 = vor.u32 %v2390_v22, %v1847_v21 }
  0x93   : > { %810 = vmatpush.bf16.msrb.mxu0 %v1912_v42  ;;  %790 = vmatmul.bf16.vlgmr.msra.gmra.mxu2 %v3231_v51  ;;  %v1849_v27 = vld [vmem:[#allocation7 + $0x78] sm:$0xf0]  ;;  %v2420_v28 = vld [vmem:[#allocation7 + $0x16c] sm:$0xf]  ;;  %v1976_v31 = vor.u32 %v2422_v25, %v1975_v23  ;;  %v1831_v33 = vld [vmem:[#allocation7 + $0x48] sm:$0xf] }
  0x94   : > { %824 = vmatpush.bf16.msrb.mxu1 %v2040_v45  ;;  %838 = vmatpush.bf16.msrb.mxu2 %v1916_v46  ;;  %v1977_v29 = vld [vmem:[#allocation7 + $0x178] sm:$0xf0]  ;;  %v1852_v32 = vor.u32 %v2388_v26, %v1849_v27  ;;  %v2386_v34 = vld [vmem:[#allocation7 + $0x54] sm:$0xf0]  ;;  %v1959_v35 = vld [vmem:[#allocation7 + $0x148] sm:$0xf] }
  0x95   : > { %852 = vmatpush.bf16.msrb.mxu3 %v2044_v50  ;;  %776 = vmatmul.bf16.vlgmr.msra.gmra.mxu1 %v3233_v55  ;;  %v1980_v36 = vor.u32 %v2420_v28, %v1977_v29  ;;  %v2418_v37 = vld [vmem:[#allocation7 + $0x154] sm:$0xf0]  ;;  %v2384_v38 = vld [vmem:[#allocation7 + $0x4c] sm:$0xf]  ;;  %v1833_v39 = vld [vmem:[#allocation7 + $0x58] sm:$0xf0]  ;;  %v1832_v42 = vor.u32 %v2386_v34, %v1831_v33 }
  0x96   : > { %804 = vmatmul.bf16.vlgmr.msra.gmra.mxu3 %v3233_v55  ;;  %v2416_v40 = vld [vmem:[#allocation7 + $0x14c] sm:$0xf]  ;;  %v1961_v41 = vld [vmem:[#allocation7 + $0x158] sm:$0xf0]  ;;  %v1960_v43 = vor.u32 %v2418_v37, %v1959_v35  ;;  %v1836_v44 = vor.u32 %v2384_v38, %v1833_v39  ;;  %v1815_v45 = vld [vmem:[#allocation7 + $0x28] sm:$0xf] }
  0x97   : > { %811 = vmatpush.bf16.msrb.mxu0 %v1896_v58  ;;  %v2382_v46 = vld [vmem:[#allocation7 + $0x34] sm:$0xf0]  ;;  %v1943_v47 = vld [vmem:[#allocation7 + $0x128] sm:$0xf]  ;;  %v1964_v48 = vor.u32 %v2416_v40, %v1961_v41  ;;  %v2380_v50 = vld [vmem:[#allocation7 + $0x2c] sm:$0xf] }
  0x98   : > { %825 = vmatpush.bf16.msrb.mxu1 %v2024_v59  ;;  %839 = vmatpush.bf16.msrb.mxu2 %v1900_v60  ;;  %v2414_v49 = vld [vmem:[#allocation7 + $0x134] sm:$0xf0]  ;;  %v1817_v52 = vld [vmem:[#allocation7 + $0x38] sm:$0xf0]  ;;  %v2412_v53 = vld [vmem:[#allocation7 + $0x12c] sm:$0xf]  ;;  %v1816_v56 = vor.u32 %v2382_v46, %v1815_v45 }
  0x99   : > { %853 = vmatpush.bf16.msrb.mxu3 %v2028_v0  ;;  %v1945_v54 = vld [vmem:[#allocation7 + $0x138] sm:$0xf0]  ;;  %v1799_v57 = vld [vmem:[#allocation7 + $0x8] sm:$0xf]  ;;  %v1944_v58 = vor.u32 %v2414_v49, %v1943_v47  ;;  %v1820_v59 = vor.u32 %v2380_v50, %v1817_v52  ;;  %v2378_v60 = vld [vmem:[#allocation7 + $0x14] sm:$0xf0] }
  0x9a   : > { %v1927_v61 = vld [vmem:[#allocation7 + $0x108] sm:$0xf]  ;;  %v2410_v62 = vld [vmem:[#allocation7 + $0x114] sm:$0xf0]  ;;  %v1948_v63 = vor.u32 %v2412_v53, %v1945_v54  ;;  %v2376_v0 = vld [vmem:[#allocation7 + $0xc] sm:$0xf] }
  0x9b   : > { %812 = vmatpush.bf16.msrb.mxu0 %v1880_v6  ;;  %v1801_v1 = vld [vmem:[#allocation7 + $0x18] sm:$0xf0]  ;;  %v2408_v2 = vld [vmem:[#allocation7 + $0x10c] sm:$0xf]  ;;  %v2103_v4 = vld [vmem:[#allocation9 + $0x70] sm:$0xf]  ;;  %v1800_v6 = vor.u32 %v2378_v60, %v1799_v57  ;;  %v1928_v9 = vor.u32 %v2410_v62, %v1927_v61 }
  0x9c   : > { %826 = vmatpush.bf16.msrb.mxu1 %v2008_v7  ;;  %840 = vmatpush.bf16.msrb.mxu2 %v1884_v8  ;;  %v1929_v3 = vld [vmem:[#allocation7 + $0x118] sm:$0xf0]  ;;  %v2454_v5 = vld [vmem:[#allocation9 + $0x74] sm:$0xf0]  ;;  %v2167_v7 = vld [vmem:[#allocation9 + $0xf0] sm:$0xf]  ;;  %v1804_v10 = vor.u32 %v2376_v0, %v1801_v1 }
  0x9d   : > { %854 = vmatpush.bf16.msrb.mxu3 %v2012_v12  ;;  %v2470_v8 = vld [vmem:[#allocation9 + $0xf4] sm:$0xf0]  ;;  %v1932_v11 = vor.u32 %v2408_v2, %v1929_v3  ;;  %v2104_v12 = vor.u32 %v2454_v5, %v2103_v4  ;;  %v2095_v13 = vld [vmem:[#allocation9 + $0x60] sm:$0xf]  ;;  %v2452_v14 = vld [vmem:[#allocation9 + $0x64] sm:$0xf0] }
  0x9e   : > { %v2168_v15 = vor.u32 %v2470_v8, %v2167_v7  ;;  %v2159_v16 = vld [vmem:[#allocation9 + $0xe0] sm:$0xf]  ;;  %v2468_v17 = vld [vmem:[#allocation9 + $0xe4] sm:$0xf0]  ;;  %v2151_v22 = vld [vmem:[#allocation9 + $0xd0] sm:$0xf] }
  0x9f   : > { %813 = vmatpush.bf16.msrb.mxu0 %v1864_v18  ;;  %v2096_v18 = vor.u32 %v2452_v14, %v2095_v13  ;;  %v2160_v21 = vor.u32 %v2468_v17, %v2159_v16  ;;  %v2466_v23 = vld [vmem:[#allocation9 + $0xd4] sm:$0xf0]  ;;  %v2079_v25 = vld [vmem:[#allocation9 + $0x40] sm:$0xf]  ;;  %v2448_v26 = vld [vmem:[#allocation9 + $0x44] sm:$0xf0] }
  0xa0   : > { %827 = vmatpush.bf16.msrb.mxu1 %v1992_v19  ;;  %841 = vmatpush.bf16.msrb.mxu2 %v1868_v20  ;;  %v2087_v19 = vld [vmem:[#allocation9 + $0x50] sm:$0xf]  ;;  %v2450_v20 = vld [vmem:[#allocation9 + $0x54] sm:$0xf0]  ;;  %v2152_v27 = vor.u32 %v2466_v23, %v2151_v22  ;;  %v2143_v28 = vld [vmem:[#allocation9 + $0xc0] sm:$0xf] }
  0xa1   : > { %855 = vmatpush.bf16.msrb.mxu3 %v1996_v24  ;;  %v2088_v24 = vor.u32 %v2450_v20, %v2087_v19  ;;  %v2464_v29 = vld [vmem:[#allocation9 + $0xc4] sm:$0xf0]  ;;  %v2135_v34 = vld [vmem:[#allocation9 + $0xb0] sm:$0xf]  ;;  %v2442_v40 = vld [vmem:[#allocation9 + $0x14] sm:$0xf0] }
  0xa2   : > { %v2144_v33 = vor.u32 %v2464_v29, %v2143_v28  ;;  %v2055_v39 = vld [vmem:[#allocation9 + $0x10] sm:$0xf]  ;;  %v2047_v45 = vld [vmem:[#allocation9] sm:$0xf]  ;;  %v2440_v46 = vld [vmem:[#allocation9 + $0x4] sm:$0xf0] }
  0xa3   : > { %814 = vmatpush.bf16.msrb.mxu0 %v1848_v30  ;;  %v2080_v30 = vor.u32 %v2448_v26, %v2079_v25  ;;  %v2056_v41 = vor.u32 %v2442_v40, %v2055_v39  ;;  %v2048_v47 = vor.u32 %v2440_v46, %v2047_v45  ;;  %v2486_v49 = vld [vmem:[#allocation9 + $0x174] sm:$0xf0]  ;;  %v2453_v50 = vld [vmem:[#allocation9 + $0x74] sm:$0xf]  ;;  %v2105_v53 = vld [vmem:[#allocation9 + $0x78] sm:$0xf0] }
  0xa4   : > { %828 = vmatpush.bf16.msrb.mxu1 %v1976_v31  ;;  %842 = vmatpush.bf16.msrb.mxu2 %v1852_v32  ;;  %v2071_v31 = vld [vmem:[#allocation9 + $0x30] sm:$0xf]  ;;  %v2446_v32 = vld [vmem:[#allocation9 + $0x34] sm:$0xf0]  ;;  %v2108_v54 = vor.u32 %v2453_v50, %v2105_v53  ;;  %v2484_v60 = vld [vmem:[#allocation9 + $0x164] sm:$0xf0] }
  0xa5   : > { %856 = vmatpush.bf16.msrb.mxu3 %v1980_v36  ;;  %v2072_v35 = vor.u32 %v2446_v32, %v2071_v31  ;;  %v2444_v36 = vld [vmem:[#allocation9 + $0x24] sm:$0xf0]  ;;  %v2458_v57 = vld [vmem:[#allocation9 + $0x94] sm:$0xf0]  ;;  %v2451_v61 = vld [vmem:[#allocation9 + $0x64] sm:$0xf] }
  0xa6   : > { %v2111_v0 = vld [vmem:[#allocation9 + $0x80] sm:$0xf]  ;;  %v2456_v2 = vld [vmem:[#allocation9 + $0x84] sm:$0xf0]  ;;  %v2295_v3 = vld [vmem:[#allocation9 + $0x1f0] sm:$0xf] }
  0xa7   : > { %815 = vmatpush.bf16.msrb.mxu0 %v1832_v42  ;;  %v2127_v42 = vld [vmem:[#allocation9 + $0xa0] sm:$0xf]  ;;  %v2502_v4 = vld [vmem:[#allocation9 + $0x1f4] sm:$0xf0]  ;;  %v2112_v5 = vor.u32 %v2456_v2, %v2111_v0  ;;  %v2469_v7 = vld [vmem:[#allocation9 + $0xf4] sm:$0xf] }
  0xa8   : > { %829 = vmatpush.bf16.msrb.mxu1 %v1960_v43  ;;  %843 = vmatpush.bf16.msrb.mxu2 %v1836_v44  ;;  %v2460_v43 = vld [vmem:[#allocation9 + $0xa4] sm:$0xf0]  ;;  %v2169_v8 = vld [vmem:[#allocation9 + $0xf8] sm:$0xf0]  ;;  %v2287_v16 = vld [vmem:[#allocation9 + $0x1e0] sm:$0xf] }
  0xa9   : > { %857 = vmatpush.bf16.msrb.mxu3 %v1964_v48  ;;  %v2128_v44 = vor.u32 %v2460_v43, %v2127_v42  ;;  %v2231_v48 = vld [vmem:[#allocation9 + $0x170] sm:$0xf]  ;;  %v2089_v14 = vld [vmem:[#allocation9 + $0x58] sm:$0xf0]  ;;  %v2500_v17 = vld [vmem:[#allocation9 + $0x1e4] sm:$0xf0] }
  0xaa   : > { %v2232_v52 = vor.u32 %v2486_v49, %v2231_v48  ;;  %v2467_v19 = vld [vmem:[#allocation9 + $0xe4] sm:$0xf]  ;;  %v2161_v20 = vld [vmem:[#allocation9 + $0xe8] sm:$0xf0]  ;;  %v2207_v22 = vld [vmem:[#allocation9 + $0x140] sm:$0xf] }
  0xab   : > { %816 = vmatpush.bf16.msrb.mxu0 %v1816_v56  ;;  %v2119_v56 = vld [vmem:[#allocation9 + $0x90] sm:$0xf]  ;;  %v2480_v23 = vld [vmem:[#allocation9 + $0x144] sm:$0xf0]  ;;  %v2081_v26 = vld [vmem:[#allocation9 + $0x48] sm:$0xf0] }
  0xac   : > { %830 = vmatpush.bf16.msrb.mxu1 %v1944_v58  ;;  %844 = vmatpush.bf16.msrb.mxu2 %v1820_v59  ;;  %v2120_v58 = vor.u32 %v2458_v57, %v2119_v56  ;;  %v2223_v59 = vld [vmem:[#allocation9 + $0x160] sm:$0xf]  ;;  %v2208_v25 = vor.u32 %v2480_v23, %v2207_v22  ;;  %v2279_v28 = vld [vmem:[#allocation9 + $0x1d0] sm:$0xf]  ;;  %v2498_v29 = vld [vmem:[#allocation9 + $0x1d4] sm:$0xf0] }
  0xad   : > { %858 = vmatpush.bf16.msrb.mxu3 %v1948_v63  ;;  %v2224_v62 = vor.u32 %v2484_v60, %v2223_v59  ;;  %v2097_v63 = vld [vmem:[#allocation9 + $0x68] sm:$0xf0]  ;;  %v2280_v31 = vor.u32 %v2498_v29, %v2279_v28  ;;  %v2153_v32 = vld [vmem:[#allocation9 + $0xd8] sm:$0xf0]  ;;  %v2496_v39 = vld [vmem:[#allocation9 + $0x1c4] sm:$0xf0] }
  0xae   : > { %v2100_v1 = vor.u32 %v2451_v61, %v2097_v63  ;;  %v2463_v40 = vld [vmem:[#allocation9 + $0xc4] sm:$0xf]  ;;  %v2145_v42 = vld [vmem:[#allocation9 + $0xc8] sm:$0xf0]  ;;  %v2476_v45 = vld [vmem:[#allocation9 + $0x124] sm:$0xf0] }
  0xaf   : > { %817 = vmatpush.bf16.msrb.mxu0 %v1800_v6  ;;  %v2296_v6 = vor.u32 %v2502_v4, %v2295_v3  ;;  %v2148_v43 = vor.u32 %v2463_v40, %v2145_v42  ;;  %v2443_v46 = vld [vmem:[#allocation9 + $0x24] sm:$0xf]  ;;  %v2065_v48 = vld [vmem:[#allocation9 + $0x28] sm:$0xf0]  ;;  %v2494_v53 = vld [vmem:[#allocation9 + $0x1b4] sm:$0xf0] }
  0xb0   : > { %831 = vmatpush.bf16.msrb.mxu1 %v1928_v9  ;;  %845 = vmatpush.bf16.msrb.mxu2 %v1804_v10  ;;  %v2172_v9 = vor.u32 %v2469_v7, %v2169_v8  ;;  %v2215_v10 = vld [vmem:[#allocation9 + $0x150] sm:$0xf]  ;;  %v2068_v50 = vor.u32 %v2443_v46, %v2065_v48  ;;  %v2137_v57 = vld [vmem:[#allocation9 + $0xb8] sm:$0xf0]  ;;  %v2474_v59 = vld [vmem:[#allocation9 + $0x114] sm:$0xf0] }
  0xb1   : > { %859 = vmatpush.bf16.msrb.mxu3 %v1932_v11  ;;  %v2482_v11 = vld [vmem:[#allocation9 + $0x154] sm:$0xf0]  ;;  %v2057_v63 = vld [vmem:[#allocation9 + $0x18] sm:$0xf0]  ;;  %v2492_v2 = vld [vmem:[#allocation9 + $0x1a4] sm:$0xf0] }
  0xb2   : > { %818 = vmatmul.bf16.vlgmr.msrb.gmra.mxu0 %v3231_v51  ;;  %v2216_v13 = vor.u32 %v2482_v11, %v2215_v10  ;;  %v3243_v49 = vld [vmem:[#allocation12] ss:$8 sm:$0xf]  ;;  %v2459_v3 = vld [vmem:[#allocation9 + $0xa4] sm:$0xf] }
  0xb3   : > { %1296 = vmatpush.bf16.msra.mxu0 %v2104_v12  ;;  %832 = vmatmul.bf16.vlgmr.msrb.gmra.mxu1 %v3233_v55  ;;  %v2449_v12 = vld [vmem:[#allocation9 + $0x54] sm:$0xf]  ;;  %v426_v4 = vperm.slane %v3243_v49, 0  ;;  %v2175_v8 = vld [vmem:[#allocation9 + $0x100] sm:$0xf]  ;;  %v427_v29 = vperm.slane %v3243_v49, 1 }
  0xb4   : > { %1310 = vmatpush.bf16.msra.mxu1 %v2168_v15  ;;  %846 = vmatmul.bf16.vlgmr.msrb.gmra.mxu2 %v3231_v51  ;;  %v2462_v51 = vld [vmem:[#allocation9 + $0xb4] sm:$0xf0]  ;;  %v2092_v15 = vor.u32 %v2449_v12, %v2089_v14  ;;  %v2439_v10 = vld [vmem:[#allocation9 + $0x4] sm:$0xf]  ;;  %v2049_v12 = vld [vmem:[#allocation9 + $0x8] sm:$0xf0] }
  0xb5   : > { %860 = vmatmul.bf16.vlgmr.msrb.gmra.mxu3 %v3233_v55  ;;  %v2063_v55 = vld [vmem:[#allocation9 + $0x20] sm:$0xf]  ;;  %v2136_v37 = vor.u32 %v2462_v51, %v2135_v34  ;;  %1324 = vmatpush.bf16.msra.mxu2 %v2232_v52  ;;  %v2199_v34 = vld [vmem:[#allocation9 + $0x130] sm:$0xf]  ;;  %v2478_v51 = vld [vmem:[#allocation9 + $0x134] sm:$0xf0] }
  0xb6   : > { %v2064_v38 = vor.u32 %v2444_v36, %v2063_v55  ;;  %1338 = vmatpush.bf16.msra.mxu3 %v2296_v6  ;;  %v2200_v55 = vor.u32 %v2478_v51, %v2199_v34  ;;  %v2073_v36 = vld [vmem:[#allocation9 + $0x38] sm:$0xf0]  ;;  %v2263_v52 = vld [vmem:[#allocation9 + $0x1b0] sm:$0xf]  ;;  %v2129_v6 = vld [vmem:[#allocation9 + $0xa8] sm:$0xf0] }
  0xb7   : > { %1297 = vmatpush.bf16.msra.mxu0 %v2096_v18  ;;  %v2288_v18 = vor.u32 %v2500_v17, %v2287_v16  ;;  %v2264_v56 = vor.u32 %v2494_v53, %v2263_v52  ;;  %v2132_v7 = vor.u32 %v2459_v3, %v2129_v6  ;;  %v2233_v14 = vld [vmem:[#allocation9 + $0x178] sm:$0xf0]  ;;  %v2052_v16 = vor.u32 %v2439_v10, %v2049_v12  ;;  %v2225_v28 = vld [vmem:[#allocation9 + $0x168] sm:$0xf0]  ;;  %v2499_v52 = vld [vmem:[#allocation9 + $0x1e4] sm:$0xf] }
  0xb8   : > { %1311 = vmatpush.bf16.msra.mxu1 %v2160_v21  ;;  %v2164_v21 = vor.u32 %v2467_v19, %v2161_v20  ;;  %v2490_v19 = vld [vmem:[#allocation9 + $0x194] sm:$0xf0]  ;;  %v2457_v20 = vld [vmem:[#allocation9 + $0x94] sm:$0xf]  ;;  %v2217_v42 = vld [vmem:[#allocation9 + $0x158] sm:$0xf0] }
  0xb9   : > { %1325 = vmatpush.bf16.msra.mxu2 %v2224_v62  ;;  %v2441_v62 = vld [vmem:[#allocation9 + $0x14] sm:$0xf]  ;;  %v2289_v53 = vld [vmem:[#allocation9 + $0x1e8] sm:$0xf0]  ;;  %v2201_v6 = vld [vmem:[#allocation9 + $0x138] sm:$0xf0] }
  0xba   : > { %1339 = vmatpush.bf16.msra.mxu3 %v2288_v18  ;;  %v2060_v0 = vor.u32 %v2441_v62, %v2057_v63  ;;  %v2247_v18 = vld [vmem:[#allocation9 + $0x190] sm:$0xf]  ;;  %v2495_v12 = vld [vmem:[#allocation9 + $0x1c4] sm:$0xf] }
  0xbb   : > { %1298 = vmatpush.bf16.msra.mxu0 %v2088_v24  ;;  %v2447_v24 = vld [vmem:[#allocation9 + $0x44] sm:$0xf]  ;;  %v2248_v23 = vor.u32 %v2490_v19, %v2247_v18 }
  0xbc   : > { %1312 = vmatpush.bf16.msra.mxu1 %v2152_v27  ;;  %v2084_v27 = vor.u32 %v2447_v24, %v2081_v26  ;;  %v2121_v24 = vld [vmem:[#allocation9 + $0x98] sm:$0xf0] }
  0xbd   : > { %1326 = vmatpush.bf16.msra.mxu2 %v2216_v13  ;;  %v2485_v13 = vld [vmem:[#allocation9 + $0x174] sm:$0xf]  ;;  %v2124_v26 = vor.u32 %v2457_v20, %v2121_v24 }
  0xbe   : > { %1340 = vmatpush.bf16.msra.mxu3 %v2280_v31  ;;  %v2236_v17 = vor.u32 %v2485_v13, %v2233_v14  ;;  %v2239_v31 = vld [vmem:[#allocation9 + $0x180] sm:$0xf]  ;;  %v2273_v13 = vld [vmem:[#allocation9 + $0x1c8] sm:$0xf0] }
  0xbf   : > { %1299 = vmatpush.bf16.msra.mxu0 %v2080_v30  ;;  %v2465_v30 = vld [vmem:[#allocation9 + $0xd4] sm:$0xf] }
  0xc0   : > { %1313 = vmatpush.bf16.msra.mxu1 %v2144_v33  ;;  %v2156_v33 = vor.u32 %v2465_v30, %v2153_v32  ;;  %v2488_v32 = vld [vmem:[#allocation9 + $0x184] sm:$0xf0] }
  0xc1   : > { %1327 = vmatpush.bf16.msra.mxu2 %v2208_v25  ;;  %v3246_v25 = vld [vmem:[#allocation12 + $0x1] ss:$8 sm:$0xf]  ;;  %v2240_v51 = vor.u32 %v2488_v32, %v2239_v31  ;;  %v2257_v31 = vld [vmem:[#allocation9 + $0x1a8] sm:$0xf0] }
  0xc2   : > { %v877_v34 = vperm.slane %v3246_v25, 0  ;;  %v2471_v32 = vld [vmem:[#allocation9 + $0x104] sm:$0xf] }
  0xc3   : > { %1300 = vmatpush.bf16.msra.mxu0 %v2072_v35  ;;  %v2445_v35 = vld [vmem:[#allocation9 + $0x34] sm:$0xf] }
  0xc4   : > { %1314 = vmatpush.bf16.msra.mxu1 %v2136_v37  ;;  %v2076_v37 = vor.u32 %v2445_v35, %v2073_v36  ;;  %v2455_v35 = vld [vmem:[#allocation9 + $0x84] sm:$0xf] }
  0xc5   : > { %1328 = vmatpush.bf16.msra.mxu2 %v2200_v55  ;;  %v2113_v55 = vld [vmem:[#allocation9 + $0x88] sm:$0xf0] }
  0xc6   : > { %v2116_v36 = vor.u32 %v2455_v35, %v2113_v55  ;;  %v2489_v35 = vld [vmem:[#allocation9 + $0x194] sm:$0xf]  ;;  %v2249_v55 = vld [vmem:[#allocation9 + $0x198] sm:$0xf0] }
  0xc7   : > { %1301 = vmatpush.bf16.msra.mxu0 %v2064_v38  ;;  %v2271_v38 = vld [vmem:[#allocation9 + $0x1c0] sm:$0xf] }
  0xc8   : > { %1315 = vmatpush.bf16.msra.mxu1 %v2128_v44  ;;  %v2191_v44 = vld [vmem:[#allocation9 + $0x120] sm:$0xf] }
  0xcb   : > { %1302 = vmatpush.bf16.msra.mxu0 %v2056_v41  ;;  %v2272_v41 = vor.u32 %v2496_v39, %v2271_v38  ;;  %v2297_v38 = vld [vmem:[#allocation9 + $0x1f8] sm:$0xf0] }
  0xcc   : > { %1316 = vmatpush.bf16.msra.mxu1 %v2120_v58  ;;  %v2183_v58 = vld [vmem:[#allocation9 + $0x110] sm:$0xf] }
  0xcd   : > { %1341 = vmatpush.bf16.msra.mxu3 %v2272_v41  ;;  %v2184_v61 = vor.u32 %v2474_v59, %v2183_v58  ;;  %v2481_v41 = vld [vmem:[#allocation9 + $0x154] sm:$0xf]  ;;  %v2209_v58 = vld [vmem:[#allocation9 + $0x148] sm:$0xf0] }
  0xce   : > { %v2220_v46 = vor.u32 %v2481_v41, %v2217_v42  ;;  %v2241_v41 = vld [vmem:[#allocation9 + $0x188] sm:$0xf0] }
  0xcf   : > { %1303 = vmatpush.bf16.msra.mxu0 %v2048_v47  ;;  %v2192_v47 = vor.u32 %v2476_v45, %v2191_v44 }
  0xd0   : > { %1317 = vmatpush.bf16.msra.mxu1 %v2112_v5 }
  0xd1   : > { %1329 = vmatpush.bf16.msra.mxu2 %v2192_v47  ;;  %1342 = vmatpush.bf16.msra.mxu3 %v2264_v56 }
  0xd3   : > { %1352 = vmatpush.bf16.msrb.mxu0 %v2108_v54  ;;  %v2461_v54 = vld [vmem:[#allocation9 + $0xb4] sm:$0xf] }
  0xd4   : > { %1366 = vmatpush.bf16.msrb.mxu1 %v2172_v9  ;;  %v2140_v60 = vor.u32 %v2461_v54, %v2137_v57  ;;  %v2472_v9 = vld [vmem:[#allocation9 + $0x104] sm:$0xf0]  ;;  %v2292_v54 = vor.u32 %v2499_v52, %v2289_v53  ;;  %v2479_v57 = vld [vmem:[#allocation9 + $0x144] sm:$0xf] }
  0xd5   : > { %1330 = vmatpush.bf16.msra.mxu2 %v2184_v61  ;;  %v2176_v11 = vor.u32 %v2472_v9, %v2175_v8  ;;  %v2212_v61 = vor.u32 %v2479_v57, %v2209_v58 }
  0xd7   : > { %1353 = vmatpush.bf16.msrb.mxu0 %v2100_v1  ;;  %v2255_v1 = vld [vmem:[#allocation9 + $0x1a0] sm:$0xf] }
  0xd8   : > { %1367 = vmatpush.bf16.msrb.mxu1 %v2164_v21  ;;  %v2256_v5 = vor.u32 %v2492_v2, %v2255_v1  ;;  %v2281_v1 = vld [vmem:[#allocation9 + $0x1d8] sm:$0xf0] }
  0xd9   : > { %1331 = vmatpush.bf16.msra.mxu2 %v2176_v11 }
  0xda   : > { %1343 = vmatpush.bf16.msra.mxu3 %v2256_v5  ;;  %v2477_v5 = vld [vmem:[#allocation9 + $0x134] sm:$0xf] }
  0xdb   : > { %1354 = vmatpush.bf16.msrb.mxu0 %v2092_v15  ;;  %v2204_v11 = vor.u32 %v2477_v5, %v2201_v6 }
  0xdc   : > { %1368 = vmatpush.bf16.msrb.mxu1 %v2156_v33 }
  0xdd   : > { %1380 = vmatpush.bf16.msrb.mxu2 %v2236_v17  ;;  %v2193_v17 = vld [vmem:[#allocation9 + $0x128] sm:$0xf0] }
  0xde   : > { %1344 = vmatpush.bf16.msra.mxu3 %v2248_v23 }
  0xdf   : > { %1355 = vmatpush.bf16.msrb.mxu0 %v2084_v27  ;;  %v2483_v27 = vld [vmem:[#allocation9 + $0x164] sm:$0xf] }
  0xe0   : > { %1369 = vmatpush.bf16.msrb.mxu1 %v2148_v43  ;;  %v2228_v30 = vor.u32 %v2483_v27, %v2225_v28  ;;  %v2185_v27 = vld [vmem:[#allocation9 + $0x118] sm:$0xf0]  ;;  %v2491_v28 = vld [vmem:[#allocation9 + $0x1a4] sm:$0xf] }
  0xe2   : > { %1381 = vmatpush.bf16.msrb.mxu2 %v2228_v30  ;;  %1345 = vmatpush.bf16.msra.mxu3 %v2240_v51 }
  0xe3   : > { %1356 = vmatpush.bf16.msrb.mxu0 %v2076_v37  ;;  %v2501_v37 = vld [vmem:[#allocation9 + $0x1f4] sm:$0xf] }
  0xe4   : > { %1370 = vmatpush.bf16.msrb.mxu1 %v2140_v60  ;;  %v2300_v40 = vor.u32 %v2501_v37, %v2297_v38  ;;  %v878_v60 = vperm.slane %v3246_v25, 1  ;;  %v2252_v38 = vor.u32 %v2489_v35, %v2249_v55 }
  0xe6   : > { %1394 = vmatpush.bf16.msrb.mxu3 %v2300_v40  ;;  %1382 = vmatpush.bf16.msrb.mxu2 %v2220_v46  ;;  %v2487_v40 = vld [vmem:[#allocation9 + $0x184] sm:$0xf]  ;;  %v879_v46 = vperm.slane %v3246_v25, 2 }
  0xe7   : > { %1357 = vmatpush.bf16.msrb.mxu0 %v2068_v50 }
  0xe8   : > { %1371 = vmatpush.bf16.msrb.mxu1 %v2132_v7 }
  0xea   : > { %1395 = vmatpush.bf16.msrb.mxu3 %v2292_v54  ;;  %1383 = vmatpush.bf16.msrb.mxu2 %v2212_v61 }
  0xeb   : > { %1358 = vmatpush.bf16.msrb.mxu0 %v2060_v0  ;;  %v2497_v0 = vld [vmem:[#allocation9 + $0x1d4] sm:$0xf] }
  0xec   : > { %1372 = vmatpush.bf16.msrb.mxu1 %v2124_v26  ;;  %v2284_v2 = vor.u32 %v2497_v0, %v2281_v1  ;;  %v2473_v26 = vld [vmem:[#allocation9 + $0x114] sm:$0xf] }
  0xed   : > { %v2188_v30 = vor.u32 %v2473_v26, %v2185_v27 }
  0xee   : > { %1396 = vmatpush.bf16.msrb.mxu3 %v2284_v2  ;;  %1384 = vmatpush.bf16.msrb.mxu2 %v2204_v11  ;;  %v2506_v11 = vld [vmem:[#allocation10 + $0x18] sm:$0xff] }
  0xef   : > { %1359 = vmatpush.bf16.msrb.mxu0 %v2052_v16  ;;  %v2475_v16 = vld [vmem:[#allocation9 + $0x124] sm:$0xf] }
  0xf0   : > { %1373 = vmatpush.bf16.msrb.mxu1 %v2116_v36  ;;  %v2196_v20 = vor.u32 %v2475_v16, %v2193_v17  ;;  %v428_v36 = vperm.slane %v3243_v49, 2  ;;  %v2516_v16 = vld [vmem:[#allocation10 + $0x68] sm:$0xff]  ;;  %v2503_v17 = vld [vmem:[#allocation10] sm:$0xff] }
  0xf2   : > { %1385 = vmatpush.bf16.msrb.mxu2 %v2196_v20 }
  0xf6   : > { %1386 = vmatpush.bf16.msrb.mxu2 %v2188_v30 }
 0x10f   : > { %v763_v15 = vpop.f32.mrf.mxu0 }
 0x110   : > { %v764_v21 = vadd.f32 %v763_v15, %v426_v4  ;;  %v2276_v15 = vor.u32 %v2495_v12, %v2273_v13  ;;  %v2518_v12 = vld [vmem:[#allocation10 + $0x78] sm:$0xff]  ;;  %v2505_v13 = vld [vmem:[#allocation10 + $0x10] sm:$0xff] }
 0x112   : > { %v777_v22 = vpop.f32.mrf.mxu1  ;;  %1397 = vmatpush.bf16.msrb.mxu3 %v2276_v15  ;;  %v2504_v15 = vld [vmem:[#allocation10 + $0x8] sm:$0xff] }
 0x113   : > { %v778_v33 = vadd.f32 %v777_v22, %v764_v21  ;;  %v2493_v21 = vld [vmem:[#allocation9 + $0x1b4] sm:$0xf]  ;;  %v2265_v22 = vld [vmem:[#allocation9 + $0x1b8] sm:$0xf0] }
 0x114   : > { %v2268_v24 = vor.u32 %v2493_v21, %v2265_v22  ;;  %v2513_v22 = vld [vmem:[#allocation10 + $0x50] sm:$0xff] }
 0x115   : > { %v885_v47 = vmul.f32 %v877_v34, %v778_v33  ;;  %vm868_vm0 = vcmp.gt.f32.partialorder %v778_v33, 0.0 }
 0x116   : > { %v791_v39 = vpop.f32.mrf.mxu2  ;;  %1398 = vmatpush.bf16.msrb.mxu3 %v2268_v24  ;;  %v2512_v24 = vld [vmem:[#allocation10 + $0x48] sm:$0xff] }
 0x117   : > { %v792_v43 = vadd.f32 %v791_v39, %v427_v29  ;;  %v765_v44 = vpop.f32.mrf.mxu0  ;;  %v893_v62 = vsel %vm868_vm0, %v778_v33, %v885_v47  ;;  %v2177_v33 = vld [vmem:[#allocation9 + $0x108] sm:$0xf0] }
 0x118   : > { %v766_v48 = vadd.f32 %v765_v44, %v426_v4  ;;  %v2180_v51 = vor.u32 %v2471_v32, %v2177_v33  ;;  %v429_v44 = vperm.slane %v3243_v49, 3 }
 0x119   : > { %v805_v45 = vpop.f32.mrf.mxu3 }
 0x11a   : > { %v779_v50 = vpop.f32.mrf.mxu1  ;;  %v806_v59 = vadd.f32 %v805_v45, %v792_v43  ;;  %1387 = vmatpush.bf16.msrb.mxu2 %v2180_v51  ;;  %v2244_v43 = vor.u32 %v2487_v40, %v2241_v41  ;;  %v1409_v51 = vld [vmem:[#allocation12 + $0x3] ss:$8 sm:$0x3] }
 0x11b   : > { %v780_v56 = vadd.f32 %v779_v50, %v766_v48 }
 0x11c   : > { %v886_v7 = vmul.f32 %v878_v60, %v806_v59  ;;  %vm869_vm2 = vcmp.gt.f32.partialorder %v806_v59, 0.0 }
 0x11d   : > { %vm872_vm1 = vcmp.gt.f32.partialorder %v780_v56, 0.0  ;;  %v889_v63 = vmul.f32 %v877_v34, %v780_v56  ;;  %v2260_v34 = vor.u32 %v2491_v28, %v2257_v31 }
 0x11e   : > { %v793_v4 = vpop.f32.mrf.mxu2  ;;  %v894_v18 = vsel %vm869_vm2, %v806_v59, %v886_v7 }
 0x11f   : > { %v897_v3 = vsel %vm872_vm1, %v780_v56, %v889_v63  ;;  %v794_v9 = vadd.f32 %v793_v4, %v427_v29  ;;  %1399 = vmatpush.bf16.msrb.mxu3 %v2260_v34 }
 0x120   : > { %v901_v8 = vpack.c.bf16 %v897_v3, %v893_v62 }
 0x121   : > { %v807_v10 = vpop.f32.mrf.mxu3 }
 0x122   : > { %v808_v14 = vadd.f32 %v807_v10, %v794_v9  ;;  %1304 = vmatmul.bf16.vlgmr.msra.gmra.mxu0 %v901_v8  ;;  %v2508_v9 = vld [vmem:[#allocation10 + $0x28] sm:$0xff]  ;;  %v2507_v10 = vld [vmem:[#allocation10 + $0x20] sm:$0xff] }
 0x123   : > { %1400 = vmatpush.bf16.msrb.mxu3 %v2252_v38  ;;  %v1415_v38 = vperm.slane %v1409_v51, 0 }
 0x124   : > { %vm873_vm3 = vcmp.gt.f32.partialorder %v808_v14, 0.0  ;;  %v890_v19 = vmul.f32 %v878_v60, %v808_v14  ;;  %v880_v60 = vperm.slane %v3246_v25, 3  ;;  %v2509_v25 = vld [vmem:[#allocation10 + $0x30] sm:$0xff] }
 0x126   : > { %v898_v23 = vsel %vm873_vm3, %v808_v14, %v890_v19  ;;  %v2517_v14 = vld [vmem:[#allocation10 + $0x70] sm:$0xff]  ;;  %v2514_v19 = vld [vmem:[#allocation10 + $0x58] sm:$0xff] }
 0x127   : > { %v902_v29 = vpack.c.bf16 %v898_v23, %v894_v18  ;;  %1401 = vmatpush.bf16.msrb.mxu3 %v2244_v43  ;;  %v2515_v18 = vld [vmem:[#allocation10 + $0x60] sm:$0xff] }
 0x128   : > { %v970_v23 = vld [vmem:[#allocation12 + $0x2] ss:$8 sm:$0x3] }
 0x129   : > { %1318 = vmatmul.bf16.vlgmr.msra.gmra.mxu1 %v902_v29  ;;  %v972_v26 = vperm.slane %v970_v23, 0 }
 0x12a   : > { %1572 = vmatpush.bf16.msra.mxu1 %v2518_v12 }
 0x12e   : > { %1573 = vmatpush.bf16.msra.mxu1 %v2517_v14  ;;  %v1599_v14 = vstv %s2366_s16 }
 0x12f   : > { %v819_v37 = vpop.f32.mrf.mxu0 }
 0x130   : > { %v833_v39 = vpop.f32.mrf.mxu1  ;;  %v820_v42 = vadd.f32 %v819_v37, %v428_v36 }
 0x132   : > { %1360 = vmatmul.bf16.vlgmr.msrb.gmra.mxu0 %v901_v8  ;;  %v834_v45 = vadd.f32 %v833_v39, %v820_v42  ;;  %v2510_v8 = vld [vmem:[#allocation10 + $0x38] sm:$0xff]  ;;  %1574 = vmatpush.bf16.msra.mxu1 %v2516_v16 }
 0x133   : > { %1558 = vmatpush.bf16.msra.mxu0 %v2510_v8 }
 0x134   : > { %v887_v56 = vmul.f32 %v879_v46, %v834_v45  ;;  %vm870_vm4 = vcmp.gt.f32.partialorder %v834_v45, 0.0 }
 0x136   : > { %v895_v49 = vsel %vm870_vm4, %v834_v45, %v887_v56  ;;  %1575 = vmatpush.bf16.msra.mxu1 %v2515_v18 }
 0x137   : > { %v847_v47 = vpop.f32.mrf.mxu2  ;;  %v821_v50 = vpop.f32.mrf.mxu0  ;;  %1559 = vmatpush.bf16.msra.mxu0 %v2509_v25  ;;  %v1596_v25 = vlaneseq }
 0x138   : > { %v861_v48 = vpop.f32.mrf.mxu3  ;;  %v822_v52 = vadd.f32 %v821_v50, %v428_v36  ;;  %v848_v53 = vadd.f32 %v847_v47, %v429_v44  ;;  %v835_v54 = vpop.f32.mrf.mxu1 }
 0x139   : > { %1374 = vmatmul.bf16.vlgmr.msrb.gmra.mxu1 %v902_v29  ;;  %v2511_v29 = vld [vmem:[#allocation10 + $0x40] sm:$0xff]  ;;  %v1597_v12 = vshrl.u32 %v1596_v25, 7 }
 0x13a   : > { %v836_v57 = vadd.f32 %v835_v54, %v822_v52  ;;  %v862_v59 = vadd.f32 %v861_v48, %v848_v53  ;;  %1576 = vmatpush.bf16.msra.mxu1 %v2514_v19 }
 0x13b   : > { %1560 = vmatpush.bf16.msra.mxu0 %v2508_v9  ;;  %v1461_v9 = vld [vmem:[#allocation12 + $0x4] ss:$0 sm:$0xff]  ;;  %v1600_v18 = vadd.s32 %v1599_v14, %v1597_v12 }
 0x13c   : > { %vm874_vm5 = vcmp.gt.f32.partialorder %v836_v57, 0.0  ;;  %v891_v58 = vmul.f32 %v879_v46, %v836_v57  ;;  %v888_v2 = vmul.f32 %v880_v60, %v862_v59  ;;  %vm871_vm6 = vcmp.gt.f32.partialorder %v862_v59, 0.0 }
 0x13d   : > { %v973_v46 = vperm.slane %v970_v23, 1 }
 0x13e   : > { %v899_v61 = vsel %vm874_vm5, %v836_v57, %v891_v58  ;;  %v896_v5 = vsel %vm871_vm6, %v862_v59, %v888_v2  ;;  %1577 = vmatpush.bf16.msra.mxu1 %v2513_v22 }
 0x13f   : > { %v849_v62 = vpop.f32.mrf.mxu2  ;;  %v903_v63 = vpack.c.bf16 %v899_v61, %v895_v49  ;;  %1561 = vmatpush.bf16.msra.mxu0 %v2507_v10 }
 0x140   : > { %v850_v0 = vadd.f32 %v849_v62, %v429_v44  ;;  %v863_v1 = vpop.f32.mrf.mxu3 }
 0x141   : > { %1332 = vmatmul.bf16.vlgmr.msra.gmra.mxu2 %v903_v63 }
 0x142   : > { %v864_v3 = vadd.f32 %v863_v1, %v850_v0  ;;  %1578 = vmatpush.bf16.msra.mxu1 %v2512_v24 }
 0x143   : > { %1562 = vmatpush.bf16.msra.mxu0 %v2506_v11 }
 0x144   : > { %vm875_vm7 = vcmp.gt.f32.partialorder %v864_v3, 0.0  ;;  %v892_v4 = vmul.f32 %v880_v60, %v864_v3 }
 0x146   : > { %v900_v6 = vsel %vm875_vm7, %v864_v3, %v892_v4  ;;  %1579 = vmatpush.bf16.msra.mxu1 %v2511_v29 }
 0x147   : > { %v904_v7 = vpack.c.bf16 %v900_v6, %v896_v5  ;;  %1563 = vmatpush.bf16.msra.mxu0 %v2505_v13 }
 0x149   : > { %1346 = vmatmul.bf16.vlgmr.msra.gmra.mxu3 %v904_v7 }
 0x14b   : > { %1564 = vmatpush.bf16.msra.mxu0 %v2504_v15  ;;  %v1598_v15 = vadd.s32 8, %v1597_v12 }
 0x14d   : > { %v1601_v22 = vadd.s32 %v1599_v14, %v1598_v15 }
 0x14f   : > { %1565 = vmatpush.bf16.msra.mxu0 %v2503_v17  ;;  %v1586_v17 = vld [vmem:[#allocation12 + $0x5] ss:$0 sm:$0xff] }
 0x151   : > { %1388 = vmatmul.bf16.vlgmr.msrb.gmra.mxu2 %v903_v63  ;;  %v1416_v63 = vperm.slane %v1409_v51, 1 }
 0x159   : > { %1402 = vmatmul.bf16.vlgmr.msrb.gmra.mxu3 %v904_v7 }
 0x19f   : > { %v1305_v20 = vpop.f32.mrf.mxu0 }
 0x1a0   : > { %v1306_v30 = vadd.f32 %v1305_v20, %v972_v26 }
 0x1a6   : > { %v1319_v21 = vpop.f32.mrf.mxu1 }
 0x1a7   : > { %v1307_v28 = vpop.f32.mrf.mxu0  ;;  %v1320_v33 = vadd.f32 %v1319_v21, %v1306_v30  ;;  %v1603_v21 = vstv %s1602_s15 }
 0x1a8   : > { %v1308_v35 = vadd.f32 %v1307_v28, %v972_v26  ;;  %vm1604_vm13 = vcmp.lt.s32.totalorder %v1600_v18, %v1603_v21  ;;  %vm1605_vm15 = vcmp.lt.s32.totalorder %v1601_v22, %v1603_v21 }
 0x1ae   : > { %v1321_v31 = vpop.f32.mrf.mxu1 }
 0x1af   : > { %v1322_v36 = vadd.f32 %v1321_v31, %v1308_v35  ;;  %v1361_v39 = vpop.f32.mrf.mxu0 }
 0x1b0   : > { %v1362_v53 = vadd.f32 %v1361_v39, %v973_v46 }
 0x1b6   : > { %v1375_v41 = vpop.f32.mrf.mxu1 }
 0x1b7   : > { %v1363_v54 = vpop.f32.mrf.mxu0  ;;  %v1376_v57 = vadd.f32 %v1375_v41, %v1362_v53 }
 0x1b8   : > { %v1364_v59 = vadd.f32 %v1363_v54, %v973_v46 }
 0x1be   : > { %v1377_v58 = vpop.f32.mrf.mxu1 }
 0x1bf   : > { %v1378_v61 = vadd.f32 %v1377_v58, %v1364_v59 }
 0x1c4   : > { %v1333_v27 = vpop.f32.mrf.mxu2 }
 0x1c5   : > { %v1334_v55 = vadd.f32 %v1333_v27, %v1320_v33 }
 0x1cc   : > { %v1347_v32 = vpop.f32.mrf.mxu3  ;;  %v1335_v34 = vpop.f32.mrf.mxu2 }
 0x1cd   : > { %v1348_v37 = vadd.f32 %v1347_v32, %v1334_v55  ;;  %v1336_v40 = vadd.f32 %v1335_v34, %v1322_v36 }
 0x1cf   : > { %v1419_v43 = vmul.f32 %v1415_v38, %v1348_v37  ;;  %vm1410_vm8 = vcmp.gt.f32.partialorder %v1348_v37, 0.0 }
 0x1d1   : > { %v1423_v48 = vsel %vm1410_vm8, %v1348_v37, %v1419_v43 }
 0x1d4   : > { %v1349_v42 = vpop.f32.mrf.mxu3  ;;  %v1389_v45 = vpop.f32.mrf.mxu2 }
 0x1d5   : > { %v1350_v44 = vadd.f32 %v1349_v42, %v1336_v40  ;;  %v1390_v60 = vadd.f32 %v1389_v45, %v1376_v57 }
 0x1d7   : > { %vm1412_vm9 = vcmp.gt.f32.partialorder %v1350_v44, 0.0  ;;  %v1421_v47 = vmul.f32 %v1415_v38, %v1350_v44 }
 0x1d9   : > { %v1425_v50 = vsel %vm1412_vm9, %v1350_v44, %v1421_v47 }
 0x1da   : > { %v1427_v52 = vpack.c.bf16 %v1425_v50, %v1423_v48 }
 0x1dc   : > { %v1403_v56 = vpop.f32.mrf.mxu3  ;;  %1566 = vmatmul.bf16.vlgmr.msra.gmra.mxu0 %v1427_v52  ;;  %v1391_v49 = vpop.f32.mrf.mxu2 }
 0x1dd   : > { %v1404_v62 = vadd.f32 %v1403_v56, %v1390_v60  ;;  %v1392_v0 = vadd.f32 %v1391_v49, %v1378_v61 }
 0x1df   : > { %v1420_v2 = vmul.f32 %v1416_v63, %v1404_v62  ;;  %vm1411_vm10 = vcmp.gt.f32.partialorder %v1404_v62, 0.0 }
 0x1e1   : > { %v1424_v5 = vsel %vm1411_vm10, %v1404_v62, %v1420_v2 }
 0x1e4   : > { %v1405_v1 = vpop.f32.mrf.mxu3 }
 0x1e5   : > { %v1406_v3 = vadd.f32 %v1405_v1, %v1392_v0 }
 0x1e7   : > { %vm1413_vm11 = vcmp.gt.f32.partialorder %v1406_v3, 0.0  ;;  %v1422_v4 = vmul.f32 %v1416_v63, %v1406_v3 }
 0x1e9   : > { %v1426_v6 = vsel %vm1413_vm11, %v1406_v3, %v1422_v4 }
 0x1ea   : > { %v1428_v7 = vpack.c.bf16 %v1426_v6, %v1424_v5 }
 0x1ec   : > { %1580 = vmatmul.bf16.vlgmr.msra.gmra.mxu1 %v1428_v7 }
 0x259   : > { %v1567_v8 = vpop.f32.mrf.mxu0 }
 0x25a   : > { %v1568_v11 = vadd.f32 %v1567_v8, %v1461_v9 }
 0x261   : > { %v1569_v16 = vpop.f32.mrf.mxu0 }
 0x262   : > { %v1570_v19 = vadd.f32 %v1569_v16, %v1461_v9 }
 0x269   : > { %v1581_v10 = vpop.f32.mrf.mxu1 }
 0x26a   : > { %v1582_v13 = vadd.f32 %v1581_v10, %v1568_v11 }
 0x26c   : > { %v1589_v20 = vmul.f32 %v1586_v17, %v1582_v13  ;;  %vm1587_vm12 = vcmp.gt.f32.partialorder %v1582_v13, 0.0 }
 0x26e   : > { %v1591_v26 = vsel %vm1587_vm12, %v1582_v13, %v1589_v20 }
 0x26f   : > { %v1610_v29 = vsel %vm1604_vm13, %v1591_v26, -inf }
 0x271   : > { %v1583_v23 = vpop.f32.mrf.mxu1 }
 0x272   : > { %v1584_v24 = vadd.f32 %v1583_v23, %v1570_v19 }
 0x274   : > { %vm1588_vm14 = vcmp.gt.f32.partialorder %v1584_v24, 0.0  ;;  %v1590_v27 = vmul.f32 %v1586_v17, %v1584_v24 }
 0x276   : > { %v1592_v28 = vsel %vm1588_vm14, %v1584_v24, %v1590_v27 }
 0x277   : > { %v1611_v30 = vsel %vm1605_vm15, %v1592_v28, -inf }
 0x278   : > { %v1612_v31 = vmax.f32 %v1610_v29, %v1611_v30 }
 0x27a   : > { %v1613_v32 = vrot.slane %v1612_v31, 4 }
 0x27c   : > { %v1614_v33 = vmax.f32 %v1612_v31, %v1613_v32 }
 0x27e   : > { %v1615_v34 = vrot.slane %v1614_v33, 2 }
 0x280   : > { %v1616_v51 = vmax.f32 %v1614_v33, %v1615_v34  ;;  %1622 = sbr.rel (%p2367_p7) target bundleno = 647 (0x287), region = 64 }
 0x282   : > { %v1617_v35 = vrot.slane %v1616_v51, 1 }
 0x284   : > { %v1618_v55 = vmax.f32 %v1616_v51, %v1617_v35 }
 0x285   : > { %v2969_v36 = vmov -inf  }
 0x286   : > { %1623 = vst [vmem:[%s343_s26] sm:$0xff] %v2969_v36 }
 0x287 PF: > { %s2369_s25 = sshll.u32 %s2942_s0, 3  ;;  %s3353_s12 = sld [smem:[#allocation30_spill]] }
 0x288   : > { %s1640_s11 = sshll.u32 %s343_s26, 4  ;;  %s1628_s29 = scalar_lea.sflag [#allocation6], %s341_s9  ;;  %s1641_s11 = int_to_ptr.vmem [resolvable:$true] %s1640_s11 }
 0x28d   : > { %v1624_v37 = vld [vmem:[%s343_s26] sm:$0xff]  ;;  %s1638_s20 = scalar_lea.hbm %s3353_s12, %s2369_s25  ;;  %s2844_s22 = scalar_lea.hbm %s3353_s12, 16 }
 0x28e   : > { %v1625_v38 = vmax.f32 %v1624_v37, %v1618_v55  ;;  %s1642_s19 = sshll.u32 %s1638_s20, 4  ;;  %s1643_s19 = int_to_ptr.hbm [resolvable:$true] %s1642_s19 }
 0x28f   : > { %s2838_s10 = sshra.s32 %s1643_s19, 4  ;;  %s2839_s10 = int_to_ptr.hbm [resolvable:$true] %s2838_s10 }
 0x290   : > { %1626 = vst [vmem:[%s343_s26] sm:$0xff] %v1625_v38  ;;  %s2840_s30 = scalar_lea.hbm %s2839_s10, 8  ;;  %p2845_p4 = scmp.lt.s32.totalorder %s2839_s10, %s3353_s12 }
 0x291   : > { %p2841_p9 = scmp.ne.s32.totalorder %s2839_s10, %s2840_s30  ;;  %p2846_p6 = scmp.lt.s32.totalorder %s2844_s22, %s2840_s30 }
 0x293   : > { %p2842_p8 = pnand %p2841_p9, %p3118_p2  ;;  %p2847_p10 = por %p2846_p6, %p2845_p4 }
 0x295   : > { %p2843_p5 = pneg %p2842_p8 }
 0x297   : > { %p2848_p11 = pnand %p2847_p10, %p2843_p5 }
 0x299   : > { %2851 = shalt.err (!%p2848_p11)
}
 0x29a   : > { %2536 = dma.vmem_to_hbm [thread:$0]  (%p3118_p2), %s1641_s11, 128, %s1643_s19, %s1628_s29  }
 0x29b PF: > { %s3354_s4 = sld [smem:[#allocation18_spill]]  ;;  %p2563_p12 = scmp.ge.s32.totalorder %s2954_s8, 2 }
 0x29d   : > { %p2552_p13 = pnand %p2563_p12, %p3122_p3 }
 0x29f   : > { %p2553_p0 = pneg %p2552_p13 }
 0x2a1   : > { %s1654_s23 = sand.u32 1, %s3354_s4  }
 0x2a2   : > { %s1655_s18 = scalar_lea.sflag [#allocation6], %s1654_s23 }
 0x2a3   : > { %2909 = dma.done.wait (%p2553_p0), %s1655_s18, 128  }
 0x2a4   : > { %2911 = vsyncadd (%p2553_p0), %s1655_s18, 4294967168  ;;  %s25_s8 = sadd.s32 1, %s2954_s8   ;;  %s3356_s21 = sld [smem:[#allocation19_spill]] }
 0x2a5   : > { %p22_p1 = scmp.ge.s32.totalorder %s25_s8, 6   ;;  %s3357_s25 = sld [smem:[#allocation24_spill]] }
 0x2a6   : > { %s3358_s15 = sld [smem:[#allocation25_spill]]  ;;  %s3363_s23 = smov %s2918_s24 }
 0x2a7   : > { %s3359_s29 = sld [smem:[#allocation20_spill]]  ;;  %s3365_s26 = smov %s2930_s27 }
 0x2a8   : > { %s3360_s0 = sld [smem:[#allocation21_spill]]  ;;  %s3366_s27 = smov %s2934_s28 }
 0x2a9   : > { %s3361_s30 = sld [smem:[#allocation22_spill]]  ;;  %24 = sbr.rel (!%p22_p1) target bundleno = 16 (0x10), region = 108 }
 0x2aa   : > { %s3362_s7 = sld [smem:[#allocation23_spill]]  ;;  %s3364_s24 = smov %s3356_s21 }
 0x2ac   : > { %s3367_s28 = smov %s3358_s15 }
 0x2ae   :  { %1661 = vsyncpa [#allocation5], 1 }
 0x2af   :  { %1663 = vsyncpa [#allocation5 + $0x1], 1 }
 0x2b0   :  { %1664 = vsyncpa [#allocation8], 1 }
 0x2b1   :  { %1665 = vsyncpa [#allocation11], 1 }
 0x2b2   :  { %1666 = vsyncpa [#allocation6], 1 }
 0x2b3   :  { %1668 = vsyncpa [#allocation6 + $0x1], 1 }

// kernel: tpu_custom_call.1
= control target key start
LH: loop header
LB: loop body
LE: loop exit
PB: predicated region body
PF: predicated region fallthrough
CT: control target
= control target key end

     0   :  { %s3312_s0 = inlined_call_operand.<no memory space> [shape: s32[1], index: 0, kind: input, shape index: {}]   ;;  %s3313_s1 = inlined_call_operand.hbm [shape: f32[40,256], index: 1, kind: input, shape index: {}]   ;;  %s3314_s2 = inlined_call_operand.hbm [shape: bf16[256,512], index: 2, kind: input, shape index: {}]   ;;  %s3315_s3 = inlined_call_operand.hbm [shape: bf16[512,256], index: 3, kind: input, shape index: {}]   ;;  %s3316_s4 = inlined_call_operand.hbm [shape: bf16[256,128], index: 4, kind: input, shape index: {}]   ;;  %s3317_s5 = inlined_call_operand.hbm [shape: f32[8,512], index: 5, kind: input, shape index: {}]   ;;  %s3318_s6 = inlined_call_operand.hbm [shape: f32[16,128], index: 6, kind: output, shape index: {}]  }
   0x1   :  { %3329 = sst [smem:[#allocation28_spill]] %s3314_s2 }
   0x2   :  { %3330 = sst [smem:[#allocation29_spill]] %s3316_s4 }
   0x3   :  { %3331 = sst [smem:[#allocation30_spill]] %s3318_s6 }
   0x4   :  { %11 = sst [smem:[#allocation3]] %s3312_s0 }
   0x5   :  { %12 = vsyncpa [#allocation5], 0 }
   0x6   :  { %14 = vsyncpa [#allocation5 + $0x1], 0 }
   0x7   :  { %15 = vsyncpa [#allocation8], 0 }
   0x8   :  { %16 = vsyncpa [#allocation11], 0 }
   0x9   :  { %17 = vsyncpa [#allocation6], 0 }
   0xa   :  { %19 = vsyncpa [#allocation6 + $0x1], 0  ;;  %s3008_s23 = smov 0   ;;  %s3010_s24 = smov 0  }
   0xb   :  { %s3012_s25 = smov 0   ;;  %s3014_s26 = smov 0  }
   0xc   :  { %s3016_s27 = smov 0   ;;  %s3018_s28 = smov 0  }
   0xd   :  { %s3020_s29 = smov 0   ;;  %s3022_s0 = smov 0  }
   0xe   :  { %s3024_s30 = smov 0   ;;  %s3026_s7 = smov 0  }
   0xf   :  { %s3028_s8 = smov 0  }
  0x10 LB: > { %3332 = sst [smem:[#allocation18_spill]] %s2914_s23  ;;  %s1762_s9 = sadd.s32 4294967295, %s2954_s8   ;;  %s2954_s8 = sphi %s3028_s8, %s25_s8   ;;  %s2950_s7 = sphi %s3026_s7, %s3362_s7   ;;  %s2946_s30 = sphi %s3024_s30, %s3361_s30   ;;  %s2942_s0 = sphi %s3022_s0, %s3360_s0   ;;  %s2938_s29 = sphi %s3020_s29, %s3359_s29   ;;  %s2934_s28 = sphi %s3018_s28, %s3367_s28   ;;  %s2930_s27 = sphi %s3016_s27, %s3366_s27   ;;  %s2926_s26 = sphi %s3014_s26, %s3365_s26   ;;  %s2922_s25 = sphi %s3012_s25, %s3357_s25   ;;  %s2918_s24 = sphi %s3010_s24, %s3364_s24   ;;  %s2914_s23 = sphi %s3008_s23, %s3363_s23  }
  0x11   : > { %3333 = sst [smem:[#allocation19_spill]] %s2922_s25  ;;  %s1763_s10 = sadd.s32 4294967294, %s2954_s8  }
  0x12   : > { %3334 = sst [smem:[#allocation20_spill]] %s2946_s30  ;;  %s34_s11 = sadd.s32 1, %s2946_s30 }
  0x13   : > { %3335 = sst [smem:[#allocation21_spill]] %s2950_s7  ;;  %s37_s12 = sadd.s32 1, %s2950_s7 }
  0x14   : > { %p35_p0 = scmp.ge.s32.totalorder %s34_s11, 2  ;;  %s1764_s13 = sshll.u32 %s2950_s7, 1 }
  0x15   : > { %s42_s14 = sadd.s32 %s2946_s30, %s1764_s13  ;;  %s52_s15 = sadd.s32 1, %s2934_s28 }
  0x16   : > { %s3369_s11 = smov (%p35_p0, %s34_s11), 0  ;;  %s3371_s12 = smov (!%p35_p0, %s37_s12), %s2950_s7 }
  0x17   : > { %3336 = sst [smem:[#allocation22_spill]] %s3369_s11  ;;  %p43_p1 = scmp.lt.s32.totalorder %s42_s14, 2 }
  0x18   : > { %p59_p2 = scmp.ne.s32.totalorder %s2934_s28, %s2930_s27  ;;  %p39_p3 = scmp.ge.s32.totalorder %s3371_s12, 2 }
  0x19   : > { %p60_p4 = scmp.eq.s32.totalorder %s2954_s8, 0  ;;  %s3373_s14 = smov (!%p43_p1, %s42_s14), 2 }
  0x1a   : > { %s3375_s12 = smov (%p39_p3, %s3371_s12), 0  ;;  %p65_p6 = scmp.ne.s32.totalorder %s2930_s27, %s2926_s26 }
  0x1b   : > { %3337 = sst [smem:[#allocation23_spill]] %s3375_s12  ;;  %p3080_p5 = por %p60_p4, %p59_p2 }
  0x1c   : > { %s1765_s17 = sshll.u32 %s3375_s12, 1  ;;  %p3089_p7 = scmp.eq.s32.totalorder %s1762_s9, 0 }
  0x1d   : > { %s46_s19 = sadd.s32 %s1765_s17, %s3369_s11  ;;  %s159_s20 = ssub.s32 %s2950_s7, %s3375_s12 }
  0x1e   : > { %p47_p8 = scmp.lt.s32.totalorder %s46_s19, 2  ;;  %p3098_p9 = por %p3089_p7, %p65_p6 }
  0x1f   : > { %p160_p10 = scmp.eq.s32.totalorder %s159_s20, 0  ;;  %s162_s22 = sadd.s32 1, %s2922_s25 }
  0x20   : > { %s3377_s19 = smov (!%p47_p8, %s46_s19), 2  ;;  %p172_p11 = scmp.ne.s32.totalorder %s2922_s25, %s2918_s24 }
  0x21   : > { %s3104_s26 = scalar_select %p160_p10, %s2922_s25, %s162_s22  }
  0x22   : > { %s49_s13 = ssub.s32 %s3373_s14, %s3377_s19  ;;  %p173_p13 = scmp.eq.s32.totalorder %s1762_s9, 3 }
  0x23   : > { %3341 = sst [smem:[#allocation24_spill]] %s3104_s26  ;;  %p50_p12 = scmp.eq.s32.totalorder %s49_s13, 0 }
  0x24   : > { %p178_p0 = scmp.ne.s32.totalorder %s2918_s24, %s2914_s23  ;;  %p179_p1 = scmp.eq.s32.totalorder %s1763_s10, 3 }
  0x25   : > { %s3116_s17 = scalar_select %p50_p12, %s2934_s28, %s52_s15  }
  0x26   : > { %p3118_p2 = por %p173_p13, %p172_p11  ;;  %p3122_p3 = por %p179_p1, %p178_p0 }
  0x27   : > { %3342 = sst [smem:[#allocation25_spill]] %s3116_s17  ;;  %p1766_p4 = scmp.ge.s32.totalorder %s2954_s8, 1 }
  0x28   : > { %s3343_s12 = scalar_select %p3118_p2, 1, 0 }
  0x29   : > { %s3345_s20 = scalar_select %p3122_p3, 1, 0 }
  0x2a   : > { %3344 = sst [smem:[#allocation26_spill]] %s3343_s12  ;;  %p186_p6 = scmp.lt.s32.totalorder %s2954_s8, 5 }
  0x2b   : > { %3346 = sst [smem:[#allocation27_spill]] %s3345_s20  ;;  %s2956_s10 = smov [#allocation7]  }
  0x2c   : > { %s3347_s2 = sld [smem:[#allocation28_spill]]  ;;  %p3131_p8 = pnand %p1766_p4, %p186_p6 }
  0x2d   : > { %s199_s15 = sshll.u32 %s2956_s10, 4  ;;  %s3350_s4 = sld [smem:[#allocation29_spill]]  ;;  %s200_s15 = int_to_ptr.vmem [resolvable:$true] %s199_s15 }
  0x2e   : > { %p2538_p10 = pneg %p3131_p8  ;;  %s2957_s22 = smov [#allocation10]  }
  0x2f   : > { %s2958_s17 = smov 256   ;;  %s2959_s26 = smov 16  }
  0x30   : > { %p3139_p11 = pnand %p2538_p10, %p3089_p7  ;;  %s211_s20 = sshll.u32 %s3315_s3, 4  ;;  %s212_s20 = int_to_ptr.hbm [resolvable:$true] %s211_s20 }
  0x31   : > { %s2960_s23 = smov 64   ;;  %s2961_s6 = smov 4  }
  0x32   : > { %s197_s13 = sshll.u32 %s3347_s2, 4  ;;  %s227_s2 = sshll.u32 %s2957_s22, 4  ;;  %s198_s13 = int_to_ptr.hbm [resolvable:$true] %s197_s13  ;;  %s228_s2 = int_to_ptr.vmem [resolvable:$true] %s227_s2 }
  0x33   : > { %s225_s19 = sshll.u32 %s3350_s4, 4  ;;  %s2962_s30 = smov [#allocation9]   ;;  %s226_s19 = int_to_ptr.hbm [resolvable:$true] %s225_s19 }
  0x34   : > { %2541 = dma.hbm_to_vmem [thread:$0]  (!%p3139_p11), %s198_s13, 8192, %s200_s15, [#allocation8], %s2958_s17, %s2958_s17, %s2959_s26  }
  0x35   : > { %2547 = dma.hbm_to_vmem [thread:$0]  (!%p3139_p11), %s226_s19, 2048, %s228_s2, [#allocation11], %s2960_s23, %s2960_s23, %s2961_s6  }
  0x36   : > { %s213_s7 = sshll.u32 %s2962_s30, 4  ;;  %s2963_s4 = smov 128   ;;  %s214_s7 = int_to_ptr.vmem [resolvable:$true] %s213_s7 }
  0x37   : > { %s2964_s22 = smov 8   ;;  %s240_s17 = sshll.u32 %s3317_s5, 4  ;;  %s241_s17 = int_to_ptr.hbm [resolvable:$true] %s240_s17 }
  0x38   : > { %2544 = dma.hbm_to_vmem [thread:$0]  (!%p3139_p11), %s212_s20, 8192, %s214_s7, [#allocation8], %s2963_s4, %s2963_s4, %s2964_s22  }
  0x39   : > { %s2965_s25 = smov [#allocation12]   ;;  %p1771_p12 = scmp.ge.s32.totalorder %s2954_s8, 4 }
  0x3a   : > { %s242_s13 = sshll.u32 %s2965_s25, 4  ;;  %s243_s13 = int_to_ptr.vmem [resolvable:$true] %s242_s13 }
  0x3b   : > { %2550 = dma.hbm_to_vmem [thread:$0]  (!%p3139_p11), %s241_s17, 512, %s243_s13, [#allocation11]  }
  0x3c   : > { %249 = sbr.rel (%p1771_p12) target bundleno = 101 (0x65), region = 32 }
  0x41   : > { %252 = sbr.rel (!%p3080_p5) target bundleno = 101 (0x65), region = 36  ;;  %s253_s2 = sand.u32 (%p3080_p5), 1, %s2934_s28  }
  0x42   : > { %s1774_s4 = sshll.u32 (%p3080_p5), %s3373_s14, 1  ;;  %s1772_s6 = sshll.u32 (%p3080_p5), %s253_s2, 5 }
  0x43   : > { %s263_s23 = ssub.s32 (%p3080_p5), 5, %s1774_s4  ;;  %s3168_s15 = scalar_lea.sflag (%p3080_p5), [#allocation5], %s253_s2 }
  0x44   : > { %p264_p13 = scmp.lt.s32.totalorder (%p3080_p5), %s263_s23, 2  ;;  %s257_s19 = scalar_lea.vmem (%p3080_p5), [#allocation4], %s1772_s6 }
  0x46   : > { %s3379_s23 = smov (!%p264_p13, %s263_s23), 2 }
  0x47   : > { %s2372_s12 = sshll.u32 %s3379_s23, 4 }
  0x48   : > { %s268_s20 = ssub.s32 32, %s2372_s12 }
  0x49   : > { %s269_s11 = sshll.u32 %s268_s20, 4 }
  0x4a   : > { %270 = vsyncadd %s3168_s15, %s269_s11  ;;  %p3171_p5 = scmp.ne.s32.totalorder %s2372_s12, 0  ;;  %s2374_s10 = sshll.u32 %s3373_s14, 5 }
  0x4b   : > { %s274_s22 = scalar_lea.hbm %s3313_s1, %s2374_s10  ;;  %s3179_s26 = sshll.u32 %s257_s19, 4  ;;  %s279_s26 = int_to_ptr.vmem [resolvable:$true] %s3179_s26 }
  0x4c   : > { %s276_s17 = sshll.u32 %s274_s22, 4  ;;  %s1781_s25 = sshll.u32 %s3379_s23, 8  ;;  %s3182_s17 = int_to_ptr.hbm [resolvable:$true] %s276_s17 }
  0x4d   : > { %s2785_s13 = sshra.s32 %s3182_s17, 4  ;;  %s2787_s2 = sshrl.u32 %s1781_s25, 4  ;;  %s2786_s13 = int_to_ptr.hbm [resolvable:$true] %s2785_s13 }
  0x4e   : > { %s2792_s4 = scalar_lea.hbm %s2786_s13, %s2787_s2  ;;  %s2796_s12 = scalar_lea.hbm %s3313_s1, 80 }
  0x4f   : > { %p2793_p0 = scmp.ne.s32.totalorder %s2786_s13, %s2792_s4  ;;  %p2798_p6 = scmp.lt.s32.totalorder %s2796_s12, %s2792_s4 }
  0x51   : > { %p2794_p1 = pnand %p2793_p0, %p3171_p5 }
  0x53   : > { %p2795_p4 = pneg %p2794_p1 }
  0x55   : > { %p2800_p10 = pnand %p2798_p6, %p2795_p4 }
  0x57   : > { %2803 = shalt.err (!%p2800_p10)
}
  0x58   : > { %s2804_s20 = sshra.s32 %s279_s26, 4  ;;  %s2966_s19 = smov [#allocation4]   ;;  %s2805_s20 = int_to_ptr.vmem [resolvable:$true] %s2804_s20 }
  0x59   : > { %s2811_s11 = scalar_lea.vmem %s2805_s20, %s2787_s2  ;;  %s2815_s10 = scalar_lea.vmem %s2966_s19, 64 }
  0x5a   : > { %p2812_p11 = scmp.ne.s32.totalorder %s2805_s20, %s2811_s11  ;;  %p2817_p0 = scmp.lt.s32.totalorder %s2815_s10, %s2811_s11 }
  0x5c   : > { %p2813_p12 = pnand %p2812_p11, %p3171_p5 }
  0x5e   : > { %p2814_p13 = pneg %p2813_p12 }
  0x60   : > { %p2819_p1 = pnand %p2817_p0, %p2814_p13 }
  0x62   : > { %2822 = shalt.err (!%p2819_p1)
}
  0x63   : > { %s2967_s30 = smov 256   ;;  %s2968_s7 = smov 16  }
  0x64   : > { %284 = dma.hbm_to_vmem [thread:$0]  (%p3171_p5), %s3182_s17, %s1781_s25, %s279_s26, %s3168_s15, %s2967_s30, %s2967_s30, %s2968_s7  }
  0x65 PF: > { %290 = sbr.rel (%p3131_p8) target bundleno = 667 (0x29b), region = 40  ;;  %s292_s22 = sand.u32 (!%p3131_p8), 1, %s2930_s27  }
  0x66   : > { %s1783_s13 = sshll.u32 (!%p3131_p8), %s292_s22, 5  ;;  %s293_s2 = scalar_lea.sflag (!%p3131_p8), [#allocation5], %s292_s22 }
  0x67   : > { %s3208_s4 = scalar_lea.vmem (!%p3131_p8), [#allocation4], %s1783_s13 }
  0x6a   : > { %2897 = dma.done.wait (%p3098_p9), %s293_s2, 512  }
  0x6b   : > { %2899 = vsyncadd (%p3098_p9), %s293_s2, 4294966784 }
  0x6c   : > { %2901 = dma.done.wait (%p3089_p7), [#allocation8], 16384  }
  0x6d   : > { %2903 = vsyncadd (%p3089_p7), [#allocation8], 4294950912 }
  0x6e   : > { %2905 = dma.done.wait (%p3089_p7), [#allocation11], 2560  }
  0x6f   : > { %2907 = vsyncadd (%p3089_p7), [#allocation11], 4294964736  ;;  %s341_s9 = sand.u32 1, %s2918_s24   ;;  %v1903_v0 = vld [vmem:[#allocation7 + $0xe0] sm:$0xf]  ;;  %s2365_s18 = sshll.u32 %s2942_s0, 1 }
  0x70   : > { %s3225_s23 = sshll.u32 %s341_s9, 3  ;;  %v2405_v1 = vld [vmem:[#allocation7 + $0xec] sm:$0xf0]  ;;  %v2031_v2 = vld [vmem:[#allocation7 + $0x1e0] sm:$0xf]  ;;  %s1594_s21 = sadd.s32 %s2938_s29, %s2365_s18 }
  0x71   : > { %v1904_v3 = vor.u32 %v2405_v1, %v1903_v0  ;;  %v2437_v4 = vld [vmem:[#allocation7 + $0x1ec] sm:$0xf0]  ;;  %v2403_v5 = vld [vmem:[#allocation7 + $0xe4] sm:$0xf]  ;;  %v1905_v6 = vld [vmem:[#allocation7 + $0xf0] sm:$0xf0] }
  0x72   : > { %v2032_v7 = vor.u32 %v2437_v4, %v2031_v2  ;;  %v1908_v8 = vor.u32 %v2403_v5, %v1905_v6  ;;  %v2435_v9 = vld [vmem:[#allocation7 + $0x1e4] sm:$0xf]  ;;  %v2033_v10 = vld [vmem:[#allocation7 + $0x1f0] sm:$0xf0]  ;;  %v1887_v11 = vld [vmem:[#allocation7 + $0xc0] sm:$0xf] }
  0x73   : > { %754 = vmatpush.bf16.msra.mxu0 %v1904_v3  ;;  %v2036_v12 = vor.u32 %v2435_v9, %v2033_v10  ;;  %v2401_v13 = vld [vmem:[#allocation7 + $0xcc] sm:$0xf0]  ;;  %v2015_v14 = vld [vmem:[#allocation7 + $0x1c0] sm:$0xf]  ;;  %v2399_v18 = vld [vmem:[#allocation7 + $0xc4] sm:$0xf] }
  0x74   : > { %v2433_v15 = vld [vmem:[#allocation7 + $0x1cc] sm:$0xf0]  ;;  %768 = vmatpush.bf16.msra.mxu1 %v2032_v7  ;;  %782 = vmatpush.bf16.msra.mxu2 %v1908_v8  ;;  %v1888_v16 = vor.u32 %v2401_v13, %v1887_v11  ;;  %v1889_v19 = vld [vmem:[#allocation7 + $0xd0] sm:$0xf0]  ;;  %v2431_v20 = vld [vmem:[#allocation7 + $0x1c4] sm:$0xf] }
  0x75   : > { %v2016_v17 = vor.u32 %v2433_v15, %v2015_v14  ;;  %796 = vmatpush.bf16.msra.mxu3 %v2036_v12  ;;  %v1892_v21 = vor.u32 %v2399_v18, %v1889_v19  ;;  %v2017_v22 = vld [vmem:[#allocation7 + $0x1d0] sm:$0xf0]  ;;  %v1871_v23 = vld [vmem:[#allocation7 + $0xa0] sm:$0xf]  ;;  %v2397_v24 = vld [vmem:[#allocation7 + $0xac] sm:$0xf0] }
  0x76   : > { %v2020_v25 = vor.u32 %v2431_v20, %v2017_v22  ;;  %v1999_v26 = vld [vmem:[#allocation7 + $0x1a0] sm:$0xf]  ;;  %v2429_v27 = vld [vmem:[#allocation7 + $0x1ac] sm:$0xf0]  ;;  %v2395_v28 = vld [vmem:[#allocation7 + $0xa4] sm:$0xf]  ;;  %v1872_v29 = vor.u32 %v2397_v24, %v1871_v23 }
  0x77   : > { %755 = vmatpush.bf16.msra.mxu0 %v1888_v16  ;;  %v1873_v30 = vld [vmem:[#allocation7 + $0xb0] sm:$0xf0]  ;;  %v2427_v31 = vld [vmem:[#allocation7 + $0x1a4] sm:$0xf]  ;;  %v2000_v33 = vor.u32 %v2429_v27, %v1999_v26  ;;  %v1855_v35 = vld [vmem:[#allocation7 + $0x80] sm:$0xf] }
  0x78   : > { %v2001_v32 = vld [vmem:[#allocation7 + $0x1b0] sm:$0xf0]  ;;  %769 = vmatpush.bf16.msra.mxu1 %v2016_v17  ;;  %783 = vmatpush.bf16.msra.mxu2 %v1892_v21  ;;  %v1876_v34 = vor.u32 %v2395_v28, %v1873_v30  ;;  %v2393_v36 = vld [vmem:[#allocation7 + $0x8c] sm:$0xf0]  ;;  %v1983_v37 = vld [vmem:[#allocation7 + $0x180] sm:$0xf] }
  0x79   : > { %797 = vmatpush.bf16.msra.mxu3 %v2020_v25  ;;  %v2004_v38 = vor.u32 %v2427_v31, %v2001_v32  ;;  %v2425_v39 = vld [vmem:[#allocation7 + $0x18c] sm:$0xf0]  ;;  %v2391_v40 = vld [vmem:[#allocation7 + $0x84] sm:$0xf]  ;;  %v1857_v41 = vld [vmem:[#allocation7 + $0x90] sm:$0xf0]  ;;  %v1856_v44 = vor.u32 %v2393_v36, %v1855_v35 }
  0x7a   : > { %v2423_v42 = vld [vmem:[#allocation7 + $0x184] sm:$0xf]  ;;  %v1985_v43 = vld [vmem:[#allocation7 + $0x190] sm:$0xf0]  ;;  %v1984_v45 = vor.u32 %v2425_v39, %v1983_v37  ;;  %v1860_v46 = vor.u32 %v2391_v40, %v1857_v41  ;;  %v1839_v47 = vld [vmem:[#allocation7 + $0x60] sm:$0xf] }
  0x7b   : > { %756 = vmatpush.bf16.msra.mxu0 %v1872_v29  ;;  %v2389_v48 = vld [vmem:[#allocation7 + $0x6c] sm:$0xf0]  ;;  %v1967_v49 = vld [vmem:[#allocation7 + $0x160] sm:$0xf]  ;;  %v1988_v50 = vor.u32 %v2423_v42, %v1985_v43  ;;  %v2387_v52 = vld [vmem:[#allocation7 + $0x64] sm:$0xf] }
  0x7c   : > { %770 = vmatpush.bf16.msra.mxu1 %v2000_v33  ;;  %784 = vmatpush.bf16.msra.mxu2 %v1876_v34  ;;  %v2421_v51 = vld [vmem:[#allocation7 + $0x16c] sm:$0xf0]  ;;  %v1841_v53 = vld [vmem:[#allocation7 + $0x70] sm:$0xf0]  ;;  %v2419_v54 = vld [vmem:[#allocation7 + $0x164] sm:$0xf]  ;;  %v1840_v56 = vor.u32 %v2389_v48, %v1839_v47 }
  0x7d   : > { %798 = vmatpush.bf16.msra.mxu3 %v2004_v38  ;;  %v1969_v55 = vld [vmem:[#allocation7 + $0x170] sm:$0xf0]  ;;  %v1968_v57 = vor.u32 %v2421_v51, %v1967_v49  ;;  %v1844_v58 = vor.u32 %v2387_v52, %v1841_v53  ;;  %v1823_v59 = vld [vmem:[#allocation7 + $0x40] sm:$0xf]  ;;  %v2385_v60 = vld [vmem:[#allocation7 + $0x4c] sm:$0xf0] }
  0x7e   : > { %v1951_v61 = vld [vmem:[#allocation7 + $0x140] sm:$0xf]  ;;  %v1972_v62 = vor.u32 %v2419_v54, %v1969_v55  ;;  %v2417_v63 = vld [vmem:[#allocation7 + $0x14c] sm:$0xf0]  ;;  %v2383_v0 = vld [vmem:[#allocation7 + $0x44] sm:$0xf]  ;;  %v1824_v4 = vor.u32 %v2385_v60, %v1823_v59 }
  0x7f   : > { %757 = vmatpush.bf16.msra.mxu0 %v1856_v44  ;;  %v1825_v1 = vld [vmem:[#allocation7 + $0x50] sm:$0xf0]  ;;  %v2415_v2 = vld [vmem:[#allocation7 + $0x144] sm:$0xf]  ;;  %v1952_v5 = vor.u32 %v2417_v63, %v1951_v61  ;;  %v1807_v7 = vld [vmem:[#allocation7 + $0x20] sm:$0xf] }
  0x80   : > { %771 = vmatpush.bf16.msra.mxu1 %v1984_v45  ;;  %785 = vmatpush.bf16.msra.mxu2 %v1860_v46  ;;  %v1953_v3 = vld [vmem:[#allocation7 + $0x150] sm:$0xf0]  ;;  %v1828_v6 = vor.u32 %v2383_v0, %v1825_v1  ;;  %v2381_v8 = vld [vmem:[#allocation7 + $0x2c] sm:$0xf0]  ;;  %v1935_v9 = vld [vmem:[#allocation7 + $0x120] sm:$0xf] }
  0x81   : > { %799 = vmatpush.bf16.msra.mxu3 %v1988_v50  ;;  %v1956_v10 = vor.u32 %v2415_v2, %v1953_v3  ;;  %v2413_v11 = vld [vmem:[#allocation7 + $0x12c] sm:$0xf0]  ;;  %v2379_v12 = vld [vmem:[#allocation7 + $0x24] sm:$0xf]  ;;  %v1809_v13 = vld [vmem:[#allocation7 + $0x30] sm:$0xf0]  ;;  %v1808_v16 = vor.u32 %v2381_v8, %v1807_v7 }
  0x82   : > { %v2411_v14 = vld [vmem:[#allocation7 + $0x124] sm:$0xf]  ;;  %v1937_v15 = vld [vmem:[#allocation7 + $0x130] sm:$0xf0]  ;;  %v1791_v17 = vld [vmem:[#allocation7] sm:$0xf]  ;;  %v1936_v20 = vor.u32 %v2413_v11, %v1935_v9  ;;  %v1812_v21 = vor.u32 %v2379_v12, %v1809_v13 }
  0x83   : > { %758 = vmatpush.bf16.msra.mxu0 %v1840_v56  ;;  %v2377_v18 = vld [vmem:[#allocation7 + $0xc] sm:$0xf0]  ;;  %v1919_v19 = vld [vmem:[#allocation7 + $0x100] sm:$0xf]  ;;  %v2375_v23 = vld [vmem:[#allocation7 + $0x4] sm:$0xf]  ;;  %v1940_v25 = vor.u32 %v2411_v14, %v1937_v15 }
  0x84   : > { %772 = vmatpush.bf16.msra.mxu1 %v1968_v57  ;;  %786 = vmatpush.bf16.msra.mxu2 %v1844_v58  ;;  %v2409_v22 = vld [vmem:[#allocation7 + $0x10c] sm:$0xf0]  ;;  %v1793_v24 = vld [vmem:[#allocation7 + $0x10] sm:$0xf0]  ;;  %v2407_v26 = vld [vmem:[#allocation7 + $0x104] sm:$0xf]  ;;  %v1792_v32 = vor.u32 %v2377_v18, %v1791_v17 }
  0x85   : > { %800 = vmatpush.bf16.msra.mxu3 %v1972_v62  ;;  %v1921_v27 = vld [vmem:[#allocation7 + $0x110] sm:$0xf0]  ;;  %v1911_v28 = vld [vmem:[#allocation7 + $0xe8] sm:$0xf]  ;;  %v2406_v29 = vld [vmem:[#allocation7 + $0xf4] sm:$0xf0]  ;;  %v1920_v36 = vor.u32 %v2409_v22, %v1919_v19  ;;  %v1796_v37 = vor.u32 %v2375_v23, %v1793_v24 }
  0x86   : > { %v2039_v30 = vld [vmem:[#allocation7 + $0x1e8] sm:$0xf]  ;;  %v2438_v31 = vld [vmem:[#allocation7 + $0x1f4] sm:$0xf0]  ;;  %v2404_v33 = vld [vmem:[#allocation7 + $0xec] sm:$0xf]  ;;  %v1924_v41 = vor.u32 %v2407_v26, %v1921_v27  ;;  %v1912_v42 = vor.u32 %v2406_v29, %v1911_v28 }
  0x87   : > { %759 = vmatpush.bf16.msra.mxu0 %v1824_v4  ;;  %v1913_v34 = vld [vmem:[#allocation7 + $0xf8] sm:$0xf0]  ;;  %v2436_v35 = vld [vmem:[#allocation7 + $0x1ec] sm:$0xf]  ;;  %v354_v39 = vld [vmem:[%s3208_s4] sm:$0xff]  ;;  %v2040_v45 = vor.u32 %v2438_v31, %v2039_v30  ;;  %s1602_s15 = sld [smem:[#allocation3]] }
  0x88   : > { %773 = vmatpush.bf16.msra.mxu1 %v1952_v5  ;;  %787 = vmatpush.bf16.msra.mxu2 %v1828_v6  ;;  %v2041_v38 = vld [vmem:[#allocation7 + $0x1f8] sm:$0xf0]  ;;  %v356_v40 = vld [vmem:[%s3208_s4 + $0x10] sm:$0xff]  ;;  %v355_v43 = vld [vmem:[%s3208_s4 + $0x8] sm:$0xff]  ;;  %v1916_v46 = vor.u32 %v2404_v33, %v1913_v34  ;;  %s2366_s16 = sshll.u32 %s1594_s21, 4  ;;  %s343_s26 = scalar_lea.vmem [#allocation13], %s3225_s23 }
  0x89   : > { %801 = vmatpush.bf16.msra.mxu3 %v1956_v10  ;;  %v357_v44 = vld [vmem:[%s3208_s4 + $0x18] sm:$0xff]  ;;  %v1895_v47 = vld [vmem:[#allocation7 + $0xc8] sm:$0xf]  ;;  %v2044_v50 = vor.u32 %v2436_v35, %v2041_v38  ;;  %v3231_v51 = vpack.c.bf16 %v356_v40, %v354_v39  ;;  %v2400_v53 = vld [vmem:[#allocation7 + $0xcc] sm:$0xf]  ;;  %p2367_p7 = scmp.ne.s32.totalorder %s2938_s29, 0 }
  0x8a   : > { %v2402_v48 = vld [vmem:[#allocation7 + $0xd4] sm:$0xf0]  ;;  %v2023_v49 = vld [vmem:[#allocation7 + $0x1c8] sm:$0xf]  ;;  %v1897_v54 = vld [vmem:[#allocation7 + $0xd8] sm:$0xf0]  ;;  %v3233_v55 = vpack.c.bf16 %v357_v44, %v355_v43 }
  0x8b   : > { %760 = vmatpush.bf16.msra.mxu0 %v1808_v16  ;;  %v2434_v52 = vld [vmem:[#allocation7 + $0x1d4] sm:$0xf0]  ;;  %v2432_v56 = vld [vmem:[#allocation7 + $0x1cc] sm:$0xf]  ;;  %v2025_v57 = vld [vmem:[#allocation7 + $0x1d8] sm:$0xf0]  ;;  %v1896_v58 = vor.u32 %v2402_v48, %v1895_v47  ;;  %v1900_v60 = vor.u32 %v2400_v53, %v1897_v54 }
  0x8c   : > { %774 = vmatpush.bf16.msra.mxu1 %v1936_v20  ;;  %788 = vmatpush.bf16.msra.mxu2 %v1812_v21  ;;  %v2024_v59 = vor.u32 %v2434_v52, %v2023_v49  ;;  %v1879_v61 = vld [vmem:[#allocation7 + $0xa8] sm:$0xf]  ;;  %v2398_v62 = vld [vmem:[#allocation7 + $0xb4] sm:$0xf0]  ;;  %v2028_v0 = vor.u32 %v2432_v56, %v2025_v57  ;;  %v2396_v2 = vld [vmem:[#allocation7 + $0xac] sm:$0xf] }
  0x8d   : > { %802 = vmatpush.bf16.msra.mxu3 %v1940_v25  ;;  %v2007_v63 = vld [vmem:[#allocation7 + $0x1a8] sm:$0xf]  ;;  %v2430_v1 = vld [vmem:[#allocation7 + $0x1b4] sm:$0xf0]  ;;  %v1881_v3 = vld [vmem:[#allocation7 + $0xb8] sm:$0xf0]  ;;  %v1880_v6 = vor.u32 %v2398_v62, %v1879_v61 }
  0x8e   : > { %v2428_v4 = vld [vmem:[#allocation7 + $0x1ac] sm:$0xf]  ;;  %v2009_v5 = vld [vmem:[#allocation7 + $0x1b8] sm:$0xf0]  ;;  %v2008_v7 = vor.u32 %v2430_v1, %v2007_v63  ;;  %v1884_v8 = vor.u32 %v2396_v2, %v1881_v3  ;;  %v1863_v9 = vld [vmem:[#allocation7 + $0x88] sm:$0xf] }
  0x8f   : > { %761 = vmatpush.bf16.msra.mxu0 %v1792_v32  ;;  %v2394_v10 = vld [vmem:[#allocation7 + $0x94] sm:$0xf0]  ;;  %v1991_v11 = vld [vmem:[#allocation7 + $0x188] sm:$0xf]  ;;  %v2012_v12 = vor.u32 %v2428_v4, %v2009_v5  ;;  %v2392_v14 = vld [vmem:[#allocation7 + $0x8c] sm:$0xf] }
  0x90   : > { %775 = vmatpush.bf16.msra.mxu1 %v1920_v36  ;;  %789 = vmatpush.bf16.msra.mxu2 %v1796_v37  ;;  %v2426_v13 = vld [vmem:[#allocation7 + $0x194] sm:$0xf0]  ;;  %v1865_v15 = vld [vmem:[#allocation7 + $0x98] sm:$0xf0]  ;;  %v2424_v16 = vld [vmem:[#allocation7 + $0x18c] sm:$0xf]  ;;  %v1864_v18 = vor.u32 %v2394_v10, %v1863_v9 }
  0x91   : > { %803 = vmatpush.bf16.msra.mxu3 %v1924_v41  ;;  %v1993_v17 = vld [vmem:[#allocation7 + $0x198] sm:$0xf0]  ;;  %v1992_v19 = vor.u32 %v2426_v13, %v1991_v11  ;;  %v1868_v20 = vor.u32 %v2392_v14, %v1865_v15  ;;  %v1847_v21 = vld [vmem:[#allocation7 + $0x68] sm:$0xf]  ;;  %v2390_v22 = vld [vmem:[#allocation7 + $0x74] sm:$0xf0] }
  0x92   : > { %762 = vmatmul.bf16.vlgmr.msra.gmra.mxu0 %v3231_v51  ;;  %v1975_v23 = vld [vmem:[#allocation7 + $0x168] sm:$0xf]  ;;  %v1996_v24 = vor.u32 %v2424_v16, %v1993_v17  ;;  %v2422_v25 = vld [vmem:[#allocation7 + $0x174] sm:$0xf0]  ;;  %v2388_v26 = vld [vmem:[#allocation7 + $0x6c] sm:$0xf]  ;;  %v1848_v30 = vor.u32 %v2390_v22, %v1847_v21 }
  0x93   : > { %810 = vmatpush.bf16.msrb.mxu0 %v1912_v42  ;;  %790 = vmatmul.bf16.vlgmr.msra.gmra.mxu2 %v3231_v51  ;;  %v1849_v27 = vld [vmem:[#allocation7 + $0x78] sm:$0xf0]  ;;  %v2420_v28 = vld [vmem:[#allocation7 + $0x16c] sm:$0xf]  ;;  %v1976_v31 = vor.u32 %v2422_v25, %v1975_v23  ;;  %v1831_v33 = vld [vmem:[#allocation7 + $0x48] sm:$0xf] }
  0x94   : > { %824 = vmatpush.bf16.msrb.mxu1 %v2040_v45  ;;  %838 = vmatpush.bf16.msrb.mxu2 %v1916_v46  ;;  %v1977_v29 = vld [vmem:[#allocation7 + $0x178] sm:$0xf0]  ;;  %v1852_v32 = vor.u32 %v2388_v26, %v1849_v27  ;;  %v2386_v34 = vld [vmem:[#allocation7 + $0x54] sm:$0xf0]  ;;  %v1959_v35 = vld [vmem:[#allocation7 + $0x148] sm:$0xf] }
  0x95   : > { %852 = vmatpush.bf16.msrb.mxu3 %v2044_v50  ;;  %776 = vmatmul.bf16.vlgmr.msra.gmra.mxu1 %v3233_v55  ;;  %v1980_v36 = vor.u32 %v2420_v28, %v1977_v29  ;;  %v2418_v37 = vld [vmem:[#allocation7 + $0x154] sm:$0xf0]  ;;  %v2384_v38 = vld [vmem:[#allocation7 + $0x4c] sm:$0xf]  ;;  %v1833_v39 = vld [vmem:[#allocation7 + $0x58] sm:$0xf0]  ;;  %v1832_v42 = vor.u32 %v2386_v34, %v1831_v33 }
  0x96   : > { %804 = vmatmul.bf16.vlgmr.msra.gmra.mxu3 %v3233_v55  ;;  %v2416_v40 = vld [vmem:[#allocation7 + $0x14c] sm:$0xf]  ;;  %v1961_v41 = vld [vmem:[#allocation7 + $0x158] sm:$0xf0]  ;;  %v1960_v43 = vor.u32 %v2418_v37, %v1959_v35  ;;  %v1836_v44 = vor.u32 %v2384_v38, %v1833_v39  ;;  %v1815_v45 = vld [vmem:[#allocation7 + $0x28] sm:$0xf] }
  0x97   : > { %811 = vmatpush.bf16.msrb.mxu0 %v1896_v58  ;;  %v2382_v46 = vld [vmem:[#allocation7 + $0x34] sm:$0xf0]  ;;  %v1943_v47 = vld [vmem:[#allocation7 + $0x128] sm:$0xf]  ;;  %v1964_v48 = vor.u32 %v2416_v40, %v1961_v41  ;;  %v2380_v50 = vld [vmem:[#allocation7 + $0x2c] sm:$0xf] }
  0x98   : > { %825 = vmatpush.bf16.msrb.mxu1 %v2024_v59  ;;  %839 = vmatpush.bf16.msrb.mxu2 %v1900_v60  ;;  %v2414_v49 = vld [vmem:[#allocation7 + $0x134] sm:$0xf0]  ;;  %v1817_v52 = vld [vmem:[#allocation7 + $0x38] sm:$0xf0]  ;;  %v2412_v53 = vld [vmem:[#allocation7 + $0x12c] sm:$0xf]  ;;  %v1816_v56 = vor.u32 %v2382_v46, %v1815_v45 }
  0x99   : > { %853 = vmatpush.bf16.msrb.mxu3 %v2028_v0  ;;  %v1945_v54 = vld [vmem:[#allocation7 + $0x138] sm:$0xf0]  ;;  %v1799_v57 = vld [vmem:[#allocation7 + $0x8] sm:$0xf]  ;;  %v1944_v58 = vor.u32 %v2414_v49, %v1943_v47  ;;  %v1820_v59 = vor.u32 %v2380_v50, %v1817_v52  ;;  %v2378_v60 = vld [vmem:[#allocation7 + $0x14] sm:$0xf0] }
  0x9a   : > { %v1927_v61 = vld [vmem:[#allocation7 + $0x108] sm:$0xf]  ;;  %v2410_v62 = vld [vmem:[#allocation7 + $0x114] sm:$0xf0]  ;;  %v1948_v63 = vor.u32 %v2412_v53, %v1945_v54  ;;  %v2376_v0 = vld [vmem:[#allocation7 + $0xc] sm:$0xf] }
  0x9b   : > { %812 = vmatpush.bf16.msrb.mxu0 %v1880_v6  ;;  %v1801_v1 = vld [vmem:[#allocation7 + $0x18] sm:$0xf0]  ;;  %v2408_v2 = vld [vmem:[#allocation7 + $0x10c] sm:$0xf]  ;;  %v2103_v4 = vld [vmem:[#allocation9 + $0x70] sm:$0xf]  ;;  %v1800_v6 = vor.u32 %v2378_v60, %v1799_v57  ;;  %v1928_v9 = vor.u32 %v2410_v62, %v1927_v61 }
  0x9c   : > { %826 = vmatpush.bf16.msrb.mxu1 %v2008_v7  ;;  %840 = vmatpush.bf16.msrb.mxu2 %v1884_v8  ;;  %v1929_v3 = vld [vmem:[#allocation7 + $0x118] sm:$0xf0]  ;;  %v2454_v5 = vld [vmem:[#allocation9 + $0x74] sm:$0xf0]  ;;  %v2167_v7 = vld [vmem:[#allocation9 + $0xf0] sm:$0xf]  ;;  %v1804_v10 = vor.u32 %v2376_v0, %v1801_v1 }
  0x9d   : > { %854 = vmatpush.bf16.msrb.mxu3 %v2012_v12  ;;  %v2470_v8 = vld [vmem:[#allocation9 + $0xf4] sm:$0xf0]  ;;  %v1932_v11 = vor.u32 %v2408_v2, %v1929_v3  ;;  %v2104_v12 = vor.u32 %v2454_v5, %v2103_v4  ;;  %v2095_v13 = vld [vmem:[#allocation9 + $0x60] sm:$0xf]  ;;  %v2452_v14 = vld [vmem:[#allocation9 + $0x64] sm:$0xf0] }
  0x9e   : > { %v2168_v15 = vor.u32 %v2470_v8, %v2167_v7  ;;  %v2159_v16 = vld [vmem:[#allocation9 + $0xe0] sm:$0xf]  ;;  %v2468_v17 = vld [vmem:[#allocation9 + $0xe4] sm:$0xf0]  ;;  %v2151_v22 = vld [vmem:[#allocation9 + $0xd0] sm:$0xf] }
  0x9f   : > { %813 = vmatpush.bf16.msrb.mxu0 %v1864_v18  ;;  %v2096_v18 = vor.u32 %v2452_v14, %v2095_v13  ;;  %v2160_v21 = vor.u32 %v2468_v17, %v2159_v16  ;;  %v2466_v23 = vld [vmem:[#allocation9 + $0xd4] sm:$0xf0]  ;;  %v2079_v25 = vld [vmem:[#allocation9 + $0x40] sm:$0xf]  ;;  %v2448_v26 = vld [vmem:[#allocation9 + $0x44] sm:$0xf0] }
  0xa0   : > { %827 = vmatpush.bf16.msrb.mxu1 %v1992_v19  ;;  %841 = vmatpush.bf16.msrb.mxu2 %v1868_v20  ;;  %v2087_v19 = vld [vmem:[#allocation9 + $0x50] sm:$0xf]  ;;  %v2450_v20 = vld [vmem:[#allocation9 + $0x54] sm:$0xf0]  ;;  %v2152_v27 = vor.u32 %v2466_v23, %v2151_v22  ;;  %v2143_v28 = vld [vmem:[#allocation9 + $0xc0] sm:$0xf] }
  0xa1   : > { %855 = vmatpush.bf16.msrb.mxu3 %v1996_v24  ;;  %v2088_v24 = vor.u32 %v2450_v20, %v2087_v19  ;;  %v2464_v29 = vld [vmem:[#allocation9 + $0xc4] sm:$0xf0]  ;;  %v2135_v34 = vld [vmem:[#allocation9 + $0xb0] sm:$0xf]  ;;  %v2442_v40 = vld [vmem:[#allocation9 + $0x14] sm:$0xf0] }
  0xa2   : > { %v2144_v33 = vor.u32 %v2464_v29, %v2143_v28  ;;  %v2055_v39 = vld [vmem:[#allocation9 + $0x10] sm:$0xf]  ;;  %v2047_v45 = vld [vmem:[#allocation9] sm:$0xf]  ;;  %v2440_v46 = vld [vmem:[#allocation9 + $0x4] sm:$0xf0] }
  0xa3   : > { %814 = vmatpush.bf16.msrb.mxu0 %v1848_v30  ;;  %v2080_v30 = vor.u32 %v2448_v26, %v2079_v25  ;;  %v2056_v41 = vor.u32 %v2442_v40, %v2055_v39  ;;  %v2048_v47 = vor.u32 %v2440_v46, %v2047_v45  ;;  %v2486_v49 = vld [vmem:[#allocation9 + $0x174] sm:$0xf0]  ;;  %v2453_v50 = vld [vmem:[#allocation9 + $0x74] sm:$0xf]  ;;  %v2105_v53 = vld [vmem:[#allocation9 + $0x78] sm:$0xf0] }
  0xa4   : > { %828 = vmatpush.bf16.msrb.mxu1 %v1976_v31  ;;  %842 = vmatpush.bf16.msrb.mxu2 %v1852_v32  ;;  %v2071_v31 = vld [vmem:[#allocation9 + $0x30] sm:$0xf]  ;;  %v2446_v32 = vld [vmem:[#allocation9 + $0x34] sm:$0xf0]  ;;  %v2108_v54 = vor.u32 %v2453_v50, %v2105_v53  ;;  %v2484_v60 = vld [vmem:[#allocation9 + $0x164] sm:$0xf0] }
  0xa5   : > { %856 = vmatpush.bf16.msrb.mxu3 %v1980_v36  ;;  %v2072_v35 = vor.u32 %v2446_v32, %v2071_v31  ;;  %v2444_v36 = vld [vmem:[#allocation9 + $0x24] sm:$0xf0]  ;;  %v2458_v57 = vld [vmem:[#allocation9 + $0x94] sm:$0xf0]  ;;  %v2451_v61 = vld [vmem:[#allocation9 + $0x64] sm:$0xf] }
  0xa6   : > { %v2111_v0 = vld [vmem:[#allocation9 + $0x80] sm:$0xf]  ;;  %v2456_v2 = vld [vmem:[#allocation9 + $0x84] sm:$0xf0]  ;;  %v2295_v3 = vld [vmem:[#allocation9 + $0x1f0] sm:$0xf] }
  0xa7   : > { %815 = vmatpush.bf16.msrb.mxu0 %v1832_v42  ;;  %v2127_v42 = vld [vmem:[#allocation9 + $0xa0] sm:$0xf]  ;;  %v2502_v4 = vld [vmem:[#allocation9 + $0x1f4] sm:$0xf0]  ;;  %v2112_v5 = vor.u32 %v2456_v2, %v2111_v0  ;;  %v2469_v7 = vld [vmem:[#allocation9 + $0xf4] sm:$0xf] }
  0xa8   : > { %829 = vmatpush.bf16.msrb.mxu1 %v1960_v43  ;;  %843 = vmatpush.bf16.msrb.mxu2 %v1836_v44  ;;  %v2460_v43 = vld [vmem:[#allocation9 + $0xa4] sm:$0xf0]  ;;  %v2169_v8 = vld [vmem:[#allocation9 + $0xf8] sm:$0xf0]  ;;  %v2287_v16 = vld [vmem:[#allocation9 + $0x1e0] sm:$0xf] }
  0xa9   : > { %857 = vmatpush.bf16.msrb.mxu3 %v1964_v48  ;;  %v2128_v44 = vor.u32 %v2460_v43, %v2127_v42  ;;  %v2231_v48 = vld [vmem:[#allocation9 + $0x170] sm:$0xf]  ;;  %v2089_v14 = vld [vmem:[#allocation9 + $0x58] sm:$0xf0]  ;;  %v2500_v17 = vld [vmem:[#allocation9 + $0x1e4] sm:$0xf0] }
  0xaa   : > { %v2232_v52 = vor.u32 %v2486_v49, %v2231_v48  ;;  %v2467_v19 = vld [vmem:[#allocation9 + $0xe4] sm:$0xf]  ;;  %v2161_v20 = vld [vmem:[#allocation9 + $0xe8] sm:$0xf0]  ;;  %v2207_v22 = vld [vmem:[#allocation9 + $0x140] sm:$0xf] }
  0xab   : > { %816 = vmatpush.bf16.msrb.mxu0 %v1816_v56  ;;  %v2119_v56 = vld [vmem:[#allocation9 + $0x90] sm:$0xf]  ;;  %v2480_v23 = vld [vmem:[#allocation9 + $0x144] sm:$0xf0]  ;;  %v2081_v26 = vld [vmem:[#allocation9 + $0x48] sm:$0xf0] }
  0xac   : > { %830 = vmatpush.bf16.msrb.mxu1 %v1944_v58  ;;  %844 = vmatpush.bf16.msrb.mxu2 %v1820_v59  ;;  %v2120_v58 = vor.u32 %v2458_v57, %v2119_v56  ;;  %v2223_v59 = vld [vmem:[#allocation9 + $0x160] sm:$0xf]  ;;  %v2208_v25 = vor.u32 %v2480_v23, %v2207_v22  ;;  %v2279_v28 = vld [vmem:[#allocation9 + $0x1d0] sm:$0xf]  ;;  %v2498_v29 = vld [vmem:[#allocation9 + $0x1d4] sm:$0xf0] }
  0xad   : > { %858 = vmatpush.bf16.msrb.mxu3 %v1948_v63  ;;  %v2224_v62 = vor.u32 %v2484_v60, %v2223_v59  ;;  %v2097_v63 = vld [vmem:[#allocation9 + $0x68] sm:$0xf0]  ;;  %v2280_v31 = vor.u32 %v2498_v29, %v2279_v28  ;;  %v2153_v32 = vld [vmem:[#allocation9 + $0xd8] sm:$0xf0]  ;;  %v2496_v39 = vld [vmem:[#allocation9 + $0x1c4] sm:$0xf0] }
  0xae   : > { %v2100_v1 = vor.u32 %v2451_v61, %v2097_v63  ;;  %v2463_v40 = vld [vmem:[#allocation9 + $0xc4] sm:$0xf]  ;;  %v2145_v42 = vld [vmem:[#allocation9 + $0xc8] sm:$0xf0]  ;;  %v2476_v45 = vld [vmem:[#allocation9 + $0x124] sm:$0xf0] }
  0xaf   : > { %817 = vmatpush.bf16.msrb.mxu0 %v1800_v6  ;;  %v2296_v6 = vor.u32 %v2502_v4, %v2295_v3  ;;  %v2148_v43 = vor.u32 %v2463_v40, %v2145_v42  ;;  %v2443_v46 = vld [vmem:[#allocation9 + $0x24] sm:$0xf]  ;;  %v2065_v48 = vld [vmem:[#allocation9 + $0x28] sm:$0xf0]  ;;  %v2494_v53 = vld [vmem:[#allocation9 + $0x1b4] sm:$0xf0] }
  0xb0   : > { %831 = vmatpush.bf16.msrb.mxu1 %v1928_v9  ;;  %845 = vmatpush.bf16.msrb.mxu2 %v1804_v10  ;;  %v2172_v9 = vor.u32 %v2469_v7, %v2169_v8  ;;  %v2215_v10 = vld [vmem:[#allocation9 + $0x150] sm:$0xf]  ;;  %v2068_v50 = vor.u32 %v2443_v46, %v2065_v48  ;;  %v2137_v57 = vld [vmem:[#allocation9 + $0xb8] sm:$0xf0]  ;;  %v2474_v59 = vld [vmem:[#allocation9 + $0x114] sm:$0xf0] }
  0xb1   : > { %859 = vmatpush.bf16.msrb.mxu3 %v1932_v11  ;;  %v2482_v11 = vld [vmem:[#allocation9 + $0x154] sm:$0xf0]  ;;  %v2057_v63 = vld [vmem:[#allocation9 + $0x18] sm:$0xf0]  ;;  %v2492_v2 = vld [vmem:[#allocation9 + $0x1a4] sm:$0xf0] }
  0xb2   : > { %818 = vmatmul.bf16.vlgmr.msrb.gmra.mxu0 %v3231_v51  ;;  %v2216_v13 = vor.u32 %v2482_v11, %v2215_v10  ;;  %v3243_v49 = vld [vmem:[#allocation12] ss:$8 sm:$0xf]  ;;  %v2459_v3 = vld [vmem:[#allocation9 + $0xa4] sm:$0xf] }
  0xb3   : > { %1296 = vmatpush.bf16.msra.mxu0 %v2104_v12  ;;  %832 = vmatmul.bf16.vlgmr.msrb.gmra.mxu1 %v3233_v55  ;;  %v2449_v12 = vld [vmem:[#allocation9 + $0x54] sm:$0xf]  ;;  %v426_v4 = vperm.slane %v3243_v49, 0  ;;  %v2175_v8 = vld [vmem:[#allocation9 + $0x100] sm:$0xf]  ;;  %v427_v29 = vperm.slane %v3243_v49, 1 }
  0xb4   : > { %1310 = vmatpush.bf16.msra.mxu1 %v2168_v15  ;;  %846 = vmatmul.bf16.vlgmr.msrb.gmra.mxu2 %v3231_v51  ;;  %v2462_v51 = vld [vmem:[#allocation9 + $0xb4] sm:$0xf0]  ;;  %v2092_v15 = vor.u32 %v2449_v12, %v2089_v14  ;;  %v2439_v10 = vld [vmem:[#allocation9 + $0x4] sm:$0xf]  ;;  %v2049_v12 = vld [vmem:[#allocation9 + $0x8] sm:$0xf0] }
  0xb5   : > { %860 = vmatmul.bf16.vlgmr.msrb.gmra.mxu3 %v3233_v55  ;;  %v2063_v55 = vld [vmem:[#allocation9 + $0x20] sm:$0xf]  ;;  %v2136_v37 = vor.u32 %v2462_v51, %v2135_v34  ;;  %1324 = vmatpush.bf16.msra.mxu2 %v2232_v52  ;;  %v2199_v34 = vld [vmem:[#allocation9 + $0x130] sm:$0xf]  ;;  %v2478_v51 = vld [vmem:[#allocation9 + $0x134] sm:$0xf0] }
  0xb6   : > { %v2064_v38 = vor.u32 %v2444_v36, %v2063_v55  ;;  %1338 = vmatpush.bf16.msra.mxu3 %v2296_v6  ;;  %v2200_v55 = vor.u32 %v2478_v51, %v2199_v34  ;;  %v2073_v36 = vld [vmem:[#allocation9 + $0x38] sm:$0xf0]  ;;  %v2263_v52 = vld [vmem:[#allocation9 + $0x1b0] sm:$0xf]  ;;  %v2129_v6 = vld [vmem:[#allocation9 + $0xa8] sm:$0xf0] }
  0xb7   : > { %1297 = vmatpush.bf16.msra.mxu0 %v2096_v18  ;;  %v2288_v18 = vor.u32 %v2500_v17, %v2287_v16  ;;  %v2264_v56 = vor.u32 %v2494_v53, %v2263_v52  ;;  %v2132_v7 = vor.u32 %v2459_v3, %v2129_v6  ;;  %v2233_v14 = vld [vmem:[#allocation9 + $0x178] sm:$0xf0]  ;;  %v2052_v16 = vor.u32 %v2439_v10, %v2049_v12  ;;  %v2225_v28 = vld [vmem:[#allocation9 + $0x168] sm:$0xf0]  ;;  %v2499_v52 = vld [vmem:[#allocation9 + $0x1e4] sm:$0xf] }
  0xb8   : > { %1311 = vmatpush.bf16.msra.mxu1 %v2160_v21  ;;  %v2164_v21 = vor.u32 %v2467_v19, %v2161_v20  ;;  %v2490_v19 = vld [vmem:[#allocation9 + $0x194] sm:$0xf0]  ;;  %v2457_v20 = vld [vmem:[#allocation9 + $0x94] sm:$0xf]  ;;  %v2217_v42 = vld [vmem:[#allocation9 + $0x158] sm:$0xf0] }
  0xb9   : > { %1325 = vmatpush.bf16.msra.mxu2 %v2224_v62  ;;  %v2441_v62 = vld [vmem:[#allocation9 + $0x14] sm:$0xf]  ;;  %v2289_v53 = vld [vmem:[#allocation9 + $0x1e8] sm:$0xf0]  ;;  %v2201_v6 = vld [vmem:[#allocation9 + $0x138] sm:$0xf0] }
  0xba   : > { %1339 = vmatpush.bf16.msra.mxu3 %v2288_v18  ;;  %v2060_v0 = vor.u32 %v2441_v62, %v2057_v63  ;;  %v2247_v18 = vld [vmem:[#allocation9 + $0x190] sm:$0xf]  ;;  %v2495_v12 = vld [vmem:[#allocation9 + $0x1c4] sm:$0xf] }
  0xbb   : > { %1298 = vmatpush.bf16.msra.mxu0 %v2088_v24  ;;  %v2447_v24 = vld [vmem:[#allocation9 + $0x44] sm:$0xf]  ;;  %v2248_v23 = vor.u32 %v2490_v19, %v2247_v18 }
  0xbc   : > { %1312 = vmatpush.bf16.msra.mxu1 %v2152_v27  ;;  %v2084_v27 = vor.u32 %v2447_v24, %v2081_v26  ;;  %v2121_v24 = vld [vmem:[#allocation9 + $0x98] sm:$0xf0] }
  0xbd   : > { %1326 = vmatpush.bf16.msra.mxu2 %v2216_v13  ;;  %v2485_v13 = vld [vmem:[#allocation9 + $0x174] sm:$0xf]  ;;  %v2124_v26 = vor.u32 %v2457_v20, %v2121_v24 }
  0xbe   : > { %1340 = vmatpush.bf16.msra.mxu3 %v2280_v31  ;;  %v2236_v17 = vor.u32 %v2485_v13, %v2233_v14  ;;  %v2239_v31 = vld [vmem:[#allocation9 + $0x180] sm:$0xf]  ;;  %v2273_v13 = vld [vmem:[#allocation9 + $0x1c8] sm:$0xf0] }
  0xbf   : > { %1299 = vmatpush.bf16.msra.mxu0 %v2080_v30  ;;  %v2465_v30 = vld [vmem:[#allocation9 + $0xd4] sm:$0xf] }
  0xc0   : > { %1313 = vmatpush.bf16.msra.mxu1 %v2144_v33  ;;  %v2156_v33 = vor.u32 %v2465_v30, %v2153_v32  ;;  %v2488_v32 = vld [vmem:[#allocation9 + $0x184] sm:$0xf0] }
  0xc1   : > { %1327 = vmatpush.bf16.msra.mxu2 %v2208_v25  ;;  %v3246_v25 = vld [vmem:[#allocation12 + $0x1] ss:$8 sm:$0xf]  ;;  %v2240_v51 = vor.u32 %v2488_v32, %v2239_v31  ;;  %v2257_v31 = vld [vmem:[#allocation9 + $0x1a8] sm:$0xf0] }
  0xc2   : > { %v877_v34 = vperm.slane %v3246_v25, 0  ;;  %v2471_v32 = vld [vmem:[#allocation9 + $0x104] sm:$0xf] }
  0xc3   : > { %1300 = vmatpush.bf16.msra.mxu0 %v2072_v35  ;;  %v2445_v35 = vld [vmem:[#allocation9 + $0x34] sm:$0xf] }
  0xc4   : > { %1314 = vmatpush.bf16.msra.mxu1 %v2136_v37  ;;  %v2076_v37 = vor.u32 %v2445_v35, %v2073_v36  ;;  %v2455_v35 = vld [vmem:[#allocation9 + $0x84] sm:$0xf] }
  0xc5   : > { %1328 = vmatpush.bf16.msra.mxu2 %v2200_v55  ;;  %v2113_v55 = vld [vmem:[#allocation9 + $0x88] sm:$0xf0] }
  0xc6   : > { %v2116_v36 = vor.u32 %v2455_v35, %v2113_v55  ;;  %v2489_v35 = vld [vmem:[#allocation9 + $0x194] sm:$0xf]  ;;  %v2249_v55 = vld [vmem:[#allocation9 + $0x198] sm:$0xf0] }
  0xc7   : > { %1301 = vmatpush.bf16.msra.mxu0 %v2064_v38  ;;  %v2271_v38 = vld [vmem:[#allocation9 + $0x1c0] sm:$0xf] }
  0xc8   : > { %1315 = vmatpush.bf16.msra.mxu1 %v2128_v44  ;;  %v2191_v44 = vld [vmem:[#allocation9 + $0x120] sm:$0xf] }
  0xcb   : > { %1302 = vmatpush.bf16.msra.mxu0 %v2056_v41  ;;  %v2272_v41 = vor.u32 %v2496_v39, %v2271_v38  ;;  %v2297_v38 = vld [vmem:[#allocation9 + $0x1f8] sm:$0xf0] }
  0xcc   : > { %1316 = vmatpush.bf16.msra.mxu1 %v2120_v58  ;;  %v2183_v58 = vld [vmem:[#allocation9 + $0x110] sm:$0xf] }
  0xcd   : > { %1341 = vmatpush.bf16.msra.mxu3 %v2272_v41  ;;  %v2184_v61 = vor.u32 %v2474_v59, %v2183_v58  ;;  %v2481_v41 = vld [vmem:[#allocation9 + $0x154] sm:$0xf]  ;;  %v2209_v58 = vld [vmem:[#allocation9 + $0x148] sm:$0xf0] }
  0xce   : > { %v2220_v46 = vor.u32 %v2481_v41, %v2217_v42  ;;  %v2241_v41 = vld [vmem:[#allocation9 + $0x188] sm:$0xf0] }
  0xcf   : > { %1303 = vmatpush.bf16.msra.mxu0 %v2048_v47  ;;  %v2192_v47 = vor.u32 %v2476_v45, %v2191_v44 }
  0xd0   : > { %1317 = vmatpush.bf16.msra.mxu1 %v2112_v5 }
  0xd1   : > { %1329 = vmatpush.bf16.msra.mxu2 %v2192_v47  ;;  %1342 = vmatpush.bf16.msra.mxu3 %v2264_v56 }
  0xd3   : > { %1352 = vmatpush.bf16.msrb.mxu0 %v2108_v54  ;;  %v2461_v54 = vld [vmem:[#allocation9 + $0xb4] sm:$0xf] }
  0xd4   : > { %1366 = vmatpush.bf16.msrb.mxu1 %v2172_v9  ;;  %v2140_v60 = vor.u32 %v2461_v54, %v2137_v57  ;;  %v2472_v9 = vld [vmem:[#allocation9 + $0x104] sm:$0xf0]  ;;  %v2292_v54 = vor.u32 %v2499_v52, %v2289_v53  ;;  %v2479_v57 = vld [vmem:[#allocation9 + $0x144] sm:$0xf] }
  0xd5   : > { %1330 = vmatpush.bf16.msra.mxu2 %v2184_v61  ;;  %v2176_v11 = vor.u32 %v2472_v9, %v2175_v8  ;;  %v2212_v61 = vor.u32 %v2479_v57, %v2209_v58 }
  0xd7   : > { %1353 = vmatpush.bf16.msrb.mxu0 %v2100_v1  ;;  %v2255_v1 = vld [vmem:[#allocation9 + $0x1a0] sm:$0xf] }
  0xd8   : > { %1367 = vmatpush.bf16.msrb.mxu1 %v2164_v21  ;;  %v2256_v5 = vor.u32 %v2492_v2, %v2255_v1  ;;  %v2281_v1 = vld [vmem:[#allocation9 + $0x1d8] sm:$0xf0] }
  0xd9   : > { %1331 = vmatpush.bf16.msra.mxu2 %v2176_v11 }
  0xda   : > { %1343 = vmatpush.bf16.msra.mxu3 %v2256_v5  ;;  %v2477_v5 = vld [vmem:[#allocation9 + $0x134] sm:$0xf] }
  0xdb   : > { %1354 = vmatpush.bf16.msrb.mxu0 %v2092_v15  ;;  %v2204_v11 = vor.u32 %v2477_v5, %v2201_v6 }
  0xdc   : > { %1368 = vmatpush.bf16.msrb.mxu1 %v2156_v33 }
  0xdd   : > { %1380 = vmatpush.bf16.msrb.mxu2 %v2236_v17  ;;  %v2193_v17 = vld [vmem:[#allocation9 + $0x128] sm:$0xf0] }
  0xde   : > { %1344 = vmatpush.bf16.msra.mxu3 %v2248_v23 }
  0xdf   : > { %1355 = vmatpush.bf16.msrb.mxu0 %v2084_v27  ;;  %v2483_v27 = vld [vmem:[#allocation9 + $0x164] sm:$0xf] }
  0xe0   : > { %1369 = vmatpush.bf16.msrb.mxu1 %v2148_v43  ;;  %v2228_v30 = vor.u32 %v2483_v27, %v2225_v28  ;;  %v2185_v27 = vld [vmem:[#allocation9 + $0x118] sm:$0xf0]  ;;  %v2491_v28 = vld [vmem:[#allocation9 + $0x1a4] sm:$0xf] }
  0xe2   : > { %1381 = vmatpush.bf16.msrb.mxu2 %v2228_v30  ;;  %1345 = vmatpush.bf16.msra.mxu3 %v2240_v51 }
  0xe3   : > { %1356 = vmatpush.bf16.msrb.mxu0 %v2076_v37  ;;  %v2501_v37 = vld [vmem:[#allocation9 + $0x1f4] sm:$0xf] }
  0xe4   : > { %1370 = vmatpush.bf16.msrb.mxu1 %v2140_v60  ;;  %v2300_v40 = vor.u32 %v2501_v37, %v2297_v38  ;;  %v878_v60 = vperm.slane %v3246_v25, 1  ;;  %v2252_v38 = vor.u32 %v2489_v35, %v2249_v55 }
  0xe6   : > { %1394 = vmatpush.bf16.msrb.mxu3 %v2300_v40  ;;  %1382 = vmatpush.bf16.msrb.mxu2 %v2220_v46  ;;  %v2487_v40 = vld [vmem:[#allocation9 + $0x184] sm:$0xf]  ;;  %v879_v46 = vperm.slane %v3246_v25, 2 }
  0xe7   : > { %1357 = vmatpush.bf16.msrb.mxu0 %v2068_v50 }
  0xe8   : > { %1371 = vmatpush.bf16.msrb.mxu1 %v2132_v7 }
  0xea   : > { %1395 = vmatpush.bf16.msrb.mxu3 %v2292_v54  ;;  %1383 = vmatpush.bf16.msrb.mxu2 %v2212_v61 }
  0xeb   : > { %1358 = vmatpush.bf16.msrb.mxu0 %v2060_v0  ;;  %v2497_v0 = vld [vmem:[#allocation9 + $0x1d4] sm:$0xf] }
  0xec   : > { %1372 = vmatpush.bf16.msrb.mxu1 %v2124_v26  ;;  %v2284_v2 = vor.u32 %v2497_v0, %v2281_v1  ;;  %v2473_v26 = vld [vmem:[#allocation9 + $0x114] sm:$0xf] }
  0xed   : > { %v2188_v30 = vor.u32 %v2473_v26, %v2185_v27 }
  0xee   : > { %1396 = vmatpush.bf16.msrb.mxu3 %v2284_v2  ;;  %1384 = vmatpush.bf16.msrb.mxu2 %v2204_v11  ;;  %v2506_v11 = vld [vmem:[#allocation10 + $0x18] sm:$0xff] }
  0xef   : > { %1359 = vmatpush.bf16.msrb.mxu0 %v2052_v16  ;;  %v2475_v16 = vld [vmem:[#allocation9 + $0x124] sm:$0xf] }
  0xf0   : > { %1373 = vmatpush.bf16.msrb.mxu1 %v2116_v36  ;;  %v2196_v20 = vor.u32 %v2475_v16, %v2193_v17  ;;  %v428_v36 = vperm.slane %v3243_v49, 2  ;;  %v2516_v16 = vld [vmem:[#allocation10 + $0x68] sm:$0xff]  ;;  %v2503_v17 = vld [vmem:[#allocation10] sm:$0xff] }
  0xf2   : > { %1385 = vmatpush.bf16.msrb.mxu2 %v2196_v20 }
  0xf6   : > { %1386 = vmatpush.bf16.msrb.mxu2 %v2188_v30 }
 0x10f   : > { %v763_v15 = vpop.f32.mrf.mxu0 }
 0x110   : > { %v764_v21 = vadd.f32 %v763_v15, %v426_v4  ;;  %v2276_v15 = vor.u32 %v2495_v12, %v2273_v13  ;;  %v2518_v12 = vld [vmem:[#allocation10 + $0x78] sm:$0xff]  ;;  %v2505_v13 = vld [vmem:[#allocation10 + $0x10] sm:$0xff] }
 0x112   : > { %v777_v22 = vpop.f32.mrf.mxu1  ;;  %1397 = vmatpush.bf16.msrb.mxu3 %v2276_v15  ;;  %v2504_v15 = vld [vmem:[#allocation10 + $0x8] sm:$0xff] }
 0x113   : > { %v778_v33 = vadd.f32 %v777_v22, %v764_v21  ;;  %v2493_v21 = vld [vmem:[#allocation9 + $0x1b4] sm:$0xf]  ;;  %v2265_v22 = vld [vmem:[#allocation9 + $0x1b8] sm:$0xf0] }
 0x114   : > { %v2268_v24 = vor.u32 %v2493_v21, %v2265_v22  ;;  %v2513_v22 = vld [vmem:[#allocation10 + $0x50] sm:$0xff] }
 0x115   : > { %v885_v47 = vmul.f32 %v877_v34, %v778_v33  ;;  %vm868_vm0 = vcmp.gt.f32.partialorder %v778_v33, 0.0 }
 0x116   : > { %v791_v39 = vpop.f32.mrf.mxu2  ;;  %1398 = vmatpush.bf16.msrb.mxu3 %v2268_v24  ;;  %v2512_v24 = vld [vmem:[#allocation10 + $0x48] sm:$0xff] }
 0x117   : > { %v792_v43 = vadd.f32 %v791_v39, %v427_v29  ;;  %v765_v44 = vpop.f32.mrf.mxu0  ;;  %v893_v62 = vsel %vm868_vm0, %v778_v33, %v885_v47  ;;  %v2177_v33 = vld [vmem:[#allocation9 + $0x108] sm:$0xf0] }
 0x118   : > { %v766_v48 = vadd.f32 %v765_v44, %v426_v4  ;;  %v2180_v51 = vor.u32 %v2471_v32, %v2177_v33  ;;  %v429_v44 = vperm.slane %v3243_v49, 3 }
 0x119   : > { %v805_v45 = vpop.f32.mrf.mxu3 }
 0x11a   : > { %v779_v50 = vpop.f32.mrf.mxu1  ;;  %v806_v59 = vadd.f32 %v805_v45, %v792_v43  ;;  %1387 = vmatpush.bf16.msrb.mxu2 %v2180_v51  ;;  %v2244_v43 = vor.u32 %v2487_v40, %v2241_v41  ;;  %v1409_v51 = vld [vmem:[#allocation12 + $0x3] ss:$8 sm:$0x3] }
 0x11b   : > { %v780_v56 = vadd.f32 %v779_v50, %v766_v48 }
 0x11c   : > { %v886_v7 = vmul.f32 %v878_v60, %v806_v59  ;;  %vm869_vm2 = vcmp.gt.f32.partialorder %v806_v59, 0.0 }
 0x11d   : > { %vm872_vm1 = vcmp.gt.f32.partialorder %v780_v56, 0.0  ;;  %v889_v63 = vmul.f32 %v877_v34, %v780_v56  ;;  %v2260_v34 = vor.u32 %v2491_v28, %v2257_v31 }
 0x11e   : > { %v793_v4 = vpop.f32.mrf.mxu2  ;;  %v894_v18 = vsel %vm869_vm2, %v806_v59, %v886_v7 }
 0x11f   : > { %v897_v3 = vsel %vm872_vm1, %v780_v56, %v889_v63  ;;  %v794_v9 = vadd.f32 %v793_v4, %v427_v29  ;;  %1399 = vmatpush.bf16.msrb.mxu3 %v2260_v34 }
 0x120   : > { %v901_v8 = vpack.c.bf16 %v897_v3, %v893_v62 }
 0x121   : > { %v807_v10 = vpop.f32.mrf.mxu3 }
 0x122   : > { %v808_v14 = vadd.f32 %v807_v10, %v794_v9  ;;  %1304 = vmatmul.bf16.vlgmr.msra.gmra.mxu0 %v901_v8  ;;  %v2508_v9 = vld [vmem:[#allocation10 + $0x28] sm:$0xff]  ;;  %v2507_v10 = vld [vmem:[#allocation10 + $0x20] sm:$0xff] }
 0x123   : > { %1400 = vmatpush.bf16.msrb.mxu3 %v2252_v38  ;;  %v1415_v38 = vperm.slane %v1409_v51, 0 }
 0x124   : > { %vm873_vm3 = vcmp.gt.f32.partialorder %v808_v14, 0.0  ;;  %v890_v19 = vmul.f32 %v878_v60, %v808_v14  ;;  %v880_v60 = vperm.slane %v3246_v25, 3  ;;  %v2509_v25 = vld [vmem:[#allocation10 + $0x30] sm:$0xff] }
 0x126   : > { %v898_v23 = vsel %vm873_vm3, %v808_v14, %v890_v19  ;;  %v2517_v14 = vld [vmem:[#allocation10 + $0x70] sm:$0xff]  ;;  %v2514_v19 = vld [vmem:[#allocation10 + $0x58] sm:$0xff] }
 0x127   : > { %v902_v29 = vpack.c.bf16 %v898_v23, %v894_v18  ;;  %1401 = vmatpush.bf16.msrb.mxu3 %v2244_v43  ;;  %v2515_v18 = vld [vmem:[#allocation10 + $0x60] sm:$0xff] }
 0x128   : > { %v970_v23 = vld [vmem:[#allocation12 + $0x2] ss:$8 sm:$0x3] }
 0x129   : > { %1318 = vmatmul.bf16.vlgmr.msra.gmra.mxu1 %v902_v29  ;;  %v972_v26 = vperm.slane %v970_v23, 0 }
 0x12a   : > { %1572 = vmatpush.bf16.msra.mxu1 %v2518_v12 }
 0x12e   : > { %1573 = vmatpush.bf16.msra.mxu1 %v2517_v14  ;;  %v1599_v14 = vstv %s2366_s16 }
 0x12f   : > { %v819_v37 = vpop.f32.mrf.mxu0 }
 0x130   : > { %v833_v39 = vpop.f32.mrf.mxu1  ;;  %v820_v42 = vadd.f32 %v819_v37, %v428_v36 }
 0x132   : > { %1360 = vmatmul.bf16.vlgmr.msrb.gmra.mxu0 %v901_v8  ;;  %v834_v45 = vadd.f32 %v833_v39, %v820_v42  ;;  %v2510_v8 = vld [vmem:[#allocation10 + $0x38] sm:$0xff]  ;;  %1574 = vmatpush.bf16.msra.mxu1 %v2516_v16 }
 0x133   : > { %1558 = vmatpush.bf16.msra.mxu0 %v2510_v8 }
 0x134   : > { %v887_v56 = vmul.f32 %v879_v46, %v834_v45  ;;  %vm870_vm4 = vcmp.gt.f32.partialorder %v834_v45, 0.0 }
 0x136   : > { %v895_v49 = vsel %vm870_vm4, %v834_v45, %v887_v56  ;;  %1575 = vmatpush.bf16.msra.mxu1 %v2515_v18 }
 0x137   : > { %v847_v47 = vpop.f32.mrf.mxu2  ;;  %v821_v50 = vpop.f32.mrf.mxu0  ;;  %1559 = vmatpush.bf16.msra.mxu0 %v2509_v25  ;;  %v1596_v25 = vlaneseq }
 0x138   : > { %v861_v48 = vpop.f32.mrf.mxu3  ;;  %v822_v52 = vadd.f32 %v821_v50, %v428_v36  ;;  %v848_v53 = vadd.f32 %v847_v47, %v429_v44  ;;  %v835_v54 = vpop.f32.mrf.mxu1 }
 0x139   : > { %1374 = vmatmul.bf16.vlgmr.msrb.gmra.mxu1 %v902_v29  ;;  %v2511_v29 = vld [vmem:[#allocation10 + $0x40] sm:$0xff]  ;;  %v1597_v12 = vshrl.u32 %v1596_v25, 7 }
 0x13a   : > { %v836_v57 = vadd.f32 %v835_v54, %v822_v52  ;;  %v862_v59 = vadd.f32 %v861_v48, %v848_v53  ;;  %1576 = vmatpush.bf16.msra.mxu1 %v2514_v19 }
 0x13b   : > { %1560 = vmatpush.bf16.msra.mxu0 %v2508_v9  ;;  %v1461_v9 = vld [vmem:[#allocation12 + $0x4] ss:$0 sm:$0xff]  ;;  %v1600_v18 = vadd.s32 %v1599_v14, %v1597_v12 }
 0x13c   : > { %vm874_vm5 = vcmp.gt.f32.partialorder %v836_v57, 0.0  ;;  %v891_v58 = vmul.f32 %v879_v46, %v836_v57  ;;  %v888_v2 = vmul.f32 %v880_v60, %v862_v59  ;;  %vm871_vm6 = vcmp.gt.f32.partialorder %v862_v59, 0.0 }
 0x13d   : > { %v973_v46 = vperm.slane %v970_v23, 1 }
 0x13e   : > { %v899_v61 = vsel %vm874_vm5, %v836_v57, %v891_v58  ;;  %v896_v5 = vsel %vm871_vm6, %v862_v59, %v888_v2  ;;  %1577 = vmatpush.bf16.msra.mxu1 %v2513_v22 }
 0x13f   : > { %v849_v62 = vpop.f32.mrf.mxu2  ;;  %v903_v63 = vpack.c.bf16 %v899_v61, %v895_v49  ;;  %1561 = vmatpush.bf16.msra.mxu0 %v2507_v10 }
 0x140   : > { %v850_v0 = vadd.f32 %v849_v62, %v429_v44  ;;  %v863_v1 = vpop.f32.mrf.mxu3 }
 0x141   : > { %1332 = vmatmul.bf16.vlgmr.msra.gmra.mxu2 %v903_v63 }
 0x142   : > { %v864_v3 = vadd.f32 %v863_v1, %v850_v0  ;;  %1578 = vmatpush.bf16.msra.mxu1 %v2512_v24 }
 0x143   : > { %1562 = vmatpush.bf16.msra.mxu0 %v2506_v11 }
 0x144   : > { %vm875_vm7 = vcmp.gt.f32.partialorder %v864_v3, 0.0  ;;  %v892_v4 = vmul.f32 %v880_v60, %v864_v3 }
 0x146   : > { %v900_v6 = vsel %vm875_vm7, %v864_v3, %v892_v4  ;;  %1579 = vmatpush.bf16.msra.mxu1 %v2511_v29 }
 0x147   : > { %v904_v7 = vpack.c.bf16 %v900_v6, %v896_v5  ;;  %1563 = vmatpush.bf16.msra.mxu0 %v2505_v13 }
 0x149   : > { %1346 = vmatmul.bf16.vlgmr.msra.gmra.mxu3 %v904_v7 }
 0x14b   : > { %1564 = vmatpush.bf16.msra.mxu0 %v2504_v15  ;;  %v1598_v15 = vadd.s32 8, %v1597_v12 }
 0x14d   : > { %v1601_v22 = vadd.s32 %v1599_v14, %v1598_v15 }
 0x14f   : > { %1565 = vmatpush.bf16.msra.mxu0 %v2503_v17  ;;  %v1586_v17 = vld [vmem:[#allocation12 + $0x5] ss:$0 sm:$0xff] }
 0x151   : > { %1388 = vmatmul.bf16.vlgmr.msrb.gmra.mxu2 %v903_v63  ;;  %v1416_v63 = vperm.slane %v1409_v51, 1 }
 0x159   : > { %1402 = vmatmul.bf16.vlgmr.msrb.gmra.mxu3 %v904_v7 }
 0x19f   : > { %v1305_v20 = vpop.f32.mrf.mxu0 }
 0x1a0   : > { %v1306_v30 = vadd.f32 %v1305_v20, %v972_v26 }
 0x1a6   : > { %v1319_v21 = vpop.f32.mrf.mxu1 }
 0x1a7   : > { %v1307_v28 = vpop.f32.mrf.mxu0  ;;  %v1320_v33 = vadd.f32 %v1319_v21, %v1306_v30  ;;  %v1603_v21 = vstv %s1602_s15 }
 0x1a8   : > { %v1308_v35 = vadd.f32 %v1307_v28, %v972_v26  ;;  %vm1604_vm13 = vcmp.lt.s32.totalorder %v1600_v18, %v1603_v21  ;;  %vm1605_vm15 = vcmp.lt.s32.totalorder %v1601_v22, %v1603_v21 }
 0x1ae   : > { %v1321_v31 = vpop.f32.mrf.mxu1 }
 0x1af   : > { %v1322_v36 = vadd.f32 %v1321_v31, %v1308_v35  ;;  %v1361_v39 = vpop.f32.mrf.mxu0 }
 0x1b0   : > { %v1362_v53 = vadd.f32 %v1361_v39, %v973_v46 }
 0x1b6   : > { %v1375_v41 = vpop.f32.mrf.mxu1 }
 0x1b7   : > { %v1363_v54 = vpop.f32.mrf.mxu0  ;;  %v1376_v57 = vadd.f32 %v1375_v41, %v1362_v53 }
 0x1b8   : > { %v1364_v59 = vadd.f32 %v1363_v54, %v973_v46 }
 0x1be   : > { %v1377_v58 = vpop.f32.mrf.mxu1 }
 0x1bf   : > { %v1378_v61 = vadd.f32 %v1377_v58, %v1364_v59 }
 0x1c4   : > { %v1333_v27 = vpop.f32.mrf.mxu2 }
 0x1c5   : > { %v1334_v55 = vadd.f32 %v1333_v27, %v1320_v33 }
 0x1cc   : > { %v1347_v32 = vpop.f32.mrf.mxu3  ;;  %v1335_v34 = vpop.f32.mrf.mxu2 }
 0x1cd   : > { %v1348_v37 = vadd.f32 %v1347_v32, %v1334_v55  ;;  %v1336_v40 = vadd.f32 %v1335_v34, %v1322_v36 }
 0x1cf   : > { %v1419_v43 = vmul.f32 %v1415_v38, %v1348_v37  ;;  %vm1410_vm8 = vcmp.gt.f32.partialorder %v1348_v37, 0.0 }
 0x1d1   : > { %v1423_v48 = vsel %vm1410_vm8, %v1348_v37, %v1419_v43 }
 0x1d4   : > { %v1349_v42 = vpop.f32.mrf.mxu3  ;;  %v1389_v45 = vpop.f32.mrf.mxu2 }
 0x1d5   : > { %v1350_v44 = vadd.f32 %v1349_v42, %v1336_v40  ;;  %v1390_v60 = vadd.f32 %v1389_v45, %v1376_v57 }
 0x1d7   : > { %vm1412_vm9 = vcmp.gt.f32.partialorder %v1350_v44, 0.0  ;;  %v1421_v47 = vmul.f32 %v1415_v38, %v1350_v44 }
 0x1d9   : > { %v1425_v50 = vsel %vm1412_vm9, %v1350_v44, %v1421_v47 }
 0x1da   : > { %v1427_v52 = vpack.c.bf16 %v1425_v50, %v1423_v48 }
 0x1dc   : > { %v1403_v56 = vpop.f32.mrf.mxu3  ;;  %1566 = vmatmul.bf16.vlgmr.msra.gmra.mxu0 %v1427_v52  ;;  %v1391_v49 = vpop.f32.mrf.mxu2 }
 0x1dd   : > { %v1404_v62 = vadd.f32 %v1403_v56, %v1390_v60  ;;  %v1392_v0 = vadd.f32 %v1391_v49, %v1378_v61 }
 0x1df   : > { %v1420_v2 = vmul.f32 %v1416_v63, %v1404_v62  ;;  %vm1411_vm10 = vcmp.gt.f32.partialorder %v1404_v62, 0.0 }
 0x1e1   : > { %v1424_v5 = vsel %vm1411_vm10, %v1404_v62, %v1420_v2 }
 0x1e4   : > { %v1405_v1 = vpop.f32.mrf.mxu3 }
 0x1e5   : > { %v1406_v3 = vadd.f32 %v1405_v1, %v1392_v0 }
 0x1e7   : > { %vm1413_vm11 = vcmp.gt.f32.partialorder %v1406_v3, 0.0  ;;  %v1422_v4 = vmul.f32 %v1416_v63, %v1406_v3 }
 0x1e9   : > { %v1426_v6 = vsel %vm1413_vm11, %v1406_v3, %v1422_v4 }
 0x1ea   : > { %v1428_v7 = vpack.c.bf16 %v1426_v6, %v1424_v5 }
 0x1ec   : > { %1580 = vmatmul.bf16.vlgmr.msra.gmra.mxu1 %v1428_v7 }
 0x259   : > { %v1567_v8 = vpop.f32.mrf.mxu0 }
 0x25a   : > { %v1568_v11 = vadd.f32 %v1567_v8, %v1461_v9 }
 0x261   : > { %v1569_v16 = vpop.f32.mrf.mxu0 }
 0x262   : > { %v1570_v19 = vadd.f32 %v1569_v16, %v1461_v9 }
 0x269   : > { %v1581_v10 = vpop.f32.mrf.mxu1 }
 0x26a   : > { %v1582_v13 = vadd.f32 %v1581_v10, %v1568_v11 }
 0x26c   : > { %v1589_v20 = vmul.f32 %v1586_v17, %v1582_v13  ;;  %vm1587_vm12 = vcmp.gt.f32.partialorder %v1582_v13, 0.0 }
 0x26e   : > { %v1591_v26 = vsel %vm1587_vm12, %v1582_v13, %v1589_v20 }
 0x26f   : > { %v1610_v29 = vsel %vm1604_vm13, %v1591_v26, -inf }
 0x271   : > { %v1583_v23 = vpop.f32.mrf.mxu1 }
 0x272   : > { %v1584_v24 = vadd.f32 %v1583_v23, %v1570_v19 }
 0x274   : > { %vm1588_vm14 = vcmp.gt.f32.partialorder %v1584_v24, 0.0  ;;  %v1590_v27 = vmul.f32 %v1586_v17, %v1584_v24 }
 0x276   : > { %v1592_v28 = vsel %vm1588_vm14, %v1584_v24, %v1590_v27 }
 0x277   : > { %v1611_v30 = vsel %vm1605_vm15, %v1592_v28, -inf }
 0x278   : > { %v1612_v31 = vmax.f32 %v1610_v29, %v1611_v30 }
 0x27a   : > { %v1613_v32 = vrot.slane %v1612_v31, 4 }
 0x27c   : > { %v1614_v33 = vmax.f32 %v1612_v31, %v1613_v32 }
 0x27e   : > { %v1615_v34 = vrot.slane %v1614_v33, 2 }
 0x280   : > { %v1616_v51 = vmax.f32 %v1614_v33, %v1615_v34  ;;  %1622 = sbr.rel (%p2367_p7) target bundleno = 647 (0x287), region = 64 }
 0x282   : > { %v1617_v35 = vrot.slane %v1616_v51, 1 }
 0x284   : > { %v1618_v55 = vmax.f32 %v1616_v51, %v1617_v35 }
 0x285   : > { %v2969_v36 = vmov -inf  }
 0x286   : > { %1623 = vst [vmem:[%s343_s26] sm:$0xff] %v2969_v36 }
 0x287 PF: > { %s2369_s25 = sshll.u32 %s2942_s0, 3  ;;  %s3353_s12 = sld [smem:[#allocation30_spill]] }
 0x288   : > { %s1640_s11 = sshll.u32 %s343_s26, 4  ;;  %s1628_s29 = scalar_lea.sflag [#allocation6], %s341_s9  ;;  %s1641_s11 = int_to_ptr.vmem [resolvable:$true] %s1640_s11 }
 0x28d   : > { %v1624_v37 = vld [vmem:[%s343_s26] sm:$0xff]  ;;  %s1638_s20 = scalar_lea.hbm %s3353_s12, %s2369_s25  ;;  %s2844_s22 = scalar_lea.hbm %s3353_s12, 16 }
 0x28e   : > { %v1625_v38 = vmax.f32 %v1624_v37, %v1618_v55  ;;  %s1642_s19 = sshll.u32 %s1638_s20, 4  ;;  %s1643_s19 = int_to_ptr.hbm [resolvable:$true] %s1642_s19 }
 0x28f   : > { %s2838_s10 = sshra.s32 %s1643_s19, 4  ;;  %s2839_s10 = int_to_ptr.hbm [resolvable:$true] %s2838_s10 }
 0x290   : > { %1626 = vst [vmem:[%s343_s26] sm:$0xff] %v1625_v38  ;;  %s2840_s30 = scalar_lea.hbm %s2839_s10, 8  ;;  %p2845_p4 = scmp.lt.s32.totalorder %s2839_s10, %s3353_s12 }
 0x291   : > { %p2841_p9 = scmp.ne.s32.totalorder %s2839_s10, %s2840_s30  ;;  %p2846_p6 = scmp.lt.s32.totalorder %s2844_s22, %s2840_s30 }
 0x293   : > { %p2842_p8 = pnand %p2841_p9, %p3118_p2  ;;  %p2847_p10 = por %p2846_p6, %p2845_p4 }
 0x295   : > { %p2843_p5 = pneg %p2842_p8 }
 0x297   : > { %p2848_p11 = pnand %p2847_p10, %p2843_p5 }
 0x299   : > { %2851 = shalt.err (!%p2848_p11)
}
 0x29a   : > { %2536 = dma.vmem_to_hbm [thread:$0]  (%p3118_p2), %s1641_s11, 128, %s1643_s19, %s1628_s29  }
 0x29b PF: > { %s3354_s4 = sld [smem:[#allocation18_spill]]  ;;  %p2563_p12 = scmp.ge.s32.totalorder %s2954_s8, 2 }
 0x29d   : > { %p2552_p13 = pnand %p2563_p12, %p3122_p3 }
 0x29f   : > { %p2553_p0 = pneg %p2552_p13 }
 0x2a1   : > { %s1654_s23 = sand.u32 1, %s3354_s4  }
 0x2a2   : > { %s1655_s18 = scalar_lea.sflag [#allocation6], %s1654_s23 }
 0x2a3   : > { %2909 = dma.done.wait (%p2553_p0), %s1655_s18, 128  }
 0x2a4   : > { %2911 = vsyncadd (%p2553_p0), %s1655_s18, 4294967168  ;;  %s25_s8 = sadd.s32 1, %s2954_s8   ;;  %s3356_s21 = sld [smem:[#allocation19_spill]] }
 0x2a5   : > { %p22_p1 = scmp.ge.s32.totalorder %s25_s8, 6   ;;  %s3357_s25 = sld [smem:[#allocation24_spill]] }
 0x2a6   : > { %s3358_s15 = sld [smem:[#allocation25_spill]]  ;;  %s3363_s23 = smov %s2918_s24 }
 0x2a7   : > { %s3359_s29 = sld [smem:[#allocation20_spill]]  ;;  %s3365_s26 = smov %s2930_s27 }
 0x2a8   : > { %s3360_s0 = sld [smem:[#allocation21_spill]]  ;;  %s3366_s27 = smov %s2934_s28 }
 0x2a9   : > { %s3361_s30 = sld [smem:[#allocation22_spill]]  ;;  %24 = sbr.rel (!%p22_p1) target bundleno = 16 (0x10), region = 108 }
 0x2aa   : > { %s3362_s7 = sld [smem:[#allocation23_spill]]  ;;  %s3364_s24 = smov %s3356_s21 }
 0x2ac   : > { %s3367_s28 = smov %s3358_s15 }
 0x2ae   :  { %1661 = vsyncpa [#allocation5], 1 }
 0x2af   :  { %1663 = vsyncpa [#allocation5 + $0x1], 1 }
 0x2b0   :  { %1664 = vsyncpa [#allocation8], 1 }
 0x2b1   :  { %1665 = vsyncpa [#allocation11], 1 }
 0x2b2   :  { %1666 = vsyncpa [#allocation6], 1 }
 0x2b3   :  { %1668 = vsyncpa [#allocation6 + $0x1], 1 }

</bundles_post_ra>
